<compile_context>
chip_gen: v5e
topology: v5e:2x2
jax: 0.10.0
libtpu: 0.0.40
codegen_flags: <defaults>
</compile_context>

<pallas_src>
import functools

import numpy as np
import jax
import jax.numpy as jnp
from jax import lax
from jax.experimental import pallas as pl
from jax.experimental.pallas import tpu as pltpu


# ----------------------------- model config -------------------------------
# (cin, cout, kernel, stride, pad, groups)
CONV_CFG = [
    (11, 3, 3, 2, 4, 1),      # feature[0]   (kernel_size assumed 3)
    (3, 64, 3, 1, 1, 1),      # feature[1]
    (64, 64, 3, 2, 0, 1),     # feature[2]   (kernel_size assumed 3)
    (64, 64, 3, 1, 1, 64),    # feature[3]   depthwise
    (64, 64, 3, 1, 1, 64),    # feature[6]
    (64, 64, 3, 1, 1, 64),    # feature[7]
    (64, 64, 3, 1, 1, 64),    # feature[8]
    (64, 96, 2, 1, 1, 32),    # feature[11]  grouped (32 groups)
    (96, 256, 2, 1, 1, 1),    # classifier[0]
    (256, 256, 2, 1, 1, 1),   # classifier[3]
    (256, 256, 1, 1, 0, 1),   # classifier[4]
    (256, 20, 2, 1, 1, 1),    # classifier[7]
]
BN_CHANNELS = [64, 64, 96, 256, 256]
BN_EPS = 1e-5

# Execution order; every ('bn', i) is followed by an (inplace) ReLU.
SEQUENCE = [
    ('c', 0), ('c', 1), ('c', 2), ('c', 3), ('bn', 0),
    ('c', 4), ('c', 5), ('c', 6), ('bn', 1),
    ('c', 7), ('bn', 2),
    ('c', 8), ('bn', 3),
    ('c', 9), ('c', 10), ('bn', 4),
    ('c', 11),
]

_SLAB_W = 256       # lane width of the packed parameter slab
_ALIGN = 8          # sublane alignment of every slab entry
_LANE = 128         # per-tap channel blocks in the patch scratch pad to this


def _is_depthwise(cfg):
    cin, cout, _k, _s, _p, g = cfg
    return g > 1 and g == cin == cout


def _cpad(cin):
    return ((cin + _LANE - 1) // _LANE) * _LANE


# ------------------------- static plan / slab layout -----------------------

def _make_plan(l_in):
    """Per-op static metadata + slab row offsets for an input of length l_in."""
    steps = []
    rows = 0

    def alloc(shape):
        nonlocal rows
        slot = (rows, shape)
        rows += -(-shape[0] // _ALIGN) * _ALIGN
        return slot

    l = l_in
    for kind, idx in SEQUENCE:
        if kind == 'c':
            cin, cout, k, s, p, g = CONV_CFG[idx]
            l_out = (l + 2 * p - k) // s + 1
            if _is_depthwise(CONV_CFG[idx]):
                steps.append(dict(op='dw', idx=idx, k=k, pad=p, l_in=l,
                                  l_out=l_out, cin=cin, cout=cout,
                                  cpad=_cpad(cin),
                                  w=alloc((k, cin)), b=alloc((1, cout))))
            else:
                cpad = _cpad(cin)
                l_s1 = l + 2 * p - k + 1          # stride-1 patch-row count
                steps.append(dict(op='dense', idx=idx, k=k, pad=p, l_in=l,
                                  l_out=l_out, cin=cin, cout=cout, cpad=cpad,
                                  l_s1=l_s1,
                                  w=alloc((k * cpad, cout)),
                                  b=alloc((1, cout)),
                                  sub=alloc((l_out, l_s1)) if s > 1 else None))
            l = l_out
        else:
            c = BN_CHANNELS[idx]
            steps.append(dict(op='bn', idx=idx, c=c,
                              gamma=alloc((1, c)), beta=alloc((1, c))))
    return tuple(steps), rows, l


# --------------------------- fused Pallas kernel ---------------------------

def _read(slab_ref, slot):
    off, (r, c) = slot
    return slab_ref[pl.ds(off, r), pl.ds(0, c)]


def _fill_tap_blocks(patches_ref, h, *, k, pad, l_tgt, cpad):
    """patches[l, kk*cpad + c] = h[l + kk - pad, c] (0 out of range), l < l_tgt."""
    l_in, cin = h.shape
    patches_ref[pl.ds(0, l_tgt), pl.ds(0, k * cpad)] = jnp.zeros(
        (l_tgt, k * cpad), jnp.float32)
    for kk in range(k):
        off = kk - pad
        lo = max(0, -off)                      # first valid output row
        src_lo = lo + off                      # >= 0
        n = min(l_tgt - lo, l_in - src_lo)
        if n <= 0:
            continue
        src = h if (src_lo == 0 and n == l_in) else h[src_lo:src_lo + n, :]
        patches_ref[pl.ds(lo, n), pl.ds(kk * cpad, cin)] = src


def _bn_relu(h, gamma, beta):
    """Training-mode BatchNorm1d (batch stats, biased var) + ReLU on (L, C)."""
    l = h.shape[0]
    inv_n = 1.0 / float(l)
    mean = jnp.sum(h, axis=0, keepdims=True) * inv_n
    centered = h - mean
    var = jnp.sum(centered * centered, axis=0, keepdims=True) * inv_n   # >= 0
    scale = gamma * lax.rsqrt(var + BN_EPS)            # (1, C)
    shift = beta - mean * scale
    return jnp.maximum(h * scale + shift, 0.0)         # one FMA + ReLU


def _fused_kernel(x_ref, slab_ref, out_ref, patches_ref, *, steps):
    h = x_ref[...]                                     # (L_in, C_in) f32
    for st in steps:
        if st['op'] == 'dense':
            k, pad, cpad = st['k'], st['pad'], st['cpad']
            w = _read(slab_ref, st['w'])               # (k*cpad, cout)
            b = _read(slab_ref, st['b'])               # (1, cout)
            if k == 1 and pad == 0:                    # classifier 1x1 conv
                h = jnp.dot(h, w[0:st['cin'], :],
                            preferred_element_type=jnp.float32) + b
            else:
                l_tgt = st['l_s1']                     # stride-1 row count
                _fill_tap_blocks(patches_ref, h, k=k, pad=pad,
                                 l_tgt=l_tgt, cpad=cpad)
                p = patches_ref[pl.ds(0, l_tgt), pl.ds(0, k * cpad)]
                h = jnp.dot(p, w, preferred_element_type=jnp.float32) + b
                if st['sub'] is not None:              # stride-2: subsample rows
                    s = _read(slab_ref, st['sub'])     # (l_out, l_s1) 0/1
                    h = jnp.dot(s, h, preferred_element_type=jnp.float32)
        elif st['op'] == 'dw':
            k, pad, cpad, cin = st['k'], st['pad'], st['cpad'], st['cin']
            w = _read(slab_ref, st['w'])               # (k, cin) tap rows
            b = _read(slab_ref, st['b'])               # (1, cin)
            _fill_tap_blocks(patches_ref, h, k=k, pad=pad,
                             l_tgt=st['l_out'], cpad=cpad)
            acc = b
            for kk in range(k):                        # pure VPU, no MXU
                if kk - pad == 0 and st['l_out'] == st['l_in']:
                    tap = h
                else:
                    tap = patches_ref[pl.ds(0, st['l_out']),
                                      pl.ds(kk * cpad, cin)]
                acc = acc + tap * w[kk:kk + 1, :]
            h = acc
        else:                                          # bn + relu
            gamma = _read(slab_ref, st['gamma'])
            beta = _read(slab_ref, st['beta'])
            h = _bn_relu(h, gamma, beta)
    out_ref[...] = h


# ------------------------------ JAX wrappers -------------------------------

_VMEM = pl.BlockSpec(memory_space=pltpu.MemorySpace.VMEM)


@jax.jit
def forward(slab, x):
    """x: (1, 11, L) f32.  Returns (1, 20, L_out)."""
    n, c_in, l_in = x.shape
    assert n == 1, "fused kernel assumes batch 1 (matches the reference input)"
    assert c_in == CONV_CFG[0][0]
    # TODO(synk): for N > 1 add a 'parallel' batch grid axis (feeds the second
    # v7x TensorCore); the reference input is batch 1 so nothing to split here.
    steps, n_rows, l_final = _make_plan(l_in)
    assert slab.shape == (n_rows, _SLAB_W), (slab.shape, n_rows)
    c_out = CONV_CFG[-1][1]

    # Patch-scratch size (rows x lanes) needed by the largest conv.
    pr, pc = _ALIGN, _LANE
    for st in steps:
        if st['op'] == 'bn':
            continue
        if st['op'] == 'dense' and st['k'] == 1 and st['pad'] == 0:
            continue
        pr = max(pr, st['l_s1'] if st['op'] == 'dense' else st['l_out'])
        pc = max(pc, st['k'] * st['cpad'])
    pr = -(-pr // _ALIGN) * _ALIGN

    kernel = functools.partial(_fused_kernel, steps=steps)
    out = pl.pallas_call(
        kernel,
        out_shape=jax.ShapeDtypeStruct((l_final, c_out), jnp.float32),
        in_specs=[_VMEM, _VMEM],
        out_specs=_VMEM,
        scratch_shapes=[pltpu.VMEM((pr, pc), jnp.float32)],
    )(jnp.transpose(x[0]).astype(jnp.float32), slab)   # (L, C) layout in
    return jnp.transpose(out)[None, :, :]              # back to (1, C, L)


def init_params(key):
    """PyTorch-default initialisation (uniform +/- 1/sqrt(fan_in))."""
    params = {'conv': [], 'bn': []}
    for (cin, cout, k, _s, _p, g) in CONV_CFG:
        key, kw, kb = jax.random.split(key, 3)
        fan_in = (cin // g) * k
        bound = 1.0 / (fan_in ** 0.5)
        w = jax.random.uniform(kw, (cout, cin // g, k), jnp.float32, -bound, bound)
        b = jax.random.uniform(kb, (cout,), jnp.float32, -bound, bound)
        params['conv'].append((w, b))
    for c in BN_CHANNELS:
        # TODO(synk): BN running_mean/var are not tracked (forward uses batch
        # statistics, i.e. train()-mode semantics).
        params['bn'].append((jnp.ones((c,), jnp.float32),
                             jnp.zeros((c,), jnp.float32)))
    return params


def prepare_params(params, l_in=26):
    """One-time packing of every weight/bias/bn/subsample matrix into ONE slab."""
    steps, rows, _ = _make_plan(l_in)
    slab = np.zeros((rows, _SLAB_W), np.float32)

    def put(slot, arr):
        off, shape = slot
        arr = np.asarray(arr, np.float32)
        assert arr.shape == shape, (arr.shape, shape)
        slab[off:off + shape[0], :shape[1]] = arr

    for st in steps:
        if st['op'] == 'dense':
            cin, cout, k = st['cin'], st['cout'], st['k']
            g, stride = CONV_CFG[st['idx']][5], CONV_CFG[st['idx']][3]
            w, b = params['conv'][st['idx']]
            w = np.asarray(w, np.float32)                  # (cout, cin//g, k)
            if g > 1:                                      # dense-expand grouped conv
                cin_g, out_g = cin // g, cout // g
                wd = np.zeros((cout, cin, k), np.float32)
                for gi in range(g):
                    wd[gi * out_g:(gi + 1) * out_g,
                       gi * cin_g:(gi + 1) * cin_g, :] = w[gi * out_g:(gi + 1) * out_g]
                w = wd
            cpad = st['cpad']
            wt = np.transpose(w, (2, 1, 0))                # (k, cin, cout)
            wf = np.zeros((k * cpad, cout), np.float32)    # pad rows stay zero
            for kk in range(k):
                wf[kk * cpad:kk * cpad + cin, :] = wt[kk]
            put(st['w'], wf)
            put(st['b'], np.asarray(b, np.float32)[None, :])
            if st['sub'] is not None:                      # 0/1 row-subsample matrix
                s_mat = np.zeros((st['l_out'], st['l_s1']), np.float32)
                s_mat[np.arange(st['l_out']), stride * np.arange(st['l_out'])] = 1.0
                put(st['sub'], s_mat)
        elif st['op'] == 'dw':
            w, b = params['conv'][st['idx']]
            w = np.asarray(w, np.float32)                  # (c, 1, k)
            put(st['w'], np.transpose(w[:, 0, :], (1, 0)))  # (k, c) tap rows
            put(st['b'], np.asarray(b, np.float32)[None, :])
        else:
            gamma, beta = params['bn'][st['idx']]
            put(st['gamma'], np.asarray(gamma, np.float32)[None, :])
            put(st['beta'], np.asarray(beta, np.float32)[None, :])
    return jax.device_put(jnp.asarray(slab))


# ------------------------- pure-JAX (XLA) reference ------------------------

def _reference(params, x):
    """Same forward math via lax.conv_general_dilated (independent of Pallas)."""
    h = x.astype(jnp.float32)
    for kind, idx in SEQUENCE:
        if kind == 'c':
            _cin, _cout, _k, s, p, g = CONV_CFG[idx]
            w, b = params['conv'][idx]
            h = lax.conv_general_dilated(
                h, w, window_strides=(s,), padding=[(p, p)],
                dimension_numbers=('NCH', 'OIH', 'NCH'),
                feature_group_count=g) + b[None, :, None]
        else:
            gamma, beta = params['bn'][idx]
            mean = jnp.mean(h, axis=(0, 2), keepdims=True)
            var = jnp.mean((h - mean) ** 2, axis=(0, 2), keepdims=True)
            h = (h - mean) * lax.rsqrt(var + BN_EPS) * gamma[None, :, None] \
                + beta[None, :, None]
            h = jnp.maximum(h, 0.0)
    return h


if __name__ == "__main__":
    key = jax.random.PRNGKey(0)
    kp, kx = jax.random.split(key)
    params = init_params(kp)
    slab = prepare_params(params, l_in=26)                 # one-time packing
    x = jax.random.normal(kx, (1, 11, 26), jnp.float32)    # matches torch.randn(1, 11, 26)

    out = jax.block_until_ready(forward(slab, x))
    assert out.shape == (1, 20, 11), out.shape
    assert bool(jnp.all(jnp.isfinite(out)))

    ref = jax.block_until_ready(_reference(params, x))
    err = float(jnp.max(jnp.abs(out - ref)))
    assert err < 5e-2, f"max |pallas - reference| = {err}"

    print("KERNEL_OK")
</pallas_src>

<mosaic_0001>
module attributes {stable_mosaic.version = 11 : i64} {
  func.func @_fused_kernel(%arg0: memref<26x11xf32, #tpu.memory_space<vmem>>, %arg1: memref<3176x256xf32, #tpu.memory_space<vmem>>, %arg2: memref<11x20xf32, #tpu.memory_space<vmem>>, %arg3: memref<32x512xf32, #tpu.memory_space<vmem>>) attributes {dimension_semantics = [], scalar_prefetch = 0 : i64, scratch_operands = 1 : i64, tpu.core_type = #tpu.core_type<tc>} {
    %c0 = arith.constant 0 : index
    %c0_0 = arith.constant 0 : index
    %0 = vector.load %arg0[%c0, %c0_0] : memref<26x11xf32, #tpu.memory_space<vmem>>, vector<26x11xf32>
    %c0_1 = arith.constant 0 : index
    %c0_2 = arith.constant 0 : index
    %1 = vector.load %arg1[%c0_1, %c0_2] : memref<3176x256xf32, #tpu.memory_space<vmem>>, vector<384x3xf32>
    %c384 = arith.constant 384 : index
    %c0_3 = arith.constant 0 : index
    %2 = vector.load %arg1[%c384, %c0_3] : memref<3176x256xf32, #tpu.memory_space<vmem>>, vector<1x3xf32>
    %cst = arith.constant 0.000000e+00 : f32
    %3 = vector.broadcast %cst : f32 to vector<32x384xf32>
    %c0_4 = arith.constant 0 : index
    %c0_5 = arith.constant 0 : index
    %4 = vector.load %arg3[%c0_4, %c0_5] : memref<32x512xf32, #tpu.memory_space<vmem>>, vector<32x384xf32>
    tpu.vector_store %arg3[%c0_4, %c0_5], %3 {strides = array<i32>} : memref<32x512xf32, #tpu.memory_space<vmem>>, vector<32x384xf32>,
    %c4 = arith.constant 4 : index
    %c0_6 = arith.constant 0 : index
    %5 = vector.load %arg3[%c4, %c0_6] : memref<32x512xf32, #tpu.memory_space<vmem>>, vector<26x11xf32>
    tpu.vector_store %arg3[%c4, %c0_6], %0 {strides = array<i32>} : memref<32x512xf32, #tpu.memory_space<vmem>>, vector<26x11xf32>,
    %c3 = arith.constant 3 : index
    %c128 = arith.constant 128 : index
    %6 = vector.load %arg3[%c3, %c128] : memref<32x512xf32, #tpu.memory_space<vmem>>, vector<26x11xf32>
    tpu.vector_store %arg3[%c3, %c128], %0 {strides = array<i32>} : memref<32x512xf32, #tpu.memory_space<vmem>>, vector<26x11xf32>,
    %c2 = arith.constant 2 : index
    %c256 = arith.constant 256 : index
    %7 = vector.load %arg3[%c2, %c256] : memref<32x512xf32, #tpu.memory_space<vmem>>, vector<26x11xf32>
    tpu.vector_store %arg3[%c2, %c256], %0 {strides = array<i32>} : memref<32x512xf32, #tpu.memory_space<vmem>>, vector<26x11xf32>,
    %c0_7 = arith.constant 0 : index
    %c0_8 = arith.constant 0 : index
    %8 = vector.load %arg3[%c0_7, %c0_8] : memref<32x512xf32, #tpu.memory_space<vmem>>, vector<32x384xf32>
    %cst_9 = arith.constant dense<0.000000e+00> : vector<32x3xf32>
    %9 = tpu.matmul %8, %1, %cst_9 {dimension_numbers = #tpu.dot_dimension_numbers<[1], [0], [0], [1], [0, 0, 1, 1], [], []>} : vector<32x384xf32>, vector<384x3xf32>, vector<32x3xf32> -> vector<32x3xf32>
    %10 = vector.broadcast %2 : vector<1x3xf32> to vector<32x3xf32>
    %11 = arith.addf %9, %10 : vector<32x3xf32>
    %c392 = arith.constant 392 : index
    %c0_10 = arith.constant 0 : index
    %12 = vector.load %arg1[%c392, %c0_10] : memref<3176x256xf32, #tpu.memory_space<vmem>>, vector<16x32xf32>
    %cst_11 = arith.constant dense<0.000000e+00> : vector<16x3xf32>
    %13 = tpu.matmul %12, %11, %cst_11 {dimension_numbers = #tpu.dot_dimension_numbers<[1], [0], [0], [1], [0, 0, 1, 1], [], []>} : vector<16x32xf32>, vector<32x3xf32>, vector<16x3xf32> -> vector<16x3xf32>
    %c408 = arith.constant 408 : index
    %c0_12 = arith.constant 0 : index
    %14 = vector.load %arg1[%c408, %c0_12] : memref<3176x256xf32, #tpu.memory_space<vmem>>, vector<384x64xf32>
    %c792 = arith.constant 792 : index
    %c0_13 = arith.constant 0 : index
    %15 = vector.load %arg1[%c792, %c0_13] : memref<3176x256xf32, #tpu.memory_space<vmem>>, vector<1x64xf32>
    %cst_14 = arith.constant 0.000000e+00 : f32
    %16 = vector.broadcast %cst_14 : f32 to vector<16x384xf32>
    %c0_15 = arith.constant 0 : index
    %c0_16 = arith.constant 0 : index
    %17 = vector.load %arg3[%c0_15, %c0_16] : memref<32x512xf32, #tpu.memory_space<vmem>>, vector<16x384xf32>
    tpu.vector_store %arg3[%c0_15, %c0_16], %16 {strides = array<i32>} : memref<32x512xf32, #tpu.memory_space<vmem>>, vector<16x384xf32>,
    %18 = vector.extract_strided_slice %13 {offsets = [0, 0], sizes = [15, 3], strides = [1, 1]} : vector<16x3xf32> to vector<15x3xf32>
    %c1 = arith.constant 1 : index
    %c0_17 = arith.constant 0 : index
    %19 = vector.load %arg3[%c1, %c0_17] : memref<32x512xf32, #tpu.memory_space<vmem>>, vector<15x3xf32>
    tpu.vector_store %arg3[%c1, %c0_17], %18 {strides = array<i32>} : memref<32x512xf32, #tpu.memory_space<vmem>>, vector<15x3xf32>,
    %c0_18 = arith.constant 0 : index
    %c128_19 = arith.constant 128 : index
    %20 = vector.load %arg3[%c0_18, %c128_19] : memref<32x512xf32, #tpu.memory_space<vmem>>, vector<16x3xf32>
    tpu.vector_store %arg3[%c0_18, %c128_19], %13 {strides = array<i32>} : memref<32x512xf32, #tpu.memory_space<vmem>>, vector<16x3xf32>,
    %21 = vector.extract_strided_slice %13 {offsets = [1, 0], sizes = [15, 3], strides = [1, 1]} : vector<16x3xf32> to vector<15x3xf32>
    %c0_20 = arith.constant 0 : index
    %c256_21 = arith.constant 256 : index
    %22 = vector.load %arg3[%c0_20, %c256_21] : memref<32x512xf32, #tpu.memory_space<vmem>>, vector<15x3xf32>
    tpu.vector_store %arg3[%c0_20, %c256_21], %21 {strides = array<i32>} : memref<32x512xf32, #tpu.memory_space<vmem>>, vector<15x3xf32>,
    %c0_22 = arith.constant 0 : index
    %c0_23 = arith.constant 0 : index
    %23 = vector.load %arg3[%c0_22, %c0_23] : memref<32x512xf32, #tpu.memory_space<vmem>>, vector<16x384xf32>
    %cst_24 = arith.constant dense<0.000000e+00> : vector<16x64xf32>
    %24 = tpu.matmul %23, %14, %cst_24 {dimension_numbers = #tpu.dot_dimension_numbers<[1], [0], [0], [1], [0, 0, 1, 1], [], []>} : vector<16x384xf32>, vector<384x64xf32>, vector<16x64xf32> -> vector<16x64xf32>
    %25 = vector.broadcast %15 : vector<1x64xf32> to vector<16x64xf32>
    %26 = arith.addf %24, %25 : vector<16x64xf32>
    %c800 = arith.constant 800 : index
    %c0_25 = arith.constant 0 : index
    %27 = vector.load %arg1[%c800, %c0_25] : memref<3176x256xf32, #tpu.memory_space<vmem>>, vector<384x64xf32>
    %c1184 = arith.constant 1184 : index
    %c0_26 = arith.constant 0 : index
    %28 = vector.load %arg1[%c1184, %c0_26] : memref<3176x256xf32, #tpu.memory_space<vmem>>, vector<1x64xf32>
    %cst_27 = arith.constant 0.000000e+00 : f32
    %29 = vector.broadcast %cst_27 : f32 to vector<14x384xf32>
    %c0_28 = arith.constant 0 : index
    %c0_29 = arith.constant 0 : index
    %30 = vector.load %arg3[%c0_28, %c0_29] : memref<32x512xf32, #tpu.memory_space<vmem>>, vector<14x384xf32>
    tpu.vector_store %arg3[%c0_28, %c0_29], %29 {strides = array<i32>} : memref<32x512xf32, #tpu.memory_space<vmem>>, vector<14x384xf32>,
    %31 = vector.extract_strided_slice %26 {offsets = [0, 0], sizes = [14, 64], strides = [1, 1]} : vector<16x64xf32> to vector<14x64xf32>
    %c0_30 = arith.constant 0 : index
    %c0_31 = arith.constant 0 : index
    %32 = vector.load %arg3[%c0_30, %c0_31] : memref<32x512xf32, #tpu.memory_space<vmem>>, vector<14x64xf32>
    tpu.vector_store %arg3[%c0_30, %c0_31], %31 {strides = array<i32>} : memref<32x512xf32, #tpu.memory_space<vmem>>, vector<14x64xf32>,
    %33 = vector.extract_strided_slice %26 {offsets = [1, 0], sizes = [14, 64], strides = [1, 1]} : vector<16x64xf32> to vector<14x64xf32>
    %c0_32 = arith.constant 0 : index
    %c128_33 = arith.constant 128 : index
    %34 = vector.load %arg3[%c0_32, %c128_33] : memref<32x512xf32, #tpu.memory_space<vmem>>, vector<14x64xf32>
    tpu.vector_store %arg3[%c0_32, %c128_33], %33 {strides = array<i32>} : memref<32x512xf32, #tpu.memory_space<vmem>>, vector<14x64xf32>,
    %35 = vector.extract_strided_slice %26 {offsets = [2, 0], sizes = [14, 64], strides = [1, 1]} : vector<16x64xf32> to vector<14x64xf32>
    %c0_34 = arith.constant 0 : index
    %c256_35 = arith.constant 256 : index
    %36 = vector.load %arg3[%c0_34, %c256_35] : memref<32x512xf32, #tpu.memory_space<vmem>>, vector<14x64xf32>
    tpu.vector_store %arg3[%c0_34, %c256_35], %35 {strides = array<i32>} : memref<32x512xf32, #tpu.memory_space<vmem>>, vector<14x64xf32>,
    %c0_36 = arith.constant 0 : index
    %c0_37 = arith.constant 0 : index
    %37 = vector.load %arg3[%c0_36, %c0_37] : memref<32x512xf32, #tpu.memory_space<vmem>>, vector<14x384xf32>
    %cst_38 = arith.constant dense<0.000000e+00> : vector<14x64xf32>
    %38 = tpu.matmul %37, %27, %cst_38 {dimension_numbers = #tpu.dot_dimension_numbers<[1], [0], [0], [1], [0, 0, 1, 1], [], []>} : vector<14x384xf32>, vector<384x64xf32>, vector<14x64xf32> -> vector<14x64xf32>
    %39 = vector.broadcast %28 : vector<1x64xf32> to vector<14x64xf32>
    %40 = arith.addf %38, %39 : vector<14x64xf32>
    %c1192 = arith.constant 1192 : index
    %c0_39 = arith.constant 0 : index
    %41 = vector.load %arg1[%c1192, %c0_39] : memref<3176x256xf32, #tpu.memory_space<vmem>>, vector<7x14xf32>
    %cst_40 = arith.constant dense<0.000000e+00> : vector<7x64xf32>
    %42 = tpu.matmul %41, %40, %cst_40 {dimension_numbers = #tpu.dot_dimension_numbers<[1], [0], [0], [1], [0, 0, 1, 1], [], []>} : vector<7x14xf32>, vector<14x64xf32>, vector<7x64xf32> -> vector<7x64xf32>
    %c1200 = arith.constant 1200 : index
    %c0_41 = arith.constant 0 : index
    %43 = vector.load %arg1[%c1200, %c0_41] : memref<3176x256xf32, #tpu.memory_space<vmem>>, vector<3x64xf32>
    %c1208 = arith.constant 1208 : index
    %c0_42 = arith.constant 0 : index
    %44 = vector.load %arg1[%c1208, %c0_42] : memref<3176x256xf32, #tpu.memory_space<vmem>>, vector<1x64xf32>
    %cst_43 = arith.constant 0.000000e+00 : f32
    %45 = vector.broadcast %cst_43 : f32 to vector<7x384xf32>
    %c0_44 = arith.constant 0 : index
    %c0_45 = arith.constant 0 : index
    %46 = vector.load %arg3[%c0_44, %c0_45] : memref<32x512xf32, #tpu.memory_space<vmem>>, vector<7x384xf32>
    tpu.vector_store %arg3[%c0_44, %c0_45], %45 {strides = array<i32>} : memref<32x512xf32, #tpu.memory_space<vmem>>, vector<7x384xf32>,
    %47 = vector.extract_strided_slice %42 {offsets = [0, 0], sizes = [6, 64], strides = [1, 1]} : vector<7x64xf32> to vector<6x64xf32>
    %c1_46 = arith.constant 1 : index
    %c0_47 = arith.constant 0 : index
    %48 = vector.load %arg3[%c1_46, %c0_47] : memref<32x512xf32, #tpu.memory_space<vmem>>, vector<6x64xf32>
    tpu.vector_store %arg3[%c1_46, %c0_47], %47 {strides = array<i32>} : memref<32x512xf32, #tpu.memory_space<vmem>>, vector<6x64xf32>,
    %c0_48 = arith.constant 0 : index
    %c128_49 = arith.constant 128 : index
    %49 = vector.load %arg3[%c0_48, %c128_49] : memref<32x512xf32, #tpu.memory_space<vmem>>, vector<7x64xf32>
    tpu.vector_store %arg3[%c0_48, %c128_49], %42 {strides = array<i32>} : memref<32x512xf32, #tpu.memory_space<vmem>>, vector<7x64xf32>,
    %50 = vector.extract_strided_slice %42 {offsets = [1, 0], sizes = [6, 64], strides = [1, 1]} : vector<7x64xf32> to vector<6x64xf32>
    %c0_50 = arith.constant 0 : index
    %c256_51 = arith.constant 256 : index
    %51 = vector.load %arg3[%c0_50, %c256_51] : memref<32x512xf32, #tpu.memory_space<vmem>>, vector<6x64xf32>
    tpu.vector_store %arg3[%c0_50, %c256_51], %50 {strides = array<i32>} : memref<32x512xf32, #tpu.memory_space<vmem>>, vector<6x64xf32>,
    %c0_52 = arith.constant 0 : index
    %c0_53 = arith.constant 0 : index
    %52 = vector.load %arg3[%c0_52, %c0_53] : memref<32x512xf32, #tpu.memory_space<vmem>>, vector<7x64xf32>
    %53 = vector.extract_strided_slice %43 {offsets = [0, 0], sizes = [1, 64], strides = [1, 1]} : vector<3x64xf32> to vector<1x64xf32>
    %54 = vector.broadcast %53 : vector<1x64xf32> to vector<7x64xf32>
    %55 = arith.mulf %52, %54 : vector<7x64xf32>
    %56 = vector.broadcast %44 : vector<1x64xf32> to vector<7x64xf32>
    %57 = arith.addf %56, %55 : vector<7x64xf32>
    %58 = vector.extract_strided_slice %43 {offsets = [1, 0], sizes = [1, 64], strides = [1, 1]} : vector<3x64xf32> to vector<1x64xf32>
    %59 = vector.broadcast %58 : vector<1x64xf32> to vector<7x64xf32>
    %60 = arith.mulf %42, %59 : vector<7x64xf32>
    %61 = arith.addf %57, %60 : vector<7x64xf32>
    %c0_54 = arith.constant 0 : index
    %c256_55 = arith.constant 256 : index
    %62 = vector.load %arg3[%c0_54, %c256_55] : memref<32x512xf32, #tpu.memory_space<vmem>>, vector<7x64xf32>
    %63 = vector.extract_strided_slice %43 {offsets = [2, 0], sizes = [1, 64], strides = [1, 1]} : vector<3x64xf32> to vector<1x64xf32>
    %64 = vector.broadcast %63 : vector<1x64xf32> to vector<7x64xf32>
    %65 = arith.mulf %62, %64 : vector<7x64xf32>
    %66 = arith.addf %61, %65 : vector<7x64xf32>
    %c1216 = arith.constant 1216 : index
    %c0_56 = arith.constant 0 : index
    %67 = vector.load %arg1[%c1216, %c0_56] : memref<3176x256xf32, #tpu.memory_space<vmem>>, vector<1x64xf32>
    %c1224 = arith.constant 1224 : index
    %c0_57 = arith.constant 0 : index
    %68 = vector.load %arg1[%c1224, %c0_57] : memref<3176x256xf32, #tpu.memory_space<vmem>>, vector<1x64xf32>
    %cst_58 = arith.constant dense<0.000000e+00> : vector<64xf32>
    %69 = vector.multi_reduction <add>, %66, %cst_58 [0] : vector<7x64xf32> to vector<64xf32>
    %70 = vector.shape_cast %69 : vector<64xf32> to vector<1x64xf32>
    %cst_59 = arith.constant 0.142857149 : f32
    %71 = vector.broadcast %cst_59 : f32 to vector<1x64xf32>
    %72 = arith.mulf %70, %71 : vector<1x64xf32>
    %73 = vector.broadcast %72 : vector<1x64xf32> to vector<7x64xf32>
    %74 = arith.subf %66, %73 : vector<7x64xf32>
    %75 = arith.mulf %74, %74 : vector<7x64xf32>
    %cst_60 = arith.constant dense<0.000000e+00> : vector<64xf32>
    %76 = vector.multi_reduction <add>, %75, %cst_60 [0] : vector<7x64xf32> to vector<64xf32>
    %77 = vector.shape_cast %76 : vector<64xf32> to vector<1x64xf32>
    %cst_61 = arith.constant 0.142857149 : f32
    %78 = vector.broadcast %cst_61 : f32 to vector<1x64xf32>
    %79 = arith.mulf %77, %78 : vector<1x64xf32>
    %cst_62 = arith.constant 9.99999974E-6 : f32
    %80 = vector.broadcast %cst_62 : f32 to vector<1x64xf32>
    %81 = arith.addf %79, %80 : vector<1x64xf32>
    %82 = math.rsqrt %81 : vector<1x64xf32>
    %83 = arith.mulf %67, %82 : vector<1x64xf32>
    %84 = arith.mulf %72, %83 : vector<1x64xf32>
    %85 = arith.subf %68, %84 : vector<1x64xf32>
    %86 = vector.broadcast %83 : vector<1x64xf32> to vector<7x64xf32>
    %87 = arith.mulf %66, %86 : vector<7x64xf32>
    %88 = vector.broadcast %85 : vector<1x64xf32> to vector<7x64xf32>
    %89 = arith.addf %87, %88 : vector<7x64xf32>
    %cst_63 = arith.constant 0.000000e+00 : f32
    %90 = vector.broadcast %cst_63 : f32 to vector<7x64xf32>
    %91 = arith.maximumf %89, %90 : vector<7x64xf32>
    %c1232 = arith.constant 1232 : index
    %c0_64 = arith.constant 0 : index
    %92 = vector.load %arg1[%c1232, %c0_64] : memref<3176x256xf32, #tpu.memory_space<vmem>>, vector<3x64xf32>
    %c1240 = arith.constant 1240 : index
    %c0_65 = arith.constant 0 : index
    %93 = vector.load %arg1[%c1240, %c0_65] : memref<3176x256xf32, #tpu.memory_space<vmem>>, vector<1x64xf32>
    %cst_66 = arith.constant 0.000000e+00 : f32
    %94 = vector.broadcast %cst_66 : f32 to vector<7x384xf32>
    %c0_67 = arith.constant 0 : index
    %c0_68 = arith.constant 0 : index
    %95 = vector.load %arg3[%c0_67, %c0_68] : memref<32x512xf32, #tpu.memory_space<vmem>>, vector<7x384xf32>
    tpu.vector_store %arg3[%c0_67, %c0_68], %94 {strides = array<i32>} : memref<32x512xf32, #tpu.memory_space<vmem>>, vector<7x384xf32>,
    %96 = vector.extract_strided_slice %91 {offsets = [0, 0], sizes = [6, 64], strides = [1, 1]} : vector<7x64xf32> to vector<6x64xf32>
    %c1_69 = arith.constant 1 : index
    %c0_70 = arith.constant 0 : index
    %97 = vector.load %arg3[%c1_69, %c0_70] : memref<32x512xf32, #tpu.memory_space<vmem>>, vector<6x64xf32>
    tpu.vector_store %arg3[%c1_69, %c0_70], %96 {strides = array<i32>} : memref<32x512xf32, #tpu.memory_space<vmem>>, vector<6x64xf32>,
    %c0_71 = arith.constant 0 : index
    %c128_72 = arith.constant 128 : index
    %98 = vector.load %arg3[%c0_71, %c128_72] : memref<32x512xf32, #tpu.memory_space<vmem>>, vector<7x64xf32>
    tpu.vector_store %arg3[%c0_71, %c128_72], %91 {strides = array<i32>} : memref<32x512xf32, #tpu.memory_space<vmem>>, vector<7x64xf32>,
    %99 = vector.extract_strided_slice %91 {offsets = [1, 0], sizes = [6, 64], strides = [1, 1]} : vector<7x64xf32> to vector<6x64xf32>
    %c0_73 = arith.constant 0 : index
    %c256_74 = arith.constant 256 : index
    %100 = vector.load %arg3[%c0_73, %c256_74] : memref<32x512xf32, #tpu.memory_space<vmem>>, vector<6x64xf32>
    tpu.vector_store %arg3[%c0_73, %c256_74], %99 {strides = array<i32>} : memref<32x512xf32, #tpu.memory_space<vmem>>, vector<6x64xf32>,
    %c0_75 = arith.constant 0 : index
    %c0_76 = arith.constant 0 : index
    %101 = vector.load %arg3[%c0_75, %c0_76] : memref<32x512xf32, #tpu.memory_space<vmem>>, vector<7x64xf32>
    %102 = vector.extract_strided_slice %92 {offsets = [0, 0], sizes = [1, 64], strides = [1, 1]} : vector<3x64xf32> to vector<1x64xf32>
    %103 = vector.broadcast %102 : vector<1x64xf32> to vector<7x64xf32>
    %104 = arith.mulf %101, %103 : vector<7x64xf32>
    %105 = vector.broadcast %93 : vector<1x64xf32> to vector<7x64xf32>
    %106 = arith.addf %105, %104 : vector<7x64xf32>
    %107 = vector.extract_strided_slice %92 {offsets = [1, 0], sizes = [1, 64], strides = [1, 1]} : vector<3x64xf32> to vector<1x64xf32>
    %108 = vector.broadcast %107 : vector<1x64xf32> to vector<7x64xf32>
    %109 = arith.mulf %91, %108 : vector<7x64xf32>
    %110 = arith.addf %106, %109 : vector<7x64xf32>
    %c0_77 = arith.constant 0 : index
    %c256_78 = arith.constant 256 : index
    %111 = vector.load %arg3[%c0_77, %c256_78] : memref<32x512xf32, #tpu.memory_space<vmem>>, vector<7x64xf32>
    %112 = vector.extract_strided_slice %92 {offsets = [2, 0], sizes = [1, 64], strides = [1, 1]} : vector<3x64xf32> to vector<1x64xf32>
    %113 = vector.broadcast %112 : vector<1x64xf32> to vector<7x64xf32>
    %114 = arith.mulf %111, %113 : vector<7x64xf32>
    %115 = arith.addf %110, %114 : vector<7x64xf32>
    %c1248 = arith.constant 1248 : index
    %c0_79 = arith.constant 0 : index
    %116 = vector.load %arg1[%c1248, %c0_79] : memref<3176x256xf32, #tpu.memory_space<vmem>>, vector<3x64xf32>
    %c1256 = arith.constant 1256 : index
    %c0_80 = arith.constant 0 : index
    %117 = vector.load %arg1[%c1256, %c0_80] : memref<3176x256xf32, #tpu.memory_space<vmem>>, vector<1x64xf32>
    %cst_81 = arith.constant 0.000000e+00 : f32
    %118 = vector.broadcast %cst_81 : f32 to vector<7x384xf32>
    %c0_82 = arith.constant 0 : index
    %c0_83 = arith.constant 0 : index
    %119 = vector.load %arg3[%c0_82, %c0_83] : memref<32x512xf32, #tpu.memory_space<vmem>>, vector<7x384xf32>
    tpu.vector_store %arg3[%c0_82, %c0_83], %118 {strides = array<i32>} : memref<32x512xf32, #tpu.memory_space<vmem>>, vector<7x384xf32>,
    %120 = vector.extract_strided_slice %115 {offsets = [0, 0], sizes = [6, 64], strides = [1, 1]} : vector<7x64xf32> to vector<6x64xf32>
    %c1_84 = arith.constant 1 : index
    %c0_85 = arith.constant 0 : index
    %121 = vector.load %arg3[%c1_84, %c0_85] : memref<32x512xf32, #tpu.memory_space<vmem>>, vector<6x64xf32>
    tpu.vector_store %arg3[%c1_84, %c0_85], %120 {strides = array<i32>} : memref<32x512xf32, #tpu.memory_space<vmem>>, vector<6x64xf32>,
    %c0_86 = arith.constant 0 : index
    %c128_87 = arith.constant 128 : index
    %122 = vector.load %arg3[%c0_86, %c128_87] : memref<32x512xf32, #tpu.memory_space<vmem>>, vector<7x64xf32>
    tpu.vector_store %arg3[%c0_86, %c128_87], %115 {strides = array<i32>} : memref<32x512xf32, #tpu.memory_space<vmem>>, vector<7x64xf32>,
    %123 = vector.extract_strided_slice %115 {offsets = [1, 0], sizes = [6, 64], strides = [1, 1]} : vector<7x64xf32> to vector<6x64xf32>
    %c0_88 = arith.constant 0 : index
    %c256_89 = arith.constant 256 : index
    %124 = vector.load %arg3[%c0_88, %c256_89] : memref<32x512xf32, #tpu.memory_space<vmem>>, vector<6x64xf32>
    tpu.vector_store %arg3[%c0_88, %c256_89], %123 {strides = array<i32>} : memref<32x512xf32, #tpu.memory_space<vmem>>, vector<6x64xf32>,
    %c0_90 = arith.constant 0 : index
    %c0_91 = arith.constant 0 : index
    %125 = vector.load %arg3[%c0_90, %c0_91] : memref<32x512xf32, #tpu.memory_space<vmem>>, vector<7x64xf32>
    %126 = vector.extract_strided_slice %116 {offsets = [0, 0], sizes = [1, 64], strides = [1, 1]} : vector<3x64xf32> to vector<1x64xf32>
    %127 = vector.broadcast %126 : vector<1x64xf32> to vector<7x64xf32>
    %128 = arith.mulf %125, %127 : vector<7x64xf32>
    %129 = vector.broadcast %117 : vector<1x64xf32> to vector<7x64xf32>
    %130 = arith.addf %129, %128 : vector<7x64xf32>
    %131 = vector.extract_strided_slice %116 {offsets = [1, 0], sizes = [1, 64], strides = [1, 1]} : vector<3x64xf32> to vector<1x64xf32>
    %132 = vector.broadcast %131 : vector<1x64xf32> to vector<7x64xf32>
    %133 = arith.mulf %115, %132 : vector<7x64xf32>
    %134 = arith.addf %130, %133 : vector<7x64xf32>
    %c0_92 = arith.constant 0 : index
    %c256_93 = arith.constant 256 : index
    %135 = vector.load %arg3[%c0_92, %c256_93] : memref<32x512xf32, #tpu.memory_space<vmem>>, vector<7x64xf32>
    %136 = vector.extract_strided_slice %116 {offsets = [2, 0], sizes = [1, 64], strides = [1, 1]} : vector<3x64xf32> to vector<1x64xf32>
    %137 = vector.broadcast %136 : vector<1x64xf32> to vector<7x64xf32>
    %138 = arith.mulf %135, %137 : vector<7x64xf32>
    %139 = arith.addf %134, %138 : vector<7x64xf32>
    %c1264 = arith.constant 1264 : index
    %c0_94 = arith.constant 0 : index
    %140 = vector.load %arg1[%c1264, %c0_94] : memref<3176x256xf32, #tpu.memory_space<vmem>>, vector<3x64xf32>
    %c1272 = arith.constant 1272 : index
    %c0_95 = arith.constant 0 : index
    %141 = vector.load %arg1[%c1272, %c0_95] : memref<3176x256xf32, #tpu.memory_space<vmem>>, vector<1x64xf32>
    %cst_96 = arith.constant 0.000000e+00 : f32
    %142 = vector.broadcast %cst_96 : f32 to vector<7x384xf32>
    %c0_97 = arith.constant 0 : index
    %c0_98 = arith.constant 0 : index
    %143 = vector.load %arg3[%c0_97, %c0_98] : memref<32x512xf32, #tpu.memory_space<vmem>>, vector<7x384xf32>
    tpu.vector_store %arg3[%c0_97, %c0_98], %142 {strides = array<i32>} : memref<32x512xf32, #tpu.memory_space<vmem>>, vector<7x384xf32>,
    %144 = vector.extract_strided_slice %139 {offsets = [0, 0], sizes = [6, 64], strides = [1, 1]} : vector<7x64xf32> to vector<6x64xf32>
    %c1_99 = arith.constant 1 : index
    %c0_100 = arith.constant 0 : index
    %145 = vector.load %arg3[%c1_99, %c0_100] : memref<32x512xf32, #tpu.memory_space<vmem>>, vector<6x64xf32>
    tpu.vector_store %arg3[%c1_99, %c0_100], %144 {strides = array<i32>} : memref<32x512xf32, #tpu.memory_space<vmem>>, vector<6x64xf32>,
    %c0_101 = arith.constant 0 : index
    %c128_102 = arith.constant 128 : index
    %146 = vector.load %arg3[%c0_101, %c128_102] : memref<32x512xf32, #tpu.memory_space<vmem>>, vector<7x64xf32>
    tpu.vector_store %arg3[%c0_101, %c128_102], %139 {strides = array<i32>} : memref<32x512xf32, #tpu.memory_space<vmem>>, vector<7x64xf32>,
    %147 = vector.extract_strided_slice %139 {offsets = [1, 0], sizes = [6, 64], strides = [1, 1]} : vector<7x64xf32> to vector<6x64xf32>
    %c0_103 = arith.constant 0 : index
    %c256_104 = arith.constant 256 : index
    %148 = vector.load %arg3[%c0_103, %c256_104] : memref<32x512xf32, #tpu.memory_space<vmem>>, vector<6x64xf32>
    tpu.vector_store %arg3[%c0_103, %c256_104], %147 {strides = array<i32>} : memref<32x512xf32, #tpu.memory_space<vmem>>, vector<6x64xf32>,
    %c0_105 = arith.constant 0 : index
    %c0_106 = arith.constant 0 : index
    %149 = vector.load %arg3[%c0_105, %c0_106] : memref<32x512xf32, #tpu.memory_space<vmem>>, vector<7x64xf32>
    %150 = vector.extract_strided_slice %140 {offsets = [0, 0], sizes = [1, 64], strides = [1, 1]} : vector<3x64xf32> to vector<1x64xf32>
    %151 = vector.broadcast %150 : vector<1x64xf32> to vector<7x64xf32>
    %152 = arith.mulf %149, %151 : vector<7x64xf32>
    %153 = vector.broadcast %141 : vector<1x64xf32> to vector<7x64xf32>
    %154 = arith.addf %153, %152 : vector<7x64xf32>
    %155 = vector.extract_strided_slice %140 {offsets = [1, 0], sizes = [1, 64], strides = [1, 1]} : vector<3x64xf32> to vector<1x64xf32>
    %156 = vector.broadcast %155 : vector<1x64xf32> to vector<7x64xf32>
    %157 = arith.mulf %139, %156 : vector<7x64xf32>
    %158 = arith.addf %154, %157 : vector<7x64xf32>
    %c0_107 = arith.constant 0 : index
    %c256_108 = arith.constant 256 : index
    %159 = vector.load %arg3[%c0_107, %c256_108] : memref<32x512xf32, #tpu.memory_space<vmem>>, vector<7x64xf32>
    %160 = vector.extract_strided_slice %140 {offsets = [2, 0], sizes = [1, 64], strides = [1, 1]} : vector<3x64xf32> to vector<1x64xf32>
    %161 = vector.broadcast %160 : vector<1x64xf32> to vector<7x64xf32>
    %162 = arith.mulf %159, %161 : vector<7x64xf32>
    %163 = arith.addf %158, %162 : vector<7x64xf32>
    %c1280 = arith.constant 1280 : index
    %c0_109 = arith.constant 0 : index
    %164 = vector.load %arg1[%c1280, %c0_109] : memref<3176x256xf32, #tpu.memory_space<vmem>>, vector<1x64xf32>
    %c1288 = arith.constant 1288 : index
    %c0_110 = arith.constant 0 : index
    %165 = vector.load %arg1[%c1288, %c0_110] : memref<3176x256xf32, #tpu.memory_space<vmem>>, vector<1x64xf32>
    %cst_111 = arith.constant dense<0.000000e+00> : vector<64xf32>
    %166 = vector.multi_reduction <add>, %163, %cst_111 [0] : vector<7x64xf32> to vector<64xf32>
    %167 = vector.shape_cast %166 : vector<64xf32> to vector<1x64xf32>
    %cst_112 = arith.constant 0.142857149 : f32
    %168 = vector.broadcast %cst_112 : f32 to vector<1x64xf32>
    %169 = arith.mulf %167, %168 : vector<1x64xf32>
    %170 = vector.broadcast %169 : vector<1x64xf32> to vector<7x64xf32>
    %171 = arith.subf %163, %170 : vector<7x64xf32>
    %172 = arith.mulf %171, %171 : vector<7x64xf32>
    %cst_113 = arith.constant dense<0.000000e+00> : vector<64xf32>
    %173 = vector.multi_reduction <add>, %172, %cst_113 [0] : vector<7x64xf32> to vector<64xf32>
    %174 = vector.shape_cast %173 : vector<64xf32> to vector<1x64xf32>
    %cst_114 = arith.constant 0.142857149 : f32
    %175 = vector.broadcast %cst_114 : f32 to vector<1x64xf32>
    %176 = arith.mulf %174, %175 : vector<1x64xf32>
    %cst_115 = arith.constant 9.99999974E-6 : f32
    %177 = vector.broadcast %cst_115 : f32 to vector<1x64xf32>
    %178 = arith.addf %176, %177 : vector<1x64xf32>
    %179 = math.rsqrt %178 : vector<1x64xf32>
    %180 = arith.mulf %164, %179 : vector<1x64xf32>
    %181 = arith.mulf %169, %180 : vector<1x64xf32>
    %182 = arith.subf %165, %181 : vector<1x64xf32>
    %183 = vector.broadcast %180 : vector<1x64xf32> to vector<7x64xf32>
    %184 = arith.mulf %163, %183 : vector<7x64xf32>
    %185 = vector.broadcast %182 : vector<1x64xf32> to vector<7x64xf32>
    %186 = arith.addf %184, %185 : vector<7x64xf32>
    %cst_116 = arith.constant 0.000000e+00 : f32
    %187 = vector.broadcast %cst_116 : f32 to vector<7x64xf32>
    %188 = arith.maximumf %186, %187 : vector<7x64xf32>
    %c1296 = arith.constant 1296 : index
    %c0_117 = arith.constant 0 : index
    %189 = vector.load %arg1[%c1296, %c0_117] : memref<3176x256xf32, #tpu.memory_space<vmem>>, vector<256x96xf32>
    %c1552 = arith.constant 1552 : index
    %c0_118 = arith.constant 0 : index
    %190 = vector.load %arg1[%c1552, %c0_118] : memref<3176x256xf32, #tpu.memory_space<vmem>>, vector<1x96xf32>
    %cst_119 = arith.constant 0.000000e+00 : f32
    %191 = vector.broadcast %cst_119 : f32 to vector<8x256xf32>
    %c0_120 = arith.constant 0 : index
    %c0_121 = arith.constant 0 : index
    %192 = vector.load %arg3[%c0_120, %c0_121] : memref<32x512xf32, #tpu.memory_space<vmem>>, vector<8x256xf32>
    tpu.vector_store %arg3[%c0_120, %c0_121], %191 {strides = array<i32>} : memref<32x512xf32, #tpu.memory_space<vmem>>, vector<8x256xf32>,
    %c1_122 = arith.constant 1 : index
    %c0_123 = arith.constant 0 : index
    %193 = vector.load %arg3[%c1_122, %c0_123] : memref<32x512xf32, #tpu.memory_space<vmem>>, vector<7x64xf32>
    tpu.vector_store %arg3[%c1_122, %c0_123], %188 {strides = array<i32>} : memref<32x512xf32, #tpu.memory_space<vmem>>, vector<7x64xf32>,
    %c0_124 = arith.constant 0 : index
    %c128_125 = arith.constant 128 : index
    %194 = vector.load %arg3[%c0_124, %c128_125] : memref<32x512xf32, #tpu.memory_space<vmem>>, vector<7x64xf32>
    tpu.vector_store %arg3[%c0_124, %c128_125], %188 {strides = array<i32>} : memref<32x512xf32, #tpu.memory_space<vmem>>, vector<7x64xf32>,
    %c0_126 = arith.constant 0 : index
    %c0_127 = arith.constant 0 : index
    %195 = vector.load %arg3[%c0_126, %c0_127] : memref<32x512xf32, #tpu.memory_space<vmem>>, vector<8x256xf32>
    %cst_128 = arith.constant dense<0.000000e+00> : vector<8x96xf32>
    %196 = tpu.matmul %195, %189, %cst_128 {dimension_numbers = #tpu.dot_dimension_numbers<[1], [0], [0], [1], [0, 0, 1, 1], [], []>} : vector<8x256xf32>, vector<256x96xf32>, vector<8x96xf32> -> vector<8x96xf32>
    %197 = vector.broadcast %190 : vector<1x96xf32> to vector<8x96xf32>
    %198 = arith.addf %196, %197 : vector<8x96xf32>
    %c1560 = arith.constant 1560 : index
    %c0_129 = arith.constant 0 : index
    %199 = vector.load %arg1[%c1560, %c0_129] : memref<3176x256xf32, #tpu.memory_space<vmem>>, vector<1x96xf32>
    %c1568 = arith.constant 1568 : index
    %c0_130 = arith.constant 0 : index
    %200 = vector.load %arg1[%c1568, %c0_130] : memref<3176x256xf32, #tpu.memory_space<vmem>>, vector<1x96xf32>
    %cst_131 = arith.constant dense<0.000000e+00> : vector<96xf32>
    %201 = vector.multi_reduction <add>, %198, %cst_131 [0] : vector<8x96xf32> to vector<96xf32>
    %202 = vector.shape_cast %201 : vector<96xf32> to vector<1x96xf32>
    %cst_132 = arith.constant 1.250000e-01 : f32
    %203 = vector.broadcast %cst_132 : f32 to vector<1x96xf32>
    %204 = arith.mulf %202, %203 : vector<1x96xf32>
    %205 = vector.broadcast %204 : vector<1x96xf32> to vector<8x96xf32>
    %206 = arith.subf %198, %205 : vector<8x96xf32>
    %207 = arith.mulf %206, %206 : vector<8x96xf32>
    %cst_133 = arith.constant dense<0.000000e+00> : vector<96xf32>
    %208 = vector.multi_reduction <add>, %207, %cst_133 [0] : vector<8x96xf32> to vector<96xf32>
    %209 = vector.shape_cast %208 : vector<96xf32> to vector<1x96xf32>
    %cst_134 = arith.constant 1.250000e-01 : f32
    %210 = vector.broadcast %cst_134 : f32 to vector<1x96xf32>
    %211 = arith.mulf %209, %210 : vector<1x96xf32>
    %cst_135 = arith.constant 9.99999974E-6 : f32
    %212 = vector.broadcast %cst_135 : f32 to vector<1x96xf32>
    %213 = arith.addf %211, %212 : vector<1x96xf32>
    %214 = math.rsqrt %213 : vector<1x96xf32>
    %215 = arith.mulf %199, %214 : vector<1x96xf32>
    %216 = arith.mulf %204, %215 : vector<1x96xf32>
    %217 = arith.subf %200, %216 : vector<1x96xf32>
    %218 = vector.broadcast %215 : vector<1x96xf32> to vector<8x96xf32>
    %219 = arith.mulf %198, %218 : vector<8x96xf32>
    %220 = vector.broadcast %217 : vector<1x96xf32> to vector<8x96xf32>
    %221 = arith.addf %219, %220 : vector<8x96xf32>
    %cst_136 = arith.constant 0.000000e+00 : f32
    %222 = vector.broadcast %cst_136 : f32 to vector<8x96xf32>
    %223 = arith.maximumf %221, %222 : vector<8x96xf32>
    %c1576 = arith.constant 1576 : index
    %c0_137 = arith.constant 0 : index
    %224 = vector.load %arg1[%c1576, %c0_137] : memref<3176x256xf32, #tpu.memory_space<vmem>>, vector<256x256xf32>
    %c1832 = arith.constant 1832 : index
    %c0_138 = arith.constant 0 : index
    %225 = vector.load %arg1[%c1832, %c0_138] : memref<3176x256xf32, #tpu.memory_space<vmem>>, vector<1x256xf32>
    %cst_139 = arith.constant 0.000000e+00 : f32
    %226 = vector.broadcast %cst_139 : f32 to vector<9x256xf32>
    %c0_140 = arith.constant 0 : index
    %c0_141 = arith.constant 0 : index
    %227 = vector.load %arg3[%c0_140, %c0_141] : memref<32x512xf32, #tpu.memory_space<vmem>>, vector<9x256xf32>
    tpu.vector_store %arg3[%c0_140, %c0_141], %226 {strides = array<i32>} : memref<32x512xf32, #tpu.memory_space<vmem>>, vector<9x256xf32>,
    %c1_142 = arith.constant 1 : index
    %c0_143 = arith.constant 0 : index
    %228 = vector.load %arg3[%c1_142, %c0_143] : memref<32x512xf32, #tpu.memory_space<vmem>>, vector<8x96xf32>
    tpu.vector_store %arg3[%c1_142, %c0_143], %223 {strides = array<i32>} : memref<32x512xf32, #tpu.memory_space<vmem>>, vector<8x96xf32>,
    %c0_144 = arith.constant 0 : index
    %c128_145 = arith.constant 128 : index
    %229 = vector.load %arg3[%c0_144, %c128_145] : memref<32x512xf32, #tpu.memory_space<vmem>>, vector<8x96xf32>
    tpu.vector_store %arg3[%c0_144, %c128_145], %223 {strides = array<i32>} : memref<32x512xf32, #tpu.memory_space<vmem>>, vector<8x96xf32>,
    %c0_146 = arith.constant 0 : index
    %c0_147 = arith.constant 0 : index
    %230 = vector.load %arg3[%c0_146, %c0_147] : memref<32x512xf32, #tpu.memory_space<vmem>>, vector<9x256xf32>
    %cst_148 = arith.constant dense<0.000000e+00> : vector<9x256xf32>
    %231 = tpu.matmul %230, %224, %cst_148 {dimension_numbers = #tpu.dot_dimension_numbers<[1], [0], [0], [1], [0, 0, 1, 1], [], []>} : vector<9x256xf32>, vector<256x256xf32>, vector<9x256xf32> -> vector<9x256xf32>
    %232 = vector.broadcast %225 : vector<1x256xf32> to vector<9x256xf32>
    %233 = arith.addf %231, %232 : vector<9x256xf32>
    %c1840 = arith.constant 1840 : index
    %c0_149 = arith.constant 0 : index
    %234 = vector.load %arg1[%c1840, %c0_149] : memref<3176x256xf32, #tpu.memory_space<vmem>>, vector<1x256xf32>
    %c1848 = arith.constant 1848 : index
    %c0_150 = arith.constant 0 : index
    %235 = vector.load %arg1[%c1848, %c0_150] : memref<3176x256xf32, #tpu.memory_space<vmem>>, vector<1x256xf32>
    %cst_151 = arith.constant dense<0.000000e+00> : vector<256xf32>
    %236 = vector.multi_reduction <add>, %233, %cst_151 [0] : vector<9x256xf32> to vector<256xf32>
    %237 = vector.shape_cast %236 : vector<256xf32> to vector<1x256xf32>
    %cst_152 = arith.constant 0.111111112 : f32
    %238 = vector.broadcast %cst_152 : f32 to vector<1x256xf32>
    %239 = arith.mulf %237, %238 : vector<1x256xf32>
    %240 = vector.broadcast %239 : vector<1x256xf32> to vector<9x256xf32>
    %241 = arith.subf %233, %240 : vector<9x256xf32>
    %242 = arith.mulf %241, %241 : vector<9x256xf32>
    %cst_153 = arith.constant dense<0.000000e+00> : vector<256xf32>
    %243 = vector.multi_reduction <add>, %242, %cst_153 [0] : vector<9x256xf32> to vector<256xf32>
    %244 = vector.shape_cast %243 : vector<256xf32> to vector<1x256xf32>
    %cst_154 = arith.constant 0.111111112 : f32
    %245 = vector.broadcast %cst_154 : f32 to vector<1x256xf32>
    %246 = arith.mulf %244, %245 : vector<1x256xf32>
    %cst_155 = arith.constant 9.99999974E-6 : f32
    %247 = vector.broadcast %cst_155 : f32 to vector<1x256xf32>
    %248 = arith.addf %246, %247 : vector<1x256xf32>
    %249 = math.rsqrt %248 : vector<1x256xf32>
    %250 = arith.mulf %234, %249 : vector<1x256xf32>
    %251 = arith.mulf %239, %250 : vector<1x256xf32>
    %252 = arith.subf %235, %251 : vector<1x256xf32>
    %253 = vector.broadcast %250 : vector<1x256xf32> to vector<9x256xf32>
    %254 = arith.mulf %233, %253 : vector<9x256xf32>
    %255 = vector.broadcast %252 : vector<1x256xf32> to vector<9x256xf32>
    %256 = arith.addf %254, %255 : vector<9x256xf32>
    %cst_156 = arith.constant 0.000000e+00 : f32
    %257 = vector.broadcast %cst_156 : f32 to vector<9x256xf32>
    %258 = arith.maximumf %256, %257 : vector<9x256xf32>
    %c1856 = arith.constant 1856 : index
    %c0_157 = arith.constant 0 : index
    %259 = vector.load %arg1[%c1856, %c0_157] : memref<3176x256xf32, #tpu.memory_space<vmem>>, vector<512x256xf32>
    %c2368 = arith.constant 2368 : index
    %c0_158 = arith.constant 0 : index
    %260 = vector.load %arg1[%c2368, %c0_158] : memref<3176x256xf32, #tpu.memory_space<vmem>>, vector<1x256xf32>
    %cst_159 = arith.constant 0.000000e+00 : f32
    %261 = vector.broadcast %cst_159 : f32 to vector<10x512xf32>
    %c0_160 = arith.constant 0 : index
    %c0_161 = arith.constant 0 : index
    %262 = vector.load %arg3[%c0_160, %c0_161] : memref<32x512xf32, #tpu.memory_space<vmem>>, vector<10x512xf32>
    tpu.vector_store %arg3[%c0_160, %c0_161], %261 {strides = array<i32>} : memref<32x512xf32, #tpu.memory_space<vmem>>, vector<10x512xf32>,
    %c1_162 = arith.constant 1 : index
    %c0_163 = arith.constant 0 : index
    %263 = vector.load %arg3[%c1_162, %c0_163] : memref<32x512xf32, #tpu.memory_space<vmem>>, vector<9x256xf32>
    tpu.vector_store %arg3[%c1_162, %c0_163], %258 {strides = array<i32>} : memref<32x512xf32, #tpu.memory_space<vmem>>, vector<9x256xf32>,
    %c0_164 = arith.constant 0 : index
    %c256_165 = arith.constant 256 : index
    %264 = vector.load %arg3[%c0_164, %c256_165] : memref<32x512xf32, #tpu.memory_space<vmem>>, vector<9x256xf32>
    tpu.vector_store %arg3[%c0_164, %c256_165], %258 {strides = array<i32>} : memref<32x512xf32, #tpu.memory_space<vmem>>, vector<9x256xf32>,
    %c0_166 = arith.constant 0 : index
    %c0_167 = arith.constant 0 : index
    %265 = vector.load %arg3[%c0_166, %c0_167] : memref<32x512xf32, #tpu.memory_space<vmem>>, vector<10x512xf32>
    %cst_168 = arith.constant dense<0.000000e+00> : vector<10x256xf32>
    %266 = tpu.matmul %265, %259, %cst_168 {dimension_numbers = #tpu.dot_dimension_numbers<[1], [0], [0], [1], [0, 0, 1, 1], [], []>} : vector<10x512xf32>, vector<512x256xf32>, vector<10x256xf32> -> vector<10x256xf32>
    %267 = vector.broadcast %260 : vector<1x256xf32> to vector<10x256xf32>
    %268 = arith.addf %266, %267 : vector<10x256xf32>
    %c2376 = arith.constant 2376 : index
    %c0_169 = arith.constant 0 : index
    %269 = vector.load %arg1[%c2376, %c0_169] : memref<3176x256xf32, #tpu.memory_space<vmem>>, vector<256x256xf32>
    %c2632 = arith.constant 2632 : index
    %c0_170 = arith.constant 0 : index
    %270 = vector.load %arg1[%c2632, %c0_170] : memref<3176x256xf32, #tpu.memory_space<vmem>>, vector<1x256xf32>
    %cst_171 = arith.constant dense<0.000000e+00> : vector<10x256xf32>
    %271 = tpu.matmul %268, %269, %cst_171 {dimension_numbers = #tpu.dot_dimension_numbers<[1], [0], [0], [1], [0, 0, 1, 1], [], []>} : vector<10x256xf32>, vector<256x256xf32>, vector<10x256xf32> -> vector<10x256xf32>
    %272 = vector.broadcast %270 : vector<1x256xf32> to vector<10x256xf32>
    %273 = arith.addf %271, %272 : vector<10x256xf32>
    %c2640 = arith.constant 2640 : index
    %c0_172 = arith.constant 0 : index
    %274 = vector.load %arg1[%c2640, %c0_172] : memref<3176x256xf32, #tpu.memory_space<vmem>>, vector<1x256xf32>
    %c2648 = arith.constant 2648 : index
    %c0_173 = arith.constant 0 : index
    %275 = vector.load %arg1[%c2648, %c0_173] : memref<3176x256xf32, #tpu.memory_space<vmem>>, vector<1x256xf32>
    %cst_174 = arith.constant dense<0.000000e+00> : vector<256xf32>
    %276 = vector.multi_reduction <add>, %273, %cst_174 [0] : vector<10x256xf32> to vector<256xf32>
    %277 = vector.shape_cast %276 : vector<256xf32> to vector<1x256xf32>
    %cst_175 = arith.constant 1.000000e-01 : f32
    %278 = vector.broadcast %cst_175 : f32 to vector<1x256xf32>
    %279 = arith.mulf %277, %278 : vector<1x256xf32>
    %280 = vector.broadcast %279 : vector<1x256xf32> to vector<10x256xf32>
    %281 = arith.subf %273, %280 : vector<10x256xf32>
    %282 = arith.mulf %281, %281 : vector<10x256xf32>
    %cst_176 = arith.constant dense<0.000000e+00> : vector<256xf32>
    %283 = vector.multi_reduction <add>, %282, %cst_176 [0] : vector<10x256xf32> to vector<256xf32>
    %284 = vector.shape_cast %283 : vector<256xf32> to vector<1x256xf32>
    %cst_177 = arith.constant 1.000000e-01 : f32
    %285 = vector.broadcast %cst_177 : f32 to vector<1x256xf32>
    %286 = arith.mulf %284, %285 : vector<1x256xf32>
    %cst_178 = arith.constant 9.99999974E-6 : f32
    %287 = vector.broadcast %cst_178 : f32 to vector<1x256xf32>
    %288 = arith.addf %286, %287 : vector<1x256xf32>
    %289 = math.rsqrt %288 : vector<1x256xf32>
    %290 = arith.mulf %274, %289 : vector<1x256xf32>
    %291 = arith.mulf %279, %290 : vector<1x256xf32>
    %292 = arith.subf %275, %291 : vector<1x256xf32>
    %293 = vector.broadcast %290 : vector<1x256xf32> to vector<10x256xf32>
    %294 = arith.mulf %273, %293 : vector<10x256xf32>
    %295 = vector.broadcast %292 : vector<1x256xf32> to vector<10x256xf32>
    %296 = arith.addf %294, %295 : vector<10x256xf32>
    %cst_179 = arith.constant 0.000000e+00 : f32
    %297 = vector.broadcast %cst_179 : f32 to vector<10x256xf32>
    %298 = arith.maximumf %296, %297 : vector<10x256xf32>
    %c2656 = arith.constant 2656 : index
    %c0_180 = arith.constant 0 : index
    %299 = vector.load %arg1[%c2656, %c0_180] : memref<3176x256xf32, #tpu.memory_space<vmem>>, vector<512x20xf32>
    %c3168 = arith.constant 3168 : index
    %c0_181 = arith.constant 0 : index
    %300 = vector.load %arg1[%c3168, %c0_181] : memref<3176x256xf32, #tpu.memory_space<vmem>>, vector<1x20xf32>
    %cst_182 = arith.constant 0.000000e+00 : f32
    %301 = vector.broadcast %cst_182 : f32 to vector<11x512xf32>
    %c0_183 = arith.constant 0 : index
    %c0_184 = arith.constant 0 : index
    %302 = vector.load %arg3[%c0_183, %c0_184] : memref<32x512xf32, #tpu.memory_space<vmem>>, vector<11x512xf32>
    tpu.vector_store %arg3[%c0_183, %c0_184], %301 {strides = array<i32>} : memref<32x512xf32, #tpu.memory_space<vmem>>, vector<11x512xf32>,
    %c1_185 = arith.constant 1 : index
    %c0_186 = arith.constant 0 : index
    %303 = vector.load %arg3[%c1_185, %c0_186] : memref<32x512xf32, #tpu.memory_space<vmem>>, vector<10x256xf32>
    tpu.vector_store %arg3[%c1_185, %c0_186], %298 {strides = array<i32>} : memref<32x512xf32, #tpu.memory_space<vmem>>, vector<10x256xf32>,
    %c0_187 = arith.constant 0 : index
    %c256_188 = arith.constant 256 : index
    %304 = vector.load %arg3[%c0_187, %c256_188] : memref<32x512xf32, #tpu.memory_space<vmem>>, vector<10x256xf32>
    tpu.vector_store %arg3[%c0_187, %c256_188], %298 {strides = array<i32>} : memref<32x512xf32, #tpu.memory_space<vmem>>, vector<10x256xf32>,
    %c0_189 = arith.constant 0 : index
    %c0_190 = arith.constant 0 : index
    %305 = vector.load %arg3[%c0_189, %c0_190] : memref<32x512xf32, #tpu.memory_space<vmem>>, vector<11x512xf32>
    %cst_191 = arith.constant dense<0.000000e+00> : vector<11x20xf32>
    %306 = tpu.matmul %305, %299, %cst_191 {dimension_numbers = #tpu.dot_dimension_numbers<[1], [0], [0], [1], [0, 0, 1, 1], [], []>} : vector<11x512xf32>, vector<512x20xf32>, vector<11x20xf32> -> vector<11x20xf32>
    %307 = vector.broadcast %300 : vector<1x20xf32> to vector<11x20xf32>
    %308 = arith.addf %306, %307 : vector<11x20xf32>
    %c0_192 = arith.constant 0 : index
    %c0_193 = arith.constant 0 : index
    %309 = vector.load %arg2[%c0_192, %c0_193] : memref<11x20xf32, #tpu.memory_space<vmem>>, vector<11x20xf32>
    tpu.vector_store %arg2[%c0_192, %c0_193], %308 {strides = array<i32>} : memref<11x20xf32, #tpu.memory_space<vmem>>, vector<11x20xf32>,
    return
  }
}

</mosaic_0001>

<bundles_post_ra>
// kernel: forward.1
= control target key start
LH: loop header
LB: loop body
LE: loop exit
PB: predicated region body
PF: predicated region fallthrough
CT: control target
= control target key end

     0   :  { %7 = vsyncpa [#allocation4], 0  ;;  %s2070_s12 = smov [#allocation3]   ;;  %s2071_s14 = smov 256   ;;  %s2380_s0 = inlined_call_operand.vmem [shape: f32[26,11], index: 0, kind: input, shape index: {}]   ;;  %s2381_s1 = inlined_call_operand.hbm [shape: f32[3176,256], index: 1, kind: input, shape index: {}]   ;;  %s2382_s2 = inlined_call_operand.vmem [shape: f32[11,20], index: 2, kind: output, shape index: {}]  }
   0x1   :  { %s14_s11 = sshll.u32 %s2381_s1, 4  ;;  %s16_s13 = sshll.u32 %s2070_s12, 4  ;;  %s15_s11 = int_to_ptr.hbm [resolvable:$true] %s14_s11  ;;  %s17_s13 = int_to_ptr.vmem [resolvable:$true] %s16_s13 }
   0x2   :  { %s2072_s15 = smov 16  }
   0x3   :  { %22 = dma.hbm_to_vmem [thread:$0]  %s15_s11, 101632, %s17_s13, [#allocation4], %s2071_s14, %s2071_s14, %s2072_s15  }
   0x4   :  { %2068 = dma.done.wait [#allocation4], 101632  }
   0x5   :  { %2069 = vsyncadd [#allocation4], 4294865664  ;;  %v2073_v0 = vmov 0.0   ;;  %v78_v1 = vld [vmem:[#allocation3 + $0x2f0] sm:$0xff]  ;;  %v77_v3 = vld [vmem:[#allocation3 + $0x2e0] sm:$0xff]  ;;  %vm145_vm0 = vcmask 89090  }
   0x6   :  { %82 = vst [vmem:[#allocation2 + $0x10] sm:$0xff] %v2073_v0  ;;  %v46_v2 = vld [vmem:[#allocation3 + $0xf0] sm:$0xff]  ;;  %221 = vmatpush.msra.mxu2 %v78_v1  ;;  %v45_v4 = vld [vmem:[#allocation3 + $0xe0] sm:$0xff]  ;;  %vm108_vm1 = vcmask 89092   ;;  %vm127_vm2 = vcmask 89091   ;;  %vm133_vm3 = vcmask 1041408  }
   0x7   :  { %80 = vst [vmem:[#allocation2] sm:$0xff] %v2073_v0  ;;  %163 = vmatpush.msra.mxu0 %v46_v2  ;;  %v62_v5 = vld [vmem:[#allocation3 + $0x1f0] sm:$0xff]  ;;  %v61_v8 = vld [vmem:[#allocation3 + $0x1e0] sm:$0xff]  ;;  %vm96_vm4 = vcmask 1043456   ;;  %v2116_v35 = vld [vmem:[%s2380_s0 + $0x8] sm:$0xff]  ;;  %vm110_vm5 = vcmask 89088  }
   0x8   :  { %81 = vst [vmem:[#allocation2 + $0x8] sm:$0xff] %v2073_v0  ;;  %192 = vmatpush.msra.mxu1 %v62_v5  ;;  %v76_v6 = vld [vmem:[#allocation3 + $0x2d0] sm:$0xff]  ;;  %222 = vmatpush.msra.mxu2 %v77_v3  ;;  %v75_v10 = vld [vmem:[#allocation3 + $0x2c0] sm:$0xff]  ;;  %v135_v37 = vrot.slane %v2116_v35, 6  ;;  %v2128_v39 = vld [vmem:[%s2380_s0 + $0x18] sm:$0x3] }
   0x9   :  { %83 = vst [vmem:[#allocation2 + $0x20] sm:$0xff] %v2073_v0  ;;  %v44_v7 = vld [vmem:[#allocation3 + $0xd0] sm:$0xff]  ;;  %164 = vmatpush.msra.mxu0 %v45_v4  ;;  %v43_v11 = vld [vmem:[#allocation3 + $0xc0] sm:$0xff]  ;;  %v98_v40 = vrot.slane %v2116_v35, 4  ;;  %v102_v44 = vrot.slane %v2128_v39, 4  ;;  %vm113_vm6 = vcmask 87040  }
   0xa   :  { %84 = vst [vmem:[#allocation2 + $0x28] sm:$0xff] %v2073_v0  ;;  %v60_v9 = vld [vmem:[#allocation3 + $0x1d0] sm:$0xff]  ;;  %193 = vmatpush.msra.mxu1 %v61_v8  ;;  %223 = vmatpush.msra.mxu2 %v76_v6  ;;  %v59_v12 = vld [vmem:[#allocation3 + $0x1c0] sm:$0xff]  ;;  %v117_v57 = vrot.slane %v2116_v35, 5  ;;  %vm115_vm7 = vcmask 1042432   ;;  %v121_v3 = vrot.slane %v2128_v39, 5 }
   0xb   :  { %85 = vst [vmem:[#allocation2 + $0x30] sm:$0xff] %v2073_v0  ;;  %165 = vmatpush.msra.mxu0 %v44_v7  ;;  %v74_v13 = vld [vmem:[#allocation3 + $0x2b0] sm:$0xff]  ;;  %v73_v16 = vld [vmem:[#allocation3 + $0x2a0] sm:$0xff]  ;;  %v139_v6 = vrot.slane %v2128_v39, 6  ;;  %vm131_vm8 = vcmask 86016   ;;  %vm149_vm9 = vcmask 84992  }
   0xc   :  { %86 = vst [vmem:[#allocation2 + $0x40] sm:$0xff] %v2073_v0  ;;  %194 = vmatpush.msra.mxu1 %v60_v9  ;;  %v42_v14 = vld [vmem:[#allocation3 + $0xb0] sm:$0xff]  ;;  %224 = vmatpush.msra.mxu2 %v75_v10  ;;  %v41_v17 = vld [vmem:[#allocation3 + $0xa0] sm:$0xff]  ;;  %vm252_vm10 = vcmask 261120   ;;  %vm347_vm11 = vcmask 23552   ;;  %vm345_vm12 = vcmask 23553  }
   0xd   :  { %87 = vst [vmem:[#allocation2 + $0x48] sm:$0xff] %v2073_v0  ;;  %166 = vmatpush.msra.mxu0 %v43_v11  ;;  %v58_v15 = vld [vmem:[#allocation3 + $0x1b0] sm:$0xff]  ;;  %v57_v18 = vld [vmem:[#allocation3 + $0x1a0] sm:$0xff]  ;;  %vm339_vm13 = vcmask 1040384   ;;  %vm351_vm14 = vcmask 1046528   ;;  %vm358_vm15 = vcmask 22528  }
   0xe   :  { %88 = vst [vmem:[#allocation2 + $0x50] sm:$0xff] %v2073_v0  ;;  %195 = vmatpush.msra.mxu1 %v59_v12  ;;  %225 = vmatpush.msra.mxu2 %v74_v13  ;;  %v72_v19 = vld [vmem:[#allocation3 + $0x290] sm:$0xff]  ;;  %v71_v22 = vld [vmem:[#allocation3 + $0x280] sm:$0xff] }
   0xf   :  { %89 = vst [vmem:[#allocation2 + $0x60] sm:$0xff] %v2073_v0  ;;  %167 = vmatpush.msra.mxu0 %v42_v14  ;;  %v40_v20 = vld [vmem:[#allocation3 + $0x90] sm:$0xff]  ;;  %v39_v23 = vld [vmem:[#allocation3 + $0x80] sm:$0xff] }
  0x10   :  { %90 = vst [vmem:[#allocation2 + $0x68] sm:$0xff] %v2073_v0  ;;  %196 = vmatpush.msra.mxu1 %v58_v15  ;;  %226 = vmatpush.msra.mxu2 %v73_v16  ;;  %v56_v21 = vld [vmem:[#allocation3 + $0x190] sm:$0xff]  ;;  %v55_v24 = vld [vmem:[#allocation3 + $0x180] sm:$0xff] }
  0x11   :  { %91 = vst [vmem:[#allocation2 + $0x70] sm:$0xff] %v2073_v0  ;;  %168 = vmatpush.msra.mxu0 %v41_v17  ;;  %v70_v25 = vld [vmem:[#allocation3 + $0x270] sm:$0xff]  ;;  %v69_v27 = vld [vmem:[#allocation3 + $0x260] sm:$0xff] }
  0x12   :  { %1329 = vst [vmem:[#allocation2 + $0x38] sm:$0x3] %v2073_v0  ;;  %197 = vmatpush.msra.mxu1 %v57_v18  ;;  %227 = vmatpush.msra.mxu2 %v72_v19  ;;  %v38_v26 = vld [vmem:[#allocation3 + $0x70] sm:$0xff]  ;;  %v37_v28 = vld [vmem:[#allocation3 + $0x60] sm:$0xff] }
  0x13   :  { %169 = vmatpush.msra.mxu0 %v40_v20  ;;  %v54_v29 = vld [vmem:[#allocation3 + $0x170] sm:$0xff]  ;;  %v2108_v30 = vld [vmem:[%s2380_s0] sm:$0xff] }
  0x14   :  { %198 = vmatpush.msra.mxu1 %v56_v21  ;;  %228 = vmatpush.msra.mxu2 %v71_v22  ;;  %v53_v31 = vld [vmem:[#allocation3 + $0x160] sm:$0xff]  ;;  %v134_v32 = vrot.slane %v2108_v30, 6  ;;  %v97_v33 = vrot.slane %v2108_v30, 4  ;;  %v116_v34 = vrot.slane %v2108_v30, 5  ;;  %v2121_v36 = vld [vmem:[%s2380_s0 + $0x10] sm:$0xff] }
  0x15   :  { %170 = vmatpush.msra.mxu0 %v39_v23  ;;  %v137_v38 = vrot.slane %v2121_v36, 6  ;;  %v100_v41 = vrot.slane %v2121_v36, 4  ;;  %v68_v42 = vld [vmem:[#allocation3 + $0x250] sm:$0xff]  ;;  %v67_v48 = vld [vmem:[#allocation3 + $0x240] sm:$0xff]  ;;  %v119_v62 = vrot.slane %v2121_v36, 5 }
  0x16   :  { %199 = vmatpush.msra.mxu1 %v55_v24  ;;  %229 = vmatpush.msra.mxu2 %v70_v25  ;;  %v36_v43 = vld [vmem:[#allocation3 + $0x50] sm:$0xff]  ;;  %146 = vst.msk [vmem:[#allocation2 + $0x10] sm:$0xfc] %vm145_vm0, %v134_v32  ;;  %v136_v46 = vsel %vm133_vm3, %v134_v32, %v135_v37  ;;  %v35_v49 = vld [vmem:[#allocation3 + $0x40] sm:$0xff]  ;;  %v99_v50 = vsel %vm96_vm4, %v97_v33, %v98_v40  ;;  %vm490_vm0 = vcmask 523264  }
  0x17   :  { %171 = vmatpush.msra.mxu0 %v38_v26  ;;  %v52_v45 = vld [vmem:[#allocation3 + $0x150] sm:$0xff]  ;;  %109 = vst.msk [vmem:[#allocation2] sm:$0xf0] %vm108_vm1, %v97_v33  ;;  %v138_v47 = vsel %vm133_vm3, %v135_v37, %v137_v38  ;;  %v51_v51 = vld [vmem:[#allocation3 + $0x140] sm:$0xff]  ;;  %v101_v52 = vsel %vm96_vm4, %v98_v40, %v100_v41  ;;  %v103_v55 = vsel %vm96_vm4, %v100_v41, %v102_v44  ;;  %vm492_vm1 = vcmask 521216  }
  0x18   :  { %200 = vmatpush.msra.mxu1 %v54_v29  ;;  %230 = vmatpush.msra.mxu2 %v69_v27  ;;  %128 = vst.msk [vmem:[#allocation2 + $0x8] sm:$0xf8] %vm127_vm2, %v116_v34  ;;  %v66_v53 = vld [vmem:[#allocation3 + $0x230] sm:$0xff]  ;;  %v65_v58 = vld [vmem:[#allocation3 + $0x220] sm:$0xff]  ;;  %v118_v7 = vsel %vm115_vm7, %v116_v34, %v117_v57  ;;  %v120_v11 = vsel %vm115_vm7, %v117_v57, %v119_v62  ;;  %vm503_vm2 = vcmask 1045504   ;;  %vm587_vm4 = vcmask 113664  }
  0x19   :  { %172 = vmatpush.msra.mxu0 %v37_v28  ;;  %147 = vst.msk [vmem:[#allocation2 + $0x30] sm:$0xff] %vm110_vm5, %v136_v46  ;;  %v34_v54 = vld [vmem:[#allocation3 + $0x30] sm:$0xff]  ;;  %v33_v59 = vld [vmem:[#allocation3 + $0x20] sm:$0xff]  ;;  %v122_v14 = vsel %vm115_vm7, %v119_v62, %v121_v3  ;;  %v140_v15 = vsel %vm133_vm3, %v137_v38, %v139_v6 }
  0x1a   :  { %201 = vmatpush.msra.mxu1 %v53_v31  ;;  %231 = vmatpush.msra.mxu2 %v68_v42  ;;  %148 = vst.msk [vmem:[#allocation2 + $0x50] sm:$0xff] %vm110_vm5, %v138_v47  ;;  %v50_v56 = vld [vmem:[#allocation3 + $0x130] sm:$0xff]  ;;  %v49_v60 = vld [vmem:[#allocation3 + $0x120] sm:$0xff] }
  0x1b   :  { %173 = vmatpush.msra.mxu0 %v36_v43  ;;  %111 = vst.msk [vmem:[#allocation2 + $0x20] sm:$0xff] %vm110_vm5, %v99_v50  ;;  %v64_v63 = vld [vmem:[#allocation3 + $0x210] sm:$0xff]  ;;  %v63_v8 = vld [vmem:[#allocation3 + $0x200] sm:$0xff] }
  0x1c   :  { %202 = vmatpush.msra.mxu1 %v52_v45  ;;  %232 = vmatpush.msra.mxu2 %v67_v48  ;;  %112 = vst.msk [vmem:[#allocation2 + $0x40] sm:$0xff] %vm110_vm5, %v101_v52  ;;  %v32_v1 = vld [vmem:[#allocation3 + $0x10] sm:$0xff]  ;;  %v31_v9 = vld [vmem:[#allocation3] sm:$0xff] }
  0x1d   :  { %174 = vmatpush.msra.mxu0 %v35_v49  ;;  %v153_v61 = vld [vmem:[#allocation2 + $0x10] sm:$0xff]  ;;  %114 = vst.msk [vmem:[#allocation2 + $0x60] sm:$0x3f] %vm113_vm6, %v103_v55  ;;  %v47_v12 = vld [vmem:[#allocation3 + $0x100] sm:$0xff]  ;;  %vm622_vm6 = vcmask 522241  }
  0x1e   :  { %203 = vmatpush.msra.mxu1 %v51_v51  ;;  %233 = vmatpush.msra.mxu2 %v66_v53  ;;  %333 = vst [vmem:[#allocation2 + $0x10] sm:$0xff] %v2073_v0  ;;  %v151_v2 = vld [vmem:[#allocation2] sm:$0xff]  ;;  %v48_v4 = vld [vmem:[#allocation3 + $0x110] sm:$0xff] }
  0x1f   :  { %175 = vmatpush.msra.mxu0 %v34_v54  ;;  %331 = vst [vmem:[#allocation2] sm:$0xff] %v2073_v0  ;;  %v152_v5 = vld [vmem:[#allocation2 + $0x8] sm:$0xff]  ;;  %v313_v30 = vld [vmem:[#allocation3 + $0x520] sm:$0xff]  ;;  %v312_v31 = vld [vmem:[#allocation3 + $0x510] sm:$0xff] }
  0x20   :  { %204 = vmatpush.msra.mxu1 %v50_v56  ;;  %234 = vmatpush.msra.mxu2 %v65_v58  ;;  %332 = vst [vmem:[#allocation2 + $0x8] sm:$0xff] %v2073_v0  ;;  %v156_v10 = vld [vmem:[#allocation2 + $0x30] sm:$0xff]  ;;  %v311_v33 = vld [vmem:[#allocation3 + $0x500] sm:$0xff] }
  0x21   :  { %176 = vmatpush.msra.mxu0 %v33_v59  ;;  %336 = vst [vmem:[#allocation2 + $0x30] sm:$0xff] %v2073_v0  ;;  %v159_v17 = vld [vmem:[#allocation2 + $0x50] sm:$0xff]  ;;  %v329_v34 = vld [vmem:[#allocation3 + $0x620] sm:$0xff] }
  0x22   :  { %205 = vmatpush.msra.mxu1 %v49_v60  ;;  %235 = vmatpush.msra.mxu2 %v64_v63  ;;  %v154_v13 = vld [vmem:[#allocation2 + $0x20] sm:$0xff]  ;;  %129 = vst.msk [vmem:[#allocation2 + $0x28] sm:$0xff] %vm110_vm5, %v118_v7  ;;  %v310_v35 = vld [vmem:[#allocation3 + $0x4f0] sm:$0xff] }
  0x23   :  { %177 = vmatpush.msra.mxu0 %v32_v1  ;;  %334 = vst [vmem:[#allocation2 + $0x20] sm:$0xff] %v2073_v0  ;;  %v157_v18 = vld [vmem:[#allocation2 + $0x40] sm:$0xff]  ;;  %v328_v36 = vld [vmem:[#allocation3 + $0x610] sm:$0xff] }
  0x24   :  { %206 = vmatpush.msra.mxu1 %v48_v4  ;;  %236 = vmatpush.msra.mxu2 %v63_v8  ;;  %130 = vst.msk [vmem:[#allocation2 + $0x48] sm:$0xff] %vm110_vm5, %v120_v11  ;;  %v160_v21 = vld [vmem:[#allocation2 + $0x60] sm:$0xff]  ;;  %v326_v40 = vld [vmem:[#allocation3 + $0x5f0] sm:$0xff]  ;;  %vm624_vm5 = vcmask 522240  }
  0x25   :  { %178 = vmatpush.msra.mxu0 %v31_v9  ;;  %237 = vmatmul.f32.vlgmr.msra.gmra.mxu2 %v153_v61  ;;  %132 = vst.msk [vmem:[#allocation2 + $0x68] sm:$0x1f] %vm131_vm8, %v122_v14  ;;  %v327_v37 = vld [vmem:[#allocation3 + $0x600] sm:$0xff]  ;;  %v308_v43 = vld [vmem:[#allocation3 + $0x4d0] sm:$0xff] }
  0x26   :  { %179 = vmatmul.f32.vlgmr.msra.gmra.mxu0 %v151_v2  ;;  %207 = vmatpush.msra.mxu1 %v47_v12  ;;  %150 = vst.msk [vmem:[#allocation2 + $0x70] sm:$0xf] %vm149_vm9, %v140_v15  ;;  %v309_v39 = vld [vmem:[#allocation3 + $0x4e0] sm:$0xff]  ;;  %v324_v51 = vld [vmem:[#allocation3 + $0x5d0] sm:$0xff] }
  0x27   :  { %208 = vmatmul.f32.vlgmr.msra.gmra.mxu1 %v152_v5  ;;  %389 = vmatpush.msrb.mxu0 %v313_v30  ;;  %v79_v41 = vld [vmem:[#allocation3 + $0x300] ss:$0 sm:$0xff]  ;;  %v306_v52 = vld [vmem:[#allocation3 + $0x4b0] sm:$0xff] }
  0x28   :  { %412 = vmatpush.msrb.mxu1 %v329_v34  ;;  %v325_v46 = vld [vmem:[#allocation3 + $0x5e0] sm:$0xff]  ;;  %v304_v59 = vld [vmem:[#allocation3 + $0x490] sm:$0xff] }
  0x29   :  { %v155_v16 = vld [vmem:[#allocation2 + $0x28] sm:$0xff]  ;;  %390 = vmatpush.msrb.mxu0 %v312_v31  ;;  %v307_v48 = vld [vmem:[#allocation3 + $0x4c0] sm:$0xff]  ;;  %v250_v2 = vld [vmem:[#allocation3 + $0x310] sm:$0xff] }
  0x2a   :  { %335 = vst [vmem:[#allocation2 + $0x28] sm:$0xff] %v2073_v0  ;;  %413 = vmatpush.msrb.mxu1 %v328_v36  ;;  %v305_v56 = vld [vmem:[#allocation3 + $0x4a0] sm:$0xff]  ;;  %v296_v4 = vld [vmem:[#allocation3 + $0x410] sm:$0xff] }
  0x2b   :  { %v158_v19 = vld [vmem:[#allocation2 + $0x48] sm:$0xff]  ;;  %391 = vmatpush.msrb.mxu0 %v311_v33  ;;  %v303_v62 = vld [vmem:[#allocation3 + $0x480] sm:$0xff]  ;;  %v294_v6 = vld [vmem:[#allocation3 + $0x3f0] sm:$0xff] }
  0x2c   :  { %v161_v22 = vld [vmem:[#allocation2 + $0x68] sm:$0xff]  ;;  %414 = vmatpush.msrb.mxu1 %v327_v37  ;;  %v297_v3 = vld [vmem:[#allocation3 + $0x420] sm:$0xff]  ;;  %v292_v9 = vld [vmem:[#allocation3 + $0x3d0] sm:$0xff] }
  0x2d   :  { %240 = vmatmul.f32.gmra.mxu2 %v156_v10  ;;  %v162_v20 = vld [vmem:[#allocation2 + $0x70] sm:$0xff]  ;;  %392 = vmatpush.msrb.mxu0 %v310_v35  ;;  %v295_v5 = vld [vmem:[#allocation3 + $0x400] sm:$0xff] }
  0x2e   :  { %182 = vmatmul.f32.gmra.mxu0 %v154_v13  ;;  %415 = vmatpush.msrb.mxu1 %v326_v40  ;;  %v251_v7 = vld [vmem:[#allocation3 + $0x320] sm:$0xff]  ;;  %v290_v11 = vld [vmem:[#allocation3 + $0x3b0] sm:$0xff] }
  0x2f   :  { %211 = vmatmul.f32.gmra.mxu1 %v155_v16  ;;  %393 = vmatpush.msrb.mxu0 %v309_v39  ;;  %v293_v8 = vld [vmem:[#allocation3 + $0x3e0] sm:$0xff]  ;;  %v288_v13 = vld [vmem:[#allocation3 + $0x390] sm:$0xff] }
  0x30   :  { %416 = vmatpush.msrb.mxu1 %v325_v46  ;;  %v291_v10 = vld [vmem:[#allocation3 + $0x3c0] sm:$0xff]  ;;  %v302_v15 = vld [vmem:[#allocation3 + $0x470] sm:$0xff] }
  0x31   :  { %394 = vmatpush.msrb.mxu0 %v308_v43  ;;  %v289_v12 = vld [vmem:[#allocation3 + $0x3a0] sm:$0xff]  ;;  %v318_v30 = vld [vmem:[#allocation3 + $0x570] sm:$0xff] }
  0x32   :  { %417 = vmatpush.msrb.mxu1 %v324_v51  ;;  %v287_v14 = vld [vmem:[#allocation3 + $0x380] sm:$0xff]  ;;  %v314_v34 = vld [vmem:[#allocation3 + $0x530] sm:$0xff] }
  0x33   :  { %395 = vmatpush.msrb.mxu0 %v307_v48  ;;  %v323_v16 = vld [vmem:[#allocation3 + $0x5c0] sm:$0xff]  ;;  %v450_v35 = vld [vmem:[#allocation3 + $0x730] sm:$0xff] }
  0x34   :  { %418 = vmatpush.msrb.mxu1 %v323_v16  ;;  %v317_v31 = vld [vmem:[#allocation3 + $0x560] sm:$0xff]  ;;  %517 = vmatpush.msrb.mxu2 %v450_v35  ;;  %v448_v37 = vld [vmem:[#allocation3 + $0x710] sm:$0xff] }
  0x35   :  { %243 = vmatmul.f32.gmra.mxu2 %v159_v17  ;;  %396 = vmatpush.msrb.mxu0 %v306_v52  ;;  %v286_v17 = vld [vmem:[#allocation3 + $0x370] sm:$0xff]  ;;  %v315_v33 = vld [vmem:[#allocation3 + $0x540] sm:$0xff] }
  0x36   :  { %185 = vmatmul.f32.gmra.mxu0 %v157_v18  ;;  %v301_v18 = vld [vmem:[#allocation3 + $0x460] sm:$0xff]  ;;  %v436_v16 = vld [vmem:[#allocation3 + $0x650] sm:$0xff] }
  0x37   :  { %214 = vmatmul.f32.gmra.mxu1 %v158_v19  ;;  %397 = vmatpush.msrb.mxu0 %v305_v56  ;;  %v322_v19 = vld [vmem:[#allocation3 + $0x5b0] sm:$0xff]  ;;  %v449_v36 = vld [vmem:[#allocation3 + $0x720] sm:$0xff] }
  0x38   :  { %419 = vmatpush.msrb.mxu1 %v322_v19  ;;  %518 = vmatpush.msrb.mxu2 %v449_v36  ;;  %v447_v40 = vld [vmem:[#allocation3 + $0x700] sm:$0xff]  ;;  %v482_v56 = vld [vmem:[#allocation3 + $0x930] sm:$0xff] }
  0x39   :  { %398 = vmatpush.msrb.mxu0 %v304_v59  ;;  %v481_v59 = vld [vmem:[#allocation3 + $0x920] sm:$0xff] }
  0x3a   :  { %519 = vmatpush.msrb.mxu2 %v448_v37  ;;  %v435_v19 = vld [vmem:[#allocation3 + $0x640] sm:$0xff] }
  0x3b   :  { %399 = vmatpush.msrb.mxu0 %v303_v62  ;;  %v464_v62 = vld [vmem:[#allocation3 + $0x810] sm:$0xff] }
  0x3c   :  { %520 = vmatpush.msrb.mxu2 %v447_v40 }
  0x3d   :  { %246 = vmatmul.f32.gmra.mxu2 %v162_v20  ;;  %400 = vmatpush.msrb.mxu0 %v302_v15  ;;  %v285_v20 = vld [vmem:[#allocation3 + $0x360] sm:$0xff] }
  0x3e   :  { %188 = vmatmul.f32.gmra.mxu0 %v160_v21  ;;  %v300_v21 = vld [vmem:[#allocation3 + $0x450] sm:$0xff]  ;;  %v475_v15 = vld [vmem:[#allocation3 + $0x8c0] sm:$0xff] }
  0x3f   :  { %217 = vmatmul.f32.gmra.mxu1 %v161_v22  ;;  %401 = vmatpush.msrb.mxu0 %v301_v18  ;;  %v321_v22 = vld [vmem:[#allocation3 + $0x5a0] sm:$0xff]  ;;  %v474_v18 = vld [vmem:[#allocation3 + $0x8b0] sm:$0xff] }
  0x40   :  { %420 = vmatpush.msrb.mxu1 %v321_v22  ;;  %v456_v22 = vld [vmem:[#allocation3 + $0x790] sm:$0xff] }
  0x41   :  { %402 = vmatpush.msrb.mxu0 %v300_v21  ;;  %v473_v21 = vld [vmem:[#allocation3 + $0x8a0] sm:$0xff] }
  0xa3   :  { %v180_v23 = vpop.f32.mrf.mxu0 }
  0xa4   :  { %v209_v24 = vpop.f32.mrf.mxu1  ;;  %v181_v53 = vadd.f32 %v180_v23, %v79_v41  ;;  %v284_v23 = vld [vmem:[#allocation3 + $0x350] sm:$0xff] }
  0xa6   :  { %v210_v60 = vadd.f32 %v209_v24, %v181_v53  ;;  %v299_v24 = vld [vmem:[#allocation3 + $0x440] sm:$0xff]  ;;  %v446_v53 = vld [vmem:[#allocation3 + $0x6f0] sm:$0xff] }
  0xa7   :  { %403 = vmatpush.msrb.mxu0 %v299_v24  ;;  %521 = vmatpush.msrb.mxu2 %v446_v53  ;;  %v455_v24 = vld [vmem:[#allocation3 + $0x780] sm:$0xff] }
  0xa8   :  { %v238_v25 = vpop.f32.mrf.mxu2 }
  0xa9   :  { %v239_v1 = vadd.f32 %v238_v25, %v210_v60  ;;  %v320_v25 = vld [vmem:[#allocation3 + $0x590] sm:$0xff]  ;;  %v443_v60 = vld [vmem:[#allocation3 + $0x6c0] sm:$0xff] }
  0xaa   :  { %421 = vmatpush.msrb.mxu1 %v320_v25  ;;  %v471_v25 = vld [vmem:[#allocation3 + $0x880] sm:$0xff] }
  0xab   :  { %v183_v26 = vpop.f32.mrf.mxu0 }
  0xac   :  { %v212_v27 = vpop.f32.mrf.mxu1  ;;  %v184_v49 = vadd.f32 %v183_v26, %v79_v41  ;;  %v283_v26 = vld [vmem:[#allocation3 + $0x340] sm:$0xff] }
  0xae   :  { %v213_v57 = vadd.f32 %v212_v27, %v184_v49  ;;  %v298_v27 = vld [vmem:[#allocation3 + $0x430] sm:$0xff] }
  0xaf   :  { %404 = vmatpush.msrb.mxu0 %v298_v27  ;;  %v470_v27 = vld [vmem:[#allocation3 + $0x870] sm:$0xff] }
  0xb0   :  { %v241_v28 = vpop.f32.mrf.mxu2 }
  0xb1   :  { %v242_v63 = vadd.f32 %v241_v28, %v213_v57  ;;  %v319_v28 = vld [vmem:[#allocation3 + $0x580] sm:$0xff]  ;;  %v444_v57 = vld [vmem:[#allocation3 + $0x6d0] sm:$0xff]  ;;  %563 = vmatpush.msra.mxu0 %v482_v56 }
  0xb2   :  { %422 = vmatpush.msrb.mxu1 %v319_v28  ;;  %v453_v28 = vld [vmem:[#allocation3 + $0x760] sm:$0xff] }
  0xb3   :  { %v186_v29 = vpop.f32.mrf.mxu0  ;;  %564 = vmatpush.msra.mxu0 %v481_v59 }
  0xb4   :  { %v215_v32 = vpop.f32.mrf.mxu1  ;;  %v187_v44 = vadd.f32 %v186_v29, %v79_v41  ;;  %v282_v29 = vld [vmem:[#allocation3 + $0x330] sm:$0xff]  ;;  %423 = vmatpush.msrb.mxu1 %v318_v30 }
  0xb5   :  { %v452_v30 = vld [vmem:[#allocation3 + $0x750] sm:$0xff] }
  0xb6   :  { %v216_v54 = vadd.f32 %v215_v32, %v187_v44  ;;  %424 = vmatpush.msrb.mxu1 %v317_v31  ;;  %v316_v32 = vld [vmem:[#allocation3 + $0x550] sm:$0xff] }
  0xb7   :  { %v468_v31 = vld [vmem:[#allocation3 + $0x850] sm:$0xff] }
  0xb8   :  { %v244_v38 = vpop.f32.mrf.mxu2  ;;  %425 = vmatpush.msrb.mxu1 %v316_v32  ;;  %v451_v32 = vld [vmem:[#allocation3 + $0x740] sm:$0xff] }
  0xb9   :  { %v245_v61 = vadd.f32 %v244_v38, %v216_v54  ;;  %v445_v54 = vld [vmem:[#allocation3 + $0x6e0] sm:$0xff] }
  0xba   :  { %426 = vmatpush.msrb.mxu1 %v315_v33  ;;  %522 = vmatpush.msrb.mxu2 %v445_v54  ;;  %v467_v33 = vld [vmem:[#allocation3 + $0x840] sm:$0xff] }
  0xbb   :  { %v189_v42 = vpop.f32.mrf.mxu0 }
  0xbc   :  { %v190_v45 = vadd.f32 %v189_v42, %v79_v41  ;;  %v218_v47 = vpop.f32.mrf.mxu1  ;;  %427 = vmatpush.msrb.mxu1 %v314_v34  ;;  %523 = vmatpush.msrb.mxu2 %v444_v57  ;;  %v330_v34 = vld [vmem:[#allocation3 + $0x630] ss:$0 sm:$0xff] }
  0xbe   :  { %v219_v50 = vadd.f32 %v218_v47, %v190_v45  ;;  %524 = vmatpush.msrb.mxu2 %v443_v60 }
  0xc0   :  { %v247_v55 = vpop.f32.mrf.mxu2 }
  0xc1   :  { %v248_v58 = vadd.f32 %v247_v55, %v219_v50  ;;  %v466_v55 = vld [vmem:[#allocation3 + $0x830] sm:$0xff] }
  0xc3   :  { %271 = vmatpush.msra.mxu3 %v248_v58  ;;  %v465_v58 = vld [vmem:[#allocation3 + $0x820] sm:$0xff] }
  0xc5   :  { %272 = vmatpush.msra.mxu3 %v245_v61  ;;  %v442_v61 = vld [vmem:[#allocation3 + $0x6b0] sm:$0xff] }
  0xc6   :  { %525 = vmatpush.msrb.mxu2 %v442_v61 }
  0xc7   :  { %273 = vmatpush.msra.mxu3 %v242_v63  ;;  %v480_v63 = vld [vmem:[#allocation3 + $0x910] sm:$0xff] }
  0xc8   :  { %565 = vmatpush.msra.mxu0 %v480_v63 }
  0xc9   :  { %274 = vmatpush.msra.mxu3 %v239_v1  ;;  %v441_v1 = vld [vmem:[#allocation3 + $0x6a0] sm:$0xff] }
  0xca   :  { %2022 = vmatmul.msk.f32.vlgmr.msra.gmra.mxu3 %vm252_vm10, %v250_v2  ;;  %v463_v2 = vld [vmem:[#allocation3 + $0x800] sm:$0xff]  ;;  %526 = vmatpush.msrb.mxu2 %v441_v1 }
  0xcb   :  { %366 = vmatpush.msrb.mxu3 %v297_v3  ;;  %v479_v3 = vld [vmem:[#allocation3 + $0x900] sm:$0xff] }
  0xcc   :  { %566 = vmatpush.msra.mxu0 %v479_v3 }
  0xcd   :  { %367 = vmatpush.msrb.mxu3 %v296_v4  ;;  %v440_v4 = vld [vmem:[#allocation3 + $0x690] sm:$0xff] }
  0xce   :  { %527 = vmatpush.msrb.mxu2 %v440_v4 }
  0xcf   :  { %368 = vmatpush.msrb.mxu3 %v295_v5  ;;  %v462_v5 = vld [vmem:[#allocation3 + $0x7f0] sm:$0xff] }
  0xd1   :  { %369 = vmatpush.msrb.mxu3 %v294_v6  ;;  %v478_v6 = vld [vmem:[#allocation3 + $0x8f0] sm:$0xff] }
  0xd2   :  { %2023 = vmatmul.msk.f32.gmra.mxu3 %vm252_vm10, %v251_v7  ;;  %567 = vmatpush.msra.mxu0 %v478_v6  ;;  %v439_v7 = vld [vmem:[#allocation3 + $0x680] sm:$0xff] }
  0xd3   :  { %370 = vmatpush.msrb.mxu3 %v293_v8  ;;  %v461_v8 = vld [vmem:[#allocation3 + $0x7e0] sm:$0xff]  ;;  %528 = vmatpush.msrb.mxu2 %v439_v7 }
  0xd5   :  { %371 = vmatpush.msrb.mxu3 %v292_v9  ;;  %v477_v9 = vld [vmem:[#allocation3 + $0x8e0] sm:$0xff] }
  0xd6   :  { %568 = vmatpush.msra.mxu0 %v477_v9  ;;  %v586_v9 = vld [vmem:[#allocation3 + $0x950] sm:$0x7f] }
  0xd7   :  { %372 = vmatpush.msrb.mxu3 %v291_v10  ;;  %v438_v10 = vld [vmem:[#allocation3 + $0x670] sm:$0xff] }
  0xd8   :  { %529 = vmatpush.msrb.mxu2 %v438_v10 }
  0xd9   :  { %373 = vmatpush.msrb.mxu3 %v290_v11  ;;  %v460_v11 = vld [vmem:[#allocation3 + $0x7d0] sm:$0xff] }
  0xdb   :  { %374 = vmatpush.msrb.mxu3 %v289_v12  ;;  %v476_v12 = vld [vmem:[#allocation3 + $0x8d0] sm:$0xff] }
  0xdc   :  { %569 = vmatpush.msra.mxu0 %v476_v12 }
  0xdd   :  { %375 = vmatpush.msrb.mxu3 %v288_v13  ;;  %v437_v13 = vld [vmem:[#allocation3 + $0x660] sm:$0xff] }
  0xde   :  { %530 = vmatpush.msrb.mxu2 %v437_v13  ;;  %570 = vmatpush.msra.mxu0 %v475_v15  ;;  %v614_v13 = vld [vmem:[#allocation3 + $0x960] sm:$0x7] }
  0xdf   :  { %376 = vmatpush.msrb.mxu3 %v287_v14  ;;  %v459_v14 = vld [vmem:[#allocation3 + $0x7c0] sm:$0xff]  ;;  %v633_v15 = vperm.slane %v614_v13, 1 }
  0xe0   :  { %531 = vmatpush.msrb.mxu2 %v436_v16  ;;  %571 = vmatpush.msra.mxu0 %v474_v18  ;;  %v615_v16 = vld [vmem:[#allocation3 + $0x970] ss:$0 sm:$0xff] }
  0xe1   :  { %377 = vmatpush.msrb.mxu3 %v286_v17  ;;  %v458_v17 = vld [vmem:[#allocation3 + $0x7b0] sm:$0xff] }
  0xe2   :  { %532 = vmatpush.msrb.mxu2 %v435_v19  ;;  %572 = vmatpush.msra.mxu0 %v473_v21 }
  0xe3   :  { %378 = vmatpush.msrb.mxu3 %v285_v20  ;;  %v457_v20 = vld [vmem:[#allocation3 + $0x7a0] sm:$0xff] }
  0xe5   :  { %379 = vmatpush.msrb.mxu3 %v284_v23  ;;  %v472_v23 = vld [vmem:[#allocation3 + $0x890] sm:$0xff] }
  0xe6   :  { %573 = vmatpush.msra.mxu0 %v472_v23 }
  0xe7   :  { %380 = vmatpush.msrb.mxu3 %v283_v26  ;;  %v454_v26 = vld [vmem:[#allocation3 + $0x770] sm:$0xff] }
  0xe8   :  { %574 = vmatpush.msra.mxu0 %v471_v25 }
  0xe9   :  { %381 = vmatpush.msrb.mxu3 %v282_v29  ;;  %v469_v29 = vld [vmem:[#allocation3 + $0x860] sm:$0xff] }
  0xea   :  { %575 = vmatpush.msra.mxu0 %v470_v27 }
  0xeb   :  { %540 = vmatpush.msra.mxu3 %v466_v55 }
  0xec   :  { %576 = vmatpush.msra.mxu0 %v469_v29 }
  0xed   :  { %541 = vmatpush.msra.mxu3 %v465_v58 }
  0xee   :  { %577 = vmatpush.msra.mxu0 %v468_v31 }
  0xef   :  { %542 = vmatpush.msra.mxu3 %v464_v62  ;;  %v483_v62 = vld [vmem:[#allocation3 + $0x940] ss:$0 sm:$0xff] }
  0xf0   :  { %578 = vmatpush.msra.mxu0 %v467_v33 }
  0xf1   :  { %543 = vmatpush.msra.mxu3 %v463_v2 }
  0xf3   :  { %544 = vmatpush.msra.mxu3 %v462_v5 }
  0xf5   :  { %545 = vmatpush.msra.mxu3 %v461_v8 }
  0xf7   :  { %546 = vmatpush.msra.mxu3 %v460_v11 }
  0xf9   :  { %547 = vmatpush.msra.mxu3 %v459_v14  ;;  %v630_v14 = vperm.slane %v614_v13, 0 }
  0xfb   :  { %548 = vmatpush.msra.mxu3 %v458_v17 }
  0xfd   :  { %549 = vmatpush.msra.mxu3 %v457_v20  ;;  %v637_v20 = vperm.slane %v614_v13, 2  ;;  %v811_v13 = vld [vmem:[#allocation3 + $0xbb0] sm:$0xff] }
  0xff   :  { %550 = vmatpush.msra.mxu3 %v456_v22 }
 0x101   :  { %551 = vmatpush.msra.mxu3 %v455_v24 }
 0x103   :  { %552 = vmatpush.msra.mxu3 %v454_v26 }
 0x105   :  { %553 = vmatpush.msra.mxu3 %v453_v28 }
 0x107   :  { %554 = vmatpush.msra.mxu3 %v452_v30 }
 0x109   :  { %555 = vmatpush.msra.mxu3 %v451_v32 }
 0x14d   :  { %v276_v38 = vpop.f32.mrf.mxu3 }
 0x14e   :  { %v340_v39 = vrot.slane %v276_v38, 7  ;;  %349 = vst.msk [vmem:[#allocation2 + $0x8] sm:$0xff] %vm347_vm11, %v276_v38  ;;  %v352_v43 = vrot.slane %v276_v38, 1 }
 0x150   :  { %346 = vst.msk [vmem:[#allocation2] sm:$0xfe] %vm345_vm12, %v340_v39 }
 0x155   :  { %v279_v41 = vpop.f32.mrf.mxu3  ;;  %v361_v42 = vld [vmem:[#allocation2 + $0x8] sm:$0xff] }
 0x156   :  { %v341_v44 = vrot.slane %v279_v41, 7  ;;  %350 = vst.msk [vmem:[#allocation2 + $0x28] sm:$0xff] %vm347_vm11, %v279_v41  ;;  %v353_v45 = vrot.slane %v279_v41, 1  ;;  %405 = vmatmul.f32.vlgmr.msrb.gmra.mxu0 %v361_v42 }
 0x157   :  { %485 = vst [vmem:[#allocation2 + $0x8] sm:$0xff] %v2073_v0  ;;  %v360_v46 = vld [vmem:[#allocation2] sm:$0xff] }
 0x158   :  { %v342_v47 = vsel %vm339_vm13, %v340_v39, %v341_v44  ;;  %v354_v48 = vsel %vm351_vm14, %v352_v43, %v353_v45  ;;  %359 = vst.msk [vmem:[#allocation2 + $0x30] sm:$0x7f] %vm358_vm15, %v353_v45  ;;  %382 = vmatmul.f32.vlgmr.msrb.gmra.mxu3 %v360_v46  ;;  %vm871_vm15 = vcmask 785408  }
 0x159   :  { %348 = vst.msk [vmem:[#allocation2 + $0x20] sm:$0xff] %vm347_vm11, %v342_v47 }
 0x15a   :  { %357 = vst.msk [vmem:[#allocation2 + $0x10] sm:$0xff] %vm347_vm11, %v354_v48 }
 0x15b   :  { %484 = vst [vmem:[#allocation2] sm:$0xff] %v2073_v0 }
 0x15d   :  { %v364_v49 = vld [vmem:[#allocation2 + $0x28] sm:$0xff] }
 0x15e   :  { %488 = vst [vmem:[#allocation2 + $0x28] sm:$0x3f] %v2073_v0  ;;  %408 = vmatmul.f32.gmra.mxu0 %v364_v49 }
 0x15f   :  { %v365_v50 = vld [vmem:[#allocation2 + $0x30] sm:$0xff] }
 0x160   :  { %v363_v51 = vld [vmem:[#allocation2 + $0x20] sm:$0xff]  ;;  %489 = vst [vmem:[#allocation2 + $0x30] sm:$0x3f] %v2073_v0 }
 0x161   :  { %487 = vst [vmem:[#allocation2 + $0x20] sm:$0x3f] %v2073_v0  ;;  %385 = vmatmul.f32.gmra.mxu3 %v363_v51  ;;  %v362_v52 = vld [vmem:[#allocation2 + $0x10] sm:$0xff] }
 0x162   :  { %428 = vmatmul.f32.vlgmr.msrb.gmra.mxu1 %v362_v52  ;;  %486 = vst [vmem:[#allocation2 + $0x10] sm:$0xff] %v2073_v0 }
 0x16a   :  { %431 = vmatmul.f32.gmra.mxu1 %v365_v50 }
 0x1d3   :  { %v406_v36 = vpop.f32.mrf.mxu0 }
 0x1db   :  { %v383_v35 = vpop.f32.mrf.mxu3  ;;  %v409_v43 = vpop.f32.mrf.mxu0 }
 0x1dc   :  { %v384_v37 = vadd.f32 %v383_v35, %v330_v34 }
 0x1de   :  { %v407_v38 = vadd.f32 %v406_v36, %v384_v37 }
 0x1df   :  { %v429_v39 = vpop.f32.mrf.mxu1 }
 0x1e0   :  { %v430_v40 = vadd.f32 %v429_v39, %v407_v38 }
 0x1e2   :  { %491 = vst.msk [vmem:[#allocation2] sm:$0xff] %vm490_vm0, %v430_v40  ;;  %v496_v48 = vrot.slane %v430_v40, 1  ;;  %v504_v49 = vrot.slane %v430_v40, 2 }
 0x1e4   :  { %v386_v41 = vpop.f32.mrf.mxu3 }
 0x1e5   :  { %v387_v42 = vadd.f32 %v386_v41, %v330_v34 }
 0x1e7   :  { %v410_v44 = vadd.f32 %v409_v43, %v387_v42  ;;  %v432_v45 = vpop.f32.mrf.mxu1 }
 0x1e9   :  { %v511_v46 = vld [vmem:[#allocation2] sm:$0xff]  ;;  %v433_v47 = vadd.f32 %v432_v45, %v410_v44 }
 0x1ea   :  { %616 = vst [vmem:[#allocation2] sm:$0x7f] %v2073_v0  ;;  %533 = vmatmul.f32.vlgmr.msrb.gmra.mxu2 %v511_v46 }
 0x1eb   :  { %493 = vst.msk [vmem:[#allocation2 + $0x20] sm:$0x3f] %vm492_vm1, %v433_v47  ;;  %v497_v50 = vrot.slane %v433_v47, 1  ;;  %v505_v51 = vrot.slane %v433_v47, 2 }
 0x1ed   :  { %v498_v52 = vsel %vm351_vm14, %v496_v48, %v497_v50  ;;  %502 = vst.msk [vmem:[#allocation2 + $0x28] sm:$0x3f] %vm492_vm1, %v497_v50  ;;  %v506_v53 = vsel %vm503_vm2, %v504_v49, %v505_v51  ;;  %v640_v50 = vld [vmem:[#allocation3 + $0x980] ss:$0 sm:$0xff]  ;;  %vm824_vm14 = vcmask 523265  }
 0x1ee   :  { %501 = vst.msk [vmem:[#allocation2 + $0x8] sm:$0xff] %vm490_vm0, %v498_v52 }
 0x1ef   :  { %509 = vst.msk [vmem:[#allocation2 + $0x10] sm:$0xff] %vm490_vm0, %v506_v53 }
 0x1f0   :  { %510 = vst.msk [vmem:[#allocation2 + $0x30] sm:$0x3f] %vm492_vm1, %v505_v51 }
 0x1f2   :  { %v514_v54 = vld [vmem:[#allocation2 + $0x20] sm:$0x3f] }
 0x1f3   :  { %536 = vmatmul.f32.gmra.mxu2 %v514_v54  ;;  %975 = vst [vmem:[#allocation2 + $0x20] sm:$0x1] %v2073_v0  ;;  %v641_v54 = vld [vmem:[#allocation3 + $0x990] ss:$0 sm:$0xff] }
 0x1f4   :  { %v515_v55 = vld [vmem:[#allocation2 + $0x28] sm:$0x3f] }
 0x1f5   :  { %v512_v56 = vld [vmem:[#allocation2 + $0x8] sm:$0xff]  ;;  %976 = vst [vmem:[#allocation2 + $0x28] sm:$0x1] %v2073_v0 }
 0x1f6   :  { %v513_v57 = vld [vmem:[#allocation2 + $0x10] sm:$0xff]  ;;  %556 = vmatmul.f32.vlgmr.msra.gmra.mxu3 %v512_v56  ;;  %617 = vst [vmem:[#allocation2 + $0x8] sm:$0x7f] %v2073_v0 }
 0x1f7   :  { %618 = vst [vmem:[#allocation2 + $0x10] sm:$0x7f] %v2073_v0  ;;  %579 = vmatmul.f32.vlgmr.msra.gmra.mxu0 %v513_v57  ;;  %v516_v58 = vld [vmem:[#allocation2 + $0x30] sm:$0x3f] }
 0x1f8   :  { %1328 = vst [vmem:[#allocation2 + $0x30] sm:$0x3] %v2073_v0 }
 0x1fe   :  { %559 = vmatmul.f32.gmra.mxu3 %v515_v55 }
 0x1ff   :  { %582 = vmatmul.f32.gmra.mxu0 %v516_v58 }
 0x26d   :  { %v534_v59 = vpop.f32.mrf.mxu2 }
 0x26e   :  { %v535_v1 = vadd.f32 %v534_v59, %v483_v62  ;;  %v817_v59 = vld [vmem:[#allocation3 + $0xc10] sm:$0xff] }
 0x26f   :  { %849 = vmatpush.msrb.mxu3 %v817_v59 }
 0x274   :  { %v580_v60 = vpop.f32.mrf.mxu0 }
 0x276   :  { %v537_v63 = vpop.f32.mrf.mxu2 }
 0x277   :  { %v538_v2 = vadd.f32 %v537_v63, %v483_v62  ;;  %v800_v62 = vld [vmem:[#allocation3 + $0xb00] sm:$0xff] }
 0x279   :  { %v557_v61 = vpop.f32.mrf.mxu3 }
 0x27a   :  { %v558_v4 = vadd.f32 %v557_v61, %v535_v1  ;;  %v816_v61 = vld [vmem:[#allocation3 + $0xc00] sm:$0xff]  ;;  %v815_v1 = vld [vmem:[#allocation3 + $0xbf0] sm:$0xff] }
 0x27b   :  { %850 = vmatpush.msrb.mxu3 %v816_v61 }
 0x27c   :  { %v583_v6 = vpop.f32.mrf.mxu0  ;;  %v581_v8 = vadd.f32 %v580_v60, %v558_v4  ;;  %v801_v60 = vld [vmem:[#allocation3 + $0xb10] sm:$0xff] }
 0x27d   :  { %829 = vmatpush.msra.mxu2 %v801_v60  ;;  %851 = vmatpush.msrb.mxu3 %v815_v1  ;;  %v725_v60 = vld [vmem:[#allocation3 + $0x9e0] sm:$0x7] }
 0x27e   :  { %v739_v61 = vperm.slane %v725_v60, 0 }
 0x27f   :  { %830 = vmatpush.msra.mxu2 %v800_v62  ;;  %v742_v62 = vperm.slane %v725_v60, 1 }
 0x281   :  { %v560_v3 = vpop.f32.mrf.mxu3 }
 0x282   :  { %v561_v5 = vadd.f32 %v560_v3, %v538_v2  ;;  %v799_v2 = vld [vmem:[#allocation3 + $0xaf0] sm:$0xff] }
 0x283   :  { %831 = vmatpush.msra.mxu2 %v799_v2 }
 0x284   :  { %v584_v7 = vadd.f32 %v583_v6, %v561_v5  ;;  %v814_v5 = vld [vmem:[#allocation3 + $0xbe0] sm:$0xff] }
 0x285   :  { %v798_v6 = vld [vmem:[#allocation3 + $0xae0] sm:$0xff]  ;;  %852 = vmatpush.msrb.mxu3 %v814_v5 }
 0x286   :  { %2024 = vmatpush.msk.msra.mxu1 %vm503_vm2, %v584_v7  ;;  %v813_v7 = vld [vmem:[#allocation3 + $0xbd0] sm:$0xff]  ;;  %832 = vmatpush.msra.mxu2 %v798_v6 }
 0x287   :  { %853 = vmatpush.msrb.mxu3 %v813_v7 }
 0x288   :  { %609 = vmatpush.msra.mxu1 %v581_v8  ;;  %v797_v8 = vld [vmem:[#allocation3 + $0xad0] sm:$0xff] }
 0x289   :  { %2025 = vmatmul.msk.f32.vlgmr.msra.gmra.mxu1 %vm587_vm4, %v586_v9  ;;  %v812_v9 = vld [vmem:[#allocation3 + $0xbc0] sm:$0xff]  ;;  %833 = vmatpush.msra.mxu2 %v797_v8  ;;  %vm982_vm4 = vcmask 778240  }
 0x28a   :  { %854 = vmatpush.msrb.mxu3 %v812_v9 }
 0x28c   :  { %855 = vmatpush.msrb.mxu3 %v811_v13 }
 0x306   :  { %v611_v10 = vpop.f32.mrf.mxu1 }
 0x307   :  { %v620_v11 = vrot.slane %v611_v10, 7  ;;  %625 = vst.msk [vmem:[#allocation2 + $0x8] sm:$0x7f] %vm624_vm5, %v611_v10  ;;  %v626_v12 = vrot.slane %v611_v10, 1  ;;  %v634_v22 = vmul.f32 %v633_v15, %v611_v10  ;;  %v796_v10 = vld [vmem:[#allocation3 + $0xac0] sm:$0xff] }
 0x308   :  { %680 = vst [vmem:[#allocation2 + $0x8] sm:$0x7f] %v2073_v0  ;;  %834 = vmatpush.msra.mxu2 %v796_v10 }
 0x309   :  { %623 = vst.msk [vmem:[#allocation2] sm:$0x7e] %vm622_vm6, %v620_v11  ;;  %v677_v11 = vld [vmem:[#allocation3 + $0x9a0] sm:$0x7] }
 0x30a   :  { %628 = vst.msk [vmem:[#allocation2 + $0x10] sm:$0x3f] %vm492_vm1, %v626_v12  ;;  %v691_v12 = vperm.slane %v677_v11, 0  ;;  %v694_v15 = vperm.slane %v677_v11, 1 }
 0x310   :  { %v629_v17 = vld [vmem:[#allocation2] sm:$0x7f] }
 0x311   :  { %v631_v18 = vmul.f32 %v630_v14, %v629_v17  ;;  %v636_v19 = vld [vmem:[#allocation2 + $0x10] sm:$0x7f]  ;;  %679 = vst [vmem:[#allocation2] sm:$0x7f] %v2073_v0  ;;  %v794_v17 = vld [vmem:[#allocation3 + $0xaa0] sm:$0xff] }
 0x312   :  { %681 = vst [vmem:[#allocation2 + $0x10] sm:$0x7f] %v2073_v0  ;;  %v638_v24 = vmul.f32 %v637_v20, %v636_v19  ;;  %v795_v14 = vld [vmem:[#allocation3 + $0xab0] sm:$0xff]  ;;  %v698_v20 = vperm.slane %v677_v11, 2 }
 0x313   :  { %v632_v21 = vadd.f32 %v631_v18, %v615_v16  ;;  %v810_v16 = vld [vmem:[#allocation3 + $0xba0] sm:$0xff]  ;;  %v678_v18 = vld [vmem:[#allocation3 + $0x9b0] ss:$0 sm:$0xff]  ;;  %835 = vmatpush.msra.mxu2 %v795_v14 }
 0x314   :  { %856 = vmatpush.msrb.mxu3 %v810_v16 }
 0x315   :  { %v635_v23 = vadd.f32 %v634_v22, %v632_v21  ;;  %836 = vmatpush.msra.mxu2 %v794_v17 }
 0x317   :  { %v639_v25 = vadd.f32 %v638_v24, %v635_v23  ;;  %v809_v23 = vld [vmem:[#allocation3 + $0xb90] sm:$0xff] }
 0x318   :  { %v793_v24 = vld [vmem:[#allocation3 + $0xa90] sm:$0xff]  ;;  %857 = vmatpush.msrb.mxu3 %v809_v23 }
 0x319   :  { %v642_v26 = vsel %vm624_vm5, %v639_v25, 0.0  ;;  %837 = vmatpush.msra.mxu2 %v793_v24 }
 0x31a   :  { %v643_v27 = vrot.slane %v642_v26, 4 }
 0x31c   :  { %v644_v28 = vadd.f32 %v643_v27, %v642_v26  ;;  %v808_v27 = vld [vmem:[#allocation3 + $0xb80] sm:$0xff] }
 0x31d   :  { %858 = vmatpush.msrb.mxu3 %v808_v27 }
 0x31e   :  { %v645_v29 = vrot.slane %v644_v28, 2 }
 0x320   :  { %v646_v30 = vadd.f32 %v645_v29, %v644_v28  ;;  %v792_v28 = vld [vmem:[#allocation3 + $0xa80] sm:$0xff] }
 0x321   :  { %838 = vmatpush.msra.mxu2 %v792_v28 }
 0x322   :  { %v647_v31 = vrot.slane %v646_v30, 1 }
 0x324   :  { %v648_v32 = vadd.f32 %v647_v31, %v646_v30  ;;  %v807_v31 = vld [vmem:[#allocation3 + $0xb70] sm:$0xff] }
 0x325   :  { %859 = vmatpush.msrb.mxu3 %v807_v31 }
 0x326   :  { %v649_v33 = vmul.f32 0.14285715, %v648_v32  ;;  %v791_v32 = vld [vmem:[#allocation3 + $0xa70] sm:$0xff] }
 0x327   :  { %839 = vmatpush.msra.mxu2 %v791_v32 }
 0x328   :  { %v650_v34 = vsub.f32 %v639_v25, %v649_v33 }
 0x32a   :  { %v651_v35 = vmul.f32 %v650_v34, %v650_v34  ;;  %v806_v34 = vld [vmem:[#allocation3 + $0xb60] sm:$0xff] }
 0x32b   :  { %860 = vmatpush.msrb.mxu3 %v806_v34 }
 0x32c   :  { %v652_v36 = vsel %vm624_vm5, %v651_v35, 0.0  ;;  %v790_v35 = vld [vmem:[#allocation3 + $0xa60] sm:$0xff] }
 0x32d   :  { %v653_v37 = vrot.slane %v652_v36, 4  ;;  %840 = vmatpush.msra.mxu2 %v790_v35  ;;  %v749_v35 = vld [vmem:[#allocation3 + $0xa00] ss:$0 sm:$0xff] }
 0x32f   :  { %v654_v38 = vadd.f32 %v653_v37, %v652_v36 }
 0x331   :  { %v655_v39 = vrot.slane %v654_v38, 2 }
 0x333   :  { %v656_v40 = vadd.f32 %v655_v39, %v654_v38  ;;  %v805_v38 = vld [vmem:[#allocation3 + $0xb50] sm:$0xff] }
 0x334   :  { %v789_v39 = vld [vmem:[#allocation3 + $0xa50] sm:$0xff]  ;;  %861 = vmatpush.msrb.mxu3 %v805_v38 }
 0x335   :  { %v657_v41 = vrot.slane %v656_v40, 1  ;;  %841 = vmatpush.msra.mxu2 %v789_v39  ;;  %v750_v39 = vld [vmem:[#allocation3 + $0xa10] ss:$0 sm:$0xff] }
 0x337   :  { %v658_v42 = vadd.f32 %v657_v41, %v656_v40  ;;  %v804_v40 = vld [vmem:[#allocation3 + $0xb40] sm:$0xff] }
 0x338   :  { %v788_v41 = vld [vmem:[#allocation3 + $0xa40] sm:$0xff]  ;;  %862 = vmatpush.msrb.mxu3 %v804_v40 }
 0x339   :  { %v659_v43 = vmul.f32 0.14285715, %v658_v42  ;;  %v803_v42 = vld [vmem:[#allocation3 + $0xb30] sm:$0xff]  ;;  %842 = vmatpush.msra.mxu2 %v788_v41 }
 0x33a   :  { %863 = vmatpush.msrb.mxu3 %v803_v42 }
 0x33b   :  { %v660_v44 = vadd.f32 1e-05, %v659_v43  ;;  %v787_v43 = vld [vmem:[#allocation3 + $0xa30] sm:$0xff] }
 0x33c   :  { %843 = vmatpush.msra.mxu2 %v787_v43 }
 0x33d   :  { %2030 = vrsqrt.f32 %v660_v44  ;;  %vm667_vm8 = vweird.f32 %v660_v44 }
 0x343   :  { %v2031_v45 = vpop.eup %2030 }
 0x344   :  { %v662_v46 = vmul.f32 %v2031_v45, %v660_v44  ;;  %vm668_vm7 = vweird.f32 %v2031_v45  ;;  %v701_v44 = vld [vmem:[#allocation3 + $0x9c0] sm:$0x7] }
 0x345   :  { %vm669_vm9 = vmor %vm667_vm8, %vm668_vm7 }
 0x346   :  { %v663_v47 = vmul.f32 %v2031_v45, %v662_v46  ;;  %v715_v46 = vperm.slane %v701_v44, 0 }
 0x348   :  { %v664_v48 = vmul.f32 0.5, %v663_v47  ;;  %v718_v47 = vperm.slane %v701_v44, 1 }
 0x34a   :  { %v665_v49 = vsub.f32 1.5, %v664_v48 }
 0x34c   :  { %v666_v51 = vmul.f32 %v2031_v45, %v665_v49  ;;  %v702_v49 = vld [vmem:[#allocation3 + $0x9d0] ss:$0 sm:$0xff] }
 0x34e   :  { %v670_v52 = vsel %vm669_vm9, %v2031_v45, %v666_v51  ;;  %v802_v45 = vld [vmem:[#allocation3 + $0xb20] sm:$0xff] }
 0x34f   :  { %v671_v53 = vmul.f32 %v670_v52, %v640_v50  ;;  %864 = vmatpush.msrb.mxu3 %v802_v45  ;;  %v722_v52 = vperm.slane %v701_v44, 2 }
 0x351   :  { %v672_v55 = vmul.f32 %v671_v53, %v649_v33  ;;  %v674_v57 = vmul.f32 %v671_v53, %v639_v25 }
 0x353   :  { %v673_v56 = vsub.f32 %v641_v54, %v672_v55 }
 0x355   :  { %v675_v58 = vadd.f32 %v674_v57, %v673_v56 }
 0x357   :  { %v676_v63 = vmax.f32 %v675_v58, 0.0 }
 0x359   :  { %v683_v3 = vrot.slane %v676_v63, 7  ;;  %686 = vst.msk [vmem:[#allocation2 + $0x8] sm:$0x7f] %vm624_vm5, %v676_v63  ;;  %v687_v4 = vrot.slane %v676_v63, 1  ;;  %v695_v26 = vmul.f32 %v694_v15, %v676_v63  ;;  %v726_v63 = vld [vmem:[#allocation3 + $0x9f0] ss:$0 sm:$0xff] }
 0x35a   :  { %704 = vst [vmem:[#allocation2 + $0x8] sm:$0x7f] %v2073_v0 }
 0x35b   :  { %685 = vst.msk [vmem:[#allocation2] sm:$0x7e] %vm622_vm6, %v683_v3  ;;  %v746_v3 = vperm.slane %v725_v60, 2  ;;  %v969_v60 = vld [vmem:[#allocation3 + $0xe40] sm:$0xff] }
 0x35c   :  { %689 = vst.msk [vmem:[#allocation2 + $0x10] sm:$0x3f] %vm492_vm1, %v687_v4  ;;  %1017 = vmatpush.msrb.mxu0 %v969_v60  ;;  %v913_v60 = vld [vmem:[#allocation3 + $0xc80] sm:$0xff] }
 0x362   :  { %v690_v19 = vld [vmem:[#allocation2] sm:$0x7f] }
 0x363   :  { %v692_v21 = vmul.f32 %v691_v12, %v690_v19  ;;  %v697_v22 = vld [vmem:[#allocation2 + $0x10] sm:$0x7f]  ;;  %703 = vst [vmem:[#allocation2] sm:$0x7f] %v2073_v0 }
 0x364   :  { %705 = vst [vmem:[#allocation2 + $0x10] sm:$0x7f] %v2073_v0  ;;  %v699_v30 = vmul.f32 %v698_v20, %v697_v22 }
 0x365   :  { %v693_v25 = vadd.f32 %v692_v21, %v678_v18 }
 0x367   :  { %v696_v29 = vadd.f32 %v695_v26, %v693_v25 }
 0x369   :  { %v700_v33 = vadd.f32 %v699_v30, %v696_v29  ;;  %v786_v29 = vld [vmem:[#allocation3 + $0xa20] sm:$0xff] }
 0x36a   :  { %844 = vmatpush.msra.mxu2 %v786_v29  ;;  %v958_v29 = vld [vmem:[#allocation3 + $0xde8] sm:$0xff] }
 0x36b   :  { %v707_v36 = vrot.slane %v700_v33, 7  ;;  %710 = vst.msk [vmem:[#allocation2 + $0x8] sm:$0x7f] %vm624_vm5, %v700_v33  ;;  %v711_v37 = vrot.slane %v700_v33, 1  ;;  %v719_v53 = vmul.f32 %v718_v47, %v700_v33 }
 0x36c   :  { %728 = vst [vmem:[#allocation2 + $0x8] sm:$0x7f] %v2073_v0 }
 0x36d   :  { %709 = vst.msk [vmem:[#allocation2] sm:$0x7e] %vm622_vm6, %v707_v36 }
 0x36e   :  { %713 = vst.msk [vmem:[#allocation2 + $0x10] sm:$0x3f] %vm492_vm1, %v711_v37 }
 0x374   :  { %v714_v48 = vld [vmem:[#allocation2] sm:$0x7f] }
 0x375   :  { %727 = vst [vmem:[#allocation2] sm:$0x7f] %v2073_v0  ;;  %v716_v50 = vmul.f32 %v715_v46, %v714_v48  ;;  %v721_v51 = vld [vmem:[#allocation2 + $0x10] sm:$0x7f]  ;;  %v818_v48 = vld [vmem:[#allocation3 + $0xc20] ss:$0 sm:$0xff] }
 0x376   :  { %729 = vst [vmem:[#allocation2 + $0x10] sm:$0x7f] %v2073_v0  ;;  %v723_v56 = vmul.f32 %v722_v52, %v721_v51 }
 0x377   :  { %v717_v54 = vadd.f32 %v716_v50, %v702_v49 }
 0x379   :  { %v720_v55 = vadd.f32 %v719_v53, %v717_v54 }
 0x37b   :  { %v724_v57 = vadd.f32 %v723_v56, %v720_v55 }
 0x37d   :  { %v731_v58 = vrot.slane %v724_v57, 7  ;;  %734 = vst.msk [vmem:[#allocation2 + $0x8] sm:$0x7f] %vm624_vm5, %v724_v57  ;;  %v735_v59 = vrot.slane %v724_v57, 1  ;;  %v743_v6 = vmul.f32 %v742_v62, %v724_v57 }
 0x37e   :  { %820 = vst [vmem:[#allocation2 + $0x8] sm:$0xff] %v2073_v0 }
 0x37f   :  { %733 = vst.msk [vmem:[#allocation2] sm:$0x7e] %vm622_vm6, %v731_v58 }
 0x380   :  { %737 = vst.msk [vmem:[#allocation2 + $0x10] sm:$0x3f] %vm492_vm1, %v735_v59 }
 0x386   :  { %v738_v1 = vld [vmem:[#allocation2] sm:$0x7f] }
 0x387   :  { %v740_v2 = vmul.f32 %v739_v61, %v738_v1  ;;  %819 = vst [vmem:[#allocation2] sm:$0xff] %v2073_v0  ;;  %v745_v4 = vld [vmem:[#allocation2 + $0x10] sm:$0x7f]  ;;  %v970_v61 = vld [vmem:[#allocation3 + $0xe48] sm:$0xff] }
 0x388   :  { %v747_v8 = vmul.f32 %v746_v3, %v745_v4  ;;  %1063 = vmatpush.msra.mxu3 %v970_v61  ;;  %v967_v1 = vld [vmem:[#allocation3 + $0xe30] sm:$0xff]  ;;  %v968_v3 = vld [vmem:[#allocation3 + $0xe38] sm:$0xff] }
 0x389   :  { %v741_v5 = vadd.f32 %v740_v2, %v726_v63  ;;  %v937_v63 = vld [vmem:[#allocation3 + $0xd40] sm:$0xff]  ;;  %v938_v2 = vld [vmem:[#allocation3 + $0xd48] sm:$0xff]  ;;  %1018 = vmatpush.msrb.mxu0 %v967_v1  ;;  %v943_v61 = vld [vmem:[#allocation3 + $0xd70] sm:$0xff] }
 0x38a   :  { %994 = vmatpush.msrb.mxu1 %v937_v63  ;;  %1040 = vmatpush.msrb.mxu2 %v938_v2  ;;  %v914_v63 = vld [vmem:[#allocation3 + $0xc88] sm:$0xff]  ;;  %v944_v1 = vld [vmem:[#allocation3 + $0xd78] sm:$0xff]  ;;  %v911_v2 = vld [vmem:[#allocation3 + $0xc70] sm:$0xff] }
 0x38b   :  { %v744_v7 = vadd.f32 %v743_v6, %v741_v5  ;;  %1064 = vmatpush.msra.mxu3 %v968_v3  ;;  %v935_v5 = vld [vmem:[#allocation3 + $0xd30] sm:$0xff]  ;;  %v965_v6 = vld [vmem:[#allocation3 + $0xe20] sm:$0xff] }
 0x38c   :  { %995 = vmatpush.msrb.mxu1 %v935_v5  ;;  %1019 = vmatpush.msrb.mxu0 %v965_v6  ;;  %v941_v3 = vld [vmem:[#allocation3 + $0xd60] sm:$0xff]  ;;  %v942_v5 = vld [vmem:[#allocation3 + $0xd68] sm:$0xff] }
 0x38d   :  { %v748_v9 = vadd.f32 %v747_v8, %v744_v7  ;;  %v936_v7 = vld [vmem:[#allocation3 + $0xd38] sm:$0xff]  ;;  %v966_v8 = vld [vmem:[#allocation3 + $0xe28] sm:$0xff]  ;;  %v909_v6 = vld [vmem:[#allocation3 + $0xc60] sm:$0xff] }
 0x38e   :  { %1041 = vmatpush.msrb.mxu2 %v936_v7  ;;  %1065 = vmatpush.msra.mxu3 %v966_v8  ;;  %v939_v7 = vld [vmem:[#allocation3 + $0xd50] sm:$0xff]  ;;  %v910_v8 = vld [vmem:[#allocation3 + $0xc68] sm:$0xff] }
 0x38f   :  { %v751_v10 = vsel %vm624_vm5, %v748_v9, 0.0 }
 0x390   :  { %v752_v11 = vrot.slane %v751_v10, 4 }
 0x392   :  { %v753_v12 = vadd.f32 %v752_v11, %v751_v10  ;;  %v933_v10 = vld [vmem:[#allocation3 + $0xd20] sm:$0xff]  ;;  %v963_v11 = vld [vmem:[#allocation3 + $0xe10] sm:$0xff] }
 0x393   :  { %996 = vmatpush.msrb.mxu1 %v933_v10  ;;  %1020 = vmatpush.msrb.mxu0 %v963_v11  ;;  %v907_v10 = vld [vmem:[#allocation3 + $0xc50] sm:$0xff] }
 0x394   :  { %v754_v13 = vrot.slane %v753_v12, 2 }
 0x396   :  { %v755_v14 = vadd.f32 %v754_v13, %v753_v12  ;;  %v934_v12 = vld [vmem:[#allocation3 + $0xd28] sm:$0xff]  ;;  %v964_v13 = vld [vmem:[#allocation3 + $0xe18] sm:$0xff] }
 0x397   :  { %1042 = vmatpush.msrb.mxu2 %v934_v12  ;;  %1066 = vmatpush.msra.mxu3 %v964_v13  ;;  %v908_v12 = vld [vmem:[#allocation3 + $0xc58] sm:$0xff] }
 0x398   :  { %v756_v15 = vrot.slane %v755_v14, 1 }
 0x39a   :  { %v757_v16 = vadd.f32 %v756_v15, %v755_v14  ;;  %v931_v15 = vld [vmem:[#allocation3 + $0xd10] sm:$0xff] }
 0x39b   :  { %997 = vmatpush.msrb.mxu1 %v931_v15 }
 0x39c   :  { %v758_v17 = vmul.f32 0.14285715, %v757_v16  ;;  %v961_v16 = vld [vmem:[#allocation3 + $0xe00] sm:$0xff] }
 0x39d   :  { %1021 = vmatpush.msrb.mxu0 %v961_v16 }
 0x39e   :  { %v759_v18 = vsub.f32 %v748_v9, %v758_v17 }
 0x3a0   :  { %v760_v19 = vmul.f32 %v759_v18, %v759_v18 }
 0x3a2   :  { %v761_v20 = vsel %vm624_vm5, %v760_v19, 0.0  ;;  %v962_v19 = vld [vmem:[#allocation3 + $0xe08] sm:$0xff] }
 0x3a3   :  { %v762_v21 = vrot.slane %v761_v20, 4  ;;  %1067 = vmatpush.msra.mxu3 %v962_v19  ;;  %v988_v19 = vld [vmem:[#allocation2 + $0x28] sm:$0x1] }
 0x3a4   :  { %1327 = vst [vmem:[#allocation2 + $0x28] sm:$0x3] %v2073_v0 }
 0x3a5   :  { %v763_v22 = vadd.f32 %v762_v21, %v761_v20  ;;  %v929_v20 = vld [vmem:[#allocation3 + $0xd00] sm:$0xff]  ;;  %v959_v21 = vld [vmem:[#allocation3 + $0xdf0] sm:$0xff] }
 0x3a6   :  { %998 = vmatpush.msrb.mxu1 %v929_v20  ;;  %1022 = vmatpush.msrb.mxu0 %v959_v21 }
 0x3a7   :  { %v764_v23 = vrot.slane %v763_v22, 2 }
 0x3a9   :  { %v765_v24 = vadd.f32 %v764_v23, %v763_v22  ;;  %v930_v22 = vld [vmem:[#allocation3 + $0xd08] sm:$0xff] }
 0x3ab   :  { %v766_v25 = vrot.slane %v765_v24, 1 }
 0x3ad   :  { %v767_v26 = vadd.f32 %v766_v25, %v765_v24  ;;  %v960_v24 = vld [vmem:[#allocation3 + $0xdf8] sm:$0xff]  ;;  %v927_v25 = vld [vmem:[#allocation3 + $0xcf0] sm:$0xff] }
 0x3ae   :  { %1068 = vmatpush.msra.mxu3 %v960_v24  ;;  %999 = vmatpush.msrb.mxu1 %v927_v25 }
 0x3af   :  { %v768_v27 = vmul.f32 0.14285715, %v767_v26  ;;  %v957_v26 = vld [vmem:[#allocation3 + $0xde0] sm:$0xff] }
 0x3b0   :  { %1023 = vmatpush.msrb.mxu0 %v957_v26  ;;  %1069 = vmatpush.msra.mxu3 %v958_v29 }
 0x3b1   :  { %v769_v28 = vadd.f32 1e-05, %v768_v27  ;;  %v928_v27 = vld [vmem:[#allocation3 + $0xcf8] sm:$0xff] }
 0x3b3   :  { %2032 = vrsqrt.f32 %v769_v28  ;;  %vm776_vm11 = vweird.f32 %v769_v28 }
 0x3b9   :  { %v2033_v30 = vpop.eup %2032 }
 0x3ba   :  { %v771_v31 = vmul.f32 %v2033_v30, %v769_v28  ;;  %vm777_vm10 = vweird.f32 %v2033_v30 }
 0x3bb   :  { %vm778_vm12 = vmor %vm776_vm11, %vm777_vm10 }
 0x3bc   :  { %v772_v32 = vmul.f32 %v2033_v30, %v771_v31  ;;  %v955_v31 = vld [vmem:[#allocation3 + $0xdd0] sm:$0xff] }
 0x3bd   :  { %1024 = vmatpush.msrb.mxu0 %v955_v31 }
 0x3be   :  { %v773_v33 = vmul.f32 0.5, %v772_v32  ;;  %v926_v32 = vld [vmem:[#allocation3 + $0xce8] sm:$0xff] }
 0x3c0   :  { %v774_v34 = vsub.f32 1.5, %v773_v33 }
 0x3c2   :  { %v775_v36 = vmul.f32 %v2033_v30, %v774_v34  ;;  %v956_v34 = vld [vmem:[#allocation3 + $0xdd8] sm:$0xff] }
 0x3c3   :  { %1070 = vmatpush.msra.mxu3 %v956_v34 }
 0x3c4   :  { %v779_v37 = vsel %vm778_vm12, %v2033_v30, %v775_v36  ;;  %v925_v30 = vld [vmem:[#allocation3 + $0xce0] sm:$0xff] }
 0x3c5   :  { %v780_v38 = vmul.f32 %v779_v37, %v749_v35  ;;  %1000 = vmatpush.msrb.mxu1 %v925_v30  ;;  %v923_v35 = vld [vmem:[#allocation3 + $0xcd0] sm:$0xff]  ;;  %v953_v36 = vld [vmem:[#allocation3 + $0xdc0] sm:$0xff]  ;;  %v924_v37 = vld [vmem:[#allocation3 + $0xcd8] sm:$0xff] }
 0x3c6   :  { %1025 = vmatpush.msrb.mxu0 %v953_v36 }
 0x3c7   :  { %v781_v40 = vmul.f32 %v780_v38, %v758_v17  ;;  %v783_v42 = vmul.f32 %v780_v38, %v748_v9  ;;  %v932_v17 = vld [vmem:[#allocation3 + $0xd18] sm:$0xff]  ;;  %1001 = vmatpush.msrb.mxu1 %v923_v35 }
 0x3c8   :  { %1043 = vmatpush.msrb.mxu2 %v932_v17  ;;  %v869_v17 = vld [vmem:[#allocation3 + $0xc30] ss:$0 sm:$0xff] }
 0x3c9   :  { %v782_v41 = vsub.f32 %v750_v39, %v781_v40  ;;  %v954_v39 = vld [vmem:[#allocation3 + $0xdc8] sm:$0xff]  ;;  %v921_v40 = vld [vmem:[#allocation3 + $0xcc0] sm:$0xff] }
 0x3ca   :  { %1044 = vmatpush.msrb.mxu2 %v930_v22  ;;  %1071 = vmatpush.msra.mxu3 %v954_v39  ;;  %v870_v22 = vld [vmem:[#allocation3 + $0xc40] ss:$0 sm:$0xff] }
 0x3cb   :  { %v784_v43 = vadd.f32 %v783_v42, %v782_v41  ;;  %v951_v41 = vld [vmem:[#allocation3 + $0xdb0] sm:$0xff]  ;;  %v922_v42 = vld [vmem:[#allocation3 + $0xcc8] sm:$0xff]  ;;  %1002 = vmatpush.msrb.mxu1 %v921_v40 }
 0x3cc   :  { %1045 = vmatpush.msrb.mxu2 %v928_v27  ;;  %1026 = vmatpush.msrb.mxu0 %v951_v41 }
 0x3cd   :  { %v785_v44 = vmax.f32 %v784_v43, 0.0 }
 0x3ce   :  { %1046 = vmatpush.msrb.mxu2 %v926_v32  ;;  %v972_v32 = vld [vmem:[#allocation3 + $0xe50] ss:$8 sm:$0x3] }
 0x3cf   :  { %826 = vst.msk [vmem:[#allocation2 + $0x8] sm:$0x7f] %vm624_vm5, %v785_v44  ;;  %v822_v45 = vrot.slane %v785_v44, 7  ;;  %v952_v44 = vld [vmem:[#allocation3 + $0xdb8] sm:$0xff]  ;;  %vm980_vm5 = vcmask 785409   ;;  %v991_v40 = vperm.slane %v972_v32, 1 }
 0x3d0   :  { %1047 = vmatpush.msrb.mxu2 %v924_v37  ;;  %1072 = vmatpush.msra.mxu3 %v952_v44 }
 0x3d1   :  { %825 = vst.msk [vmem:[#allocation2] sm:$0xfe] %vm824_vm14, %v822_v45  ;;  %v919_v45 = vld [vmem:[#allocation3 + $0xcb0] sm:$0xff] }
 0x3d2   :  { %1048 = vmatpush.msrb.mxu2 %v922_v42  ;;  %1003 = vmatpush.msrb.mxu1 %v919_v45 }
 0x3d6   :  { %v828_v46 = vld [vmem:[#allocation2 + $0x8] sm:$0xff] }
 0x3d7   :  { %865 = vmatmul.f32.vlgmr.msrb.gmra.mxu3 %v828_v46  ;;  %974 = vst [vmem:[#allocation2 + $0x8] sm:$0xff] %v2073_v0  ;;  %v949_v46 = vld [vmem:[#allocation3 + $0xda0] sm:$0xff] }
 0x3d8   :  { %v827_v47 = vld [vmem:[#allocation2] sm:$0xff]  ;;  %1027 = vmatpush.msrb.mxu0 %v949_v46 }
 0x3d9   :  { %845 = vmatmul.f32.vlgmr.msra.gmra.mxu2 %v827_v47  ;;  %973 = vst [vmem:[#allocation2] sm:$0xff] %v2073_v0  ;;  %v920_v47 = vld [vmem:[#allocation3 + $0xcb8] sm:$0xff] }
 0x3da   :  { %1049 = vmatpush.msrb.mxu2 %v920_v47 }
 0x45a   :  { %v866_v51 = vpop.f32.mrf.mxu3 }
 0x45c   :  { %v846_v49 = vpop.f32.mrf.mxu2 }
 0x45d   :  { %v847_v50 = vadd.f32 %v846_v49, %v818_v48  ;;  %v950_v49 = vld [vmem:[#allocation3 + $0xda8] sm:$0xff] }
 0x45e   :  { %1073 = vmatpush.msra.mxu3 %v950_v49 }
 0x45f   :  { %v2226_v52 = vadd.f32 %v866_v51, %v847_v50  ;;  %v917_v50 = vld [vmem:[#allocation3 + $0xca0] sm:$0xff]  ;;  %v947_v51 = vld [vmem:[#allocation3 + $0xd90] sm:$0xff] }
 0x460   :  { %1004 = vmatpush.msrb.mxu1 %v917_v50  ;;  %1028 = vmatpush.msrb.mxu0 %v947_v51 }
 0x461   :  { %v872_v53 = vsel %vm871_vm15, %v2226_v52, 0.0 }
 0x462   :  { %v873_v54 = vrot.slane %v872_v53, 4 }
 0x464   :  { %v874_v55 = vadd.f32 %v873_v54, %v872_v53  ;;  %v918_v53 = vld [vmem:[#allocation3 + $0xca8] sm:$0xff] }
 0x465   :  { %1050 = vmatpush.msrb.mxu2 %v918_v53 }
 0x466   :  { %v875_v56 = vrot.slane %v874_v55, 2 }
 0x468   :  { %v876_v57 = vadd.f32 %v875_v56, %v874_v55  ;;  %v948_v55 = vld [vmem:[#allocation3 + $0xd98] sm:$0xff]  ;;  %v915_v56 = vld [vmem:[#allocation3 + $0xc90] sm:$0xff] }
 0x469   :  { %1074 = vmatpush.msra.mxu3 %v948_v55  ;;  %1005 = vmatpush.msrb.mxu1 %v915_v56 }
 0x46a   :  { %v877_v58 = vrot.slane %v876_v57, 1 }
 0x46b   :  { %1006 = vmatpush.msrb.mxu1 %v913_v60  ;;  %v1318_v60 = vld [vmem:[#allocation3 + $0x1270] sm:$0xff] }
 0x46c   :  { %v878_v59 = vadd.f32 %v877_v58, %v876_v57  ;;  %v945_v57 = vld [vmem:[#allocation3 + $0xd80] sm:$0xff]  ;;  %v916_v58 = vld [vmem:[#allocation3 + $0xc98] sm:$0xff] }
 0x46d   :  { %1029 = vmatpush.msrb.mxu0 %v945_v57  ;;  %1051 = vmatpush.msrb.mxu2 %v916_v58 }
 0x46e   :  { %v2230_v62 = vmul.f32 0.125, %v878_v59  ;;  %v946_v59 = vld [vmem:[#allocation3 + $0xd88] sm:$0xff]  ;;  %1007 = vmatpush.msrb.mxu1 %v911_v2  ;;  %v1316_v2 = vld [vmem:[#allocation3 + $0x1260] sm:$0xff] }
 0x46f   :  { %1075 = vmatpush.msra.mxu3 %v946_v59  ;;  %1030 = vmatpush.msrb.mxu0 %v943_v61  ;;  %v1286_v59 = vld [vmem:[#allocation3 + $0x1170] sm:$0xff] }
 0x470   :  { %v880_v4 = vsub.f32 %v2226_v52, %v2230_v62  ;;  %1052 = vmatpush.msrb.mxu2 %v914_v63  ;;  %1008 = vmatpush.msrb.mxu1 %v909_v6  ;;  %v1314_v6 = vld [vmem:[#allocation3 + $0x1250] sm:$0xff] }
 0x471   :  { %1076 = vmatpush.msra.mxu3 %v944_v1  ;;  %1031 = vmatpush.msrb.mxu0 %v941_v3  ;;  %v1284_v1 = vld [vmem:[#allocation3 + $0x1160] sm:$0xff] }
 0x472   :  { %v881_v9 = vmul.f32 %v880_v4, %v880_v4  ;;  %v912_v4 = vld [vmem:[#allocation3 + $0xc78] sm:$0xff]  ;;  %1009 = vmatpush.msrb.mxu1 %v907_v10  ;;  %v1312_v10 = vld [vmem:[#allocation3 + $0x1240] sm:$0xff] }
 0x473   :  { %1053 = vmatpush.msrb.mxu2 %v912_v4  ;;  %1077 = vmatpush.msra.mxu3 %v942_v5  ;;  %v1282_v5 = vld [vmem:[#allocation3 + $0x1150] sm:$0xff] }
 0x474   :  { %v882_v14 = vsel %vm871_vm15, %v881_v9, 0.0  ;;  %v940_v9 = vld [vmem:[#allocation3 + $0xd58] sm:$0xff]  ;;  %1032 = vmatpush.msrb.mxu0 %v939_v7 }
 0x475   :  { %v883_v18 = vrot.slane %v882_v14, 4  ;;  %1054 = vmatpush.msrb.mxu2 %v910_v8  ;;  %1078 = vmatpush.msra.mxu3 %v940_v9  ;;  %v1280_v9 = vld [vmem:[#allocation3 + $0x1140] sm:$0xff] }
 0x477   :  { %v884_v23 = vadd.f32 %v883_v18, %v882_v14  ;;  %1055 = vmatpush.msrb.mxu2 %v908_v12  ;;  %1434 = vmatpush.msrb.mxu3 %v1318_v60  ;;  %v1210_v60 = vld [vmem:[#allocation3 + $0xf10] sm:$0xff] }
 0x479   :  { %v885_v28 = vrot.slane %v884_v23, 2  ;;  %1411 = vmatpush.msra.mxu2 %v1286_v59  ;;  %1435 = vmatpush.msrb.mxu3 %v1316_v2  ;;  %v1296_v2 = vld [vmem:[#allocation3 + $0x11c0] sm:$0xff] }
 0x47b   :  { %v886_v33 = vadd.f32 %v885_v28, %v884_v23  ;;  %1412 = vmatpush.msra.mxu2 %v1284_v1  ;;  %1436 = vmatpush.msrb.mxu3 %v1314_v6  ;;  %v1262_v6 = vld [vmem:[#allocation3 + $0x10b0] sm:$0xff] }
 0x47d   :  { %v887_v38 = vrot.slane %v886_v33, 1  ;;  %1413 = vmatpush.msra.mxu2 %v1282_v5  ;;  %1437 = vmatpush.msrb.mxu3 %v1312_v10  ;;  %v1240_v5 = vld [vmem:[#allocation3 + $0x1000] sm:$0xff] }
 0x47f   :  { %v888_v43 = vadd.f32 %v887_v38, %v886_v33  ;;  %v990_v33 = vperm.slane %v972_v32, 0  ;;  %1414 = vmatpush.msra.mxu2 %v1280_v9  ;;  %v1294_v9 = vld [vmem:[#allocation3 + $0x11b0] sm:$0xff] }
 0x481   :  { %v889_v48 = vmul.f32 0.125, %v888_v43 }
 0x483   :  { %v890_v54 = vadd.f32 1e-05, %v889_v48 }
 0x485   :  { %2034 = vrsqrt.f32 %v890_v54  ;;  %vm897_vm1 = vweird.f32 %v890_v54 }
 0x48b   :  { %v2035_v11 = vpop.eup %2034 }
 0x48c   :  { %v892_v13 = vmul.f32 %v2035_v11, %v890_v54  ;;  %vm898_vm0 = vweird.f32 %v2035_v11 }
 0x48d   :  { %vm899_vm2 = vmor %vm897_vm1, %vm898_vm0 }
 0x48e   :  { %v893_v14 = vmul.f32 %v2035_v11, %v892_v13 }
 0x490   :  { %v894_v15 = vmul.f32 0.5, %v893_v14  ;;  %v1278_v14 = vld [vmem:[#allocation3 + $0x1130] sm:$0xff] }
 0x491   :  { %1415 = vmatpush.msra.mxu2 %v1278_v14 }
 0x492   :  { %v895_v16 = vsub.f32 1.5, %v894_v15  ;;  %v1310_v15 = vld [vmem:[#allocation3 + $0x1230] sm:$0xff] }
 0x493   :  { %1438 = vmatpush.msrb.mxu3 %v1310_v15  ;;  %v1292_v15 = vld [vmem:[#allocation3 + $0x11a0] sm:$0xff] }
 0x494   :  { %v896_v18 = vmul.f32 %v2035_v11, %v895_v16 }
 0x496   :  { %v900_v20 = vsel %vm899_vm2, %v2035_v11, %v896_v18  ;;  %v1222_v18 = vld [vmem:[#allocation3 + $0xf70] sm:$0xff]  ;;  %vm2015_vm2 = vcmask 157696  }
 0x497   :  { %v901_v21 = vmul.f32 %v900_v20, %v869_v17  ;;  %v1276_v20 = vld [vmem:[#allocation3 + $0x1120] sm:$0xff]  ;;  %1365 = vmatpush.msra.mxu1 %v1222_v18 }
 0x498   :  { %1416 = vmatpush.msra.mxu2 %v1276_v20  ;;  %v1236_v18 = vld [vmem:[#allocation3 + $0xfe0] sm:$0xff] }
 0x499   :  { %v902_v23 = vmul.f32 %v901_v21, %v2230_v62  ;;  %v904_v25 = vmul.f32 %v901_v21, %v2226_v52 }
 0x49b   :  { %v903_v24 = vsub.f32 %v870_v22, %v902_v23  ;;  %v1308_v22 = vld [vmem:[#allocation3 + $0x1220] sm:$0xff] }
 0x49c   :  { %1439 = vmatpush.msrb.mxu3 %v1308_v22 }
 0x49d   :  { %v905_v26 = vadd.f32 %v904_v25, %v903_v24  ;;  %v1220_v24 = vld [vmem:[#allocation3 + $0xf60] sm:$0xff] }
 0x49e   :  { %v1252_v25 = vld [vmem:[#allocation3 + $0x1060] sm:$0xff]  ;;  %1366 = vmatpush.msra.mxu1 %v1220_v24  ;;  %v1234_v24 = vld [vmem:[#allocation3 + $0xfd0] sm:$0xff] }
 0x49f   :  { %v906_v27 = vmax.f32 %v905_v26, 0.0  ;;  %v1274_v26 = vld [vmem:[#allocation3 + $0x1110] sm:$0xff] }
 0x4a0   :  { %1417 = vmatpush.msra.mxu2 %v1274_v26  ;;  %v1288_v26 = vld [vmem:[#allocation3 + $0x1180] sm:$0xff] }
 0x4a1   :  { %v978_v28 = vrot.slane %v906_v27, 7  ;;  %984 = vst.msk [vmem:[#allocation2 + $0x8] sm:$0xff] %vm871_vm15, %v906_v27 }
 0x4a3   :  { %983 = vst.msk [vmem:[#allocation2 + $0x20] sm:$0x1] %vm982_vm4, %v978_v28 }
 0x4a4   :  { %981 = vst.msk [vmem:[#allocation2] sm:$0xfe] %vm980_vm5, %v978_v28 }
 0x4a8   :  { %v986_v29 = vld [vmem:[#allocation2 + $0x8] sm:$0xff] }
 0x4a9   :  { %1033 = vmatmul.f32.vlgmr.msrb.gmra.mxu0 %v986_v29  ;;  %1323 = vst [vmem:[#allocation2 + $0x8] sm:$0xff] %v2073_v0  ;;  %1079 = vmatmul.f32.vlgmr.msra.gmra.mxu3 %v986_v29  ;;  %v1306_v29 = vld [vmem:[#allocation3 + $0x1210] sm:$0xff] }
 0x4aa   :  { %v987_v30 = vld [vmem:[#allocation2 + $0x20] sm:$0x1]  ;;  %1440 = vmatpush.msrb.mxu3 %v1306_v29  ;;  %v1319_v29 = vld [vmem:[#allocation3 + $0x1278] sm:$0xff] }
 0x4ab   :  { %v985_v31 = vld [vmem:[#allocation2] sm:$0xff]  ;;  %1326 = vst [vmem:[#allocation2 + $0x20] sm:$0x3] %v2073_v0 }
 0x4ac   :  { %1010 = vmatmul.f32.vlgmr.msrb.gmra.mxu1 %v985_v31  ;;  %1322 = vst [vmem:[#allocation2] sm:$0xff] %v2073_v0  ;;  %1056 = vmatmul.f32.vlgmr.msrb.gmra.mxu2 %v985_v31  ;;  %v1250_v31 = vld [vmem:[#allocation3 + $0x1050] sm:$0xff] }
 0x4b1   :  { %1036 = vmatmul.f32.gmra.mxu0 %v988_v19  ;;  %1082 = vmatmul.f32.gmra.mxu3 %v988_v19  ;;  %v1254_v19 = vld [vmem:[#allocation3 + $0x1070] sm:$0xff] }
 0x4b2   :  { %1388 = vmatpush.msra.mxu0 %v1254_v19  ;;  %v1258_v19 = vld [vmem:[#allocation3 + $0x1090] sm:$0xff] }
 0x4b4   :  { %1013 = vmatmul.f32.gmra.mxu1 %v987_v30  ;;  %1059 = vmatmul.f32.gmra.mxu2 %v987_v30  ;;  %v1218_v30 = vld [vmem:[#allocation3 + $0xf50] sm:$0xff] }
 0x4b5   :  { %1389 = vmatpush.msra.mxu0 %v1252_v25  ;;  %1367 = vmatpush.msra.mxu1 %v1218_v30  ;;  %v1256_v25 = vld [vmem:[#allocation3 + $0x1080] sm:$0xff] }
 0x4b7   :  { %1390 = vmatpush.msra.mxu0 %v1250_v31  ;;  %v1200_v31 = vld [vmem:[#allocation3 + $0xec0] sm:$0xff] }
 0x526   :  { %v1034_v52 = vpop.f32.mrf.mxu0 }
 0x529   :  { %v1011_v62 = vpop.f32.mrf.mxu1 }
 0x52a   :  { %v1012_v36 = vadd.f32 %v1011_v62, %v990_v33 }
 0x52c   :  { %v1080_v34 = vpop.f32.mrf.mxu3  ;;  %v2244_v42 = vadd.f32 %v1034_v52, %v1012_v36  ;;  %v1272_v52 = vld [vmem:[#allocation3 + $0x1100] sm:$0xff] }
 0x52d   :  { %v1248_v36 = vld [vmem:[#allocation3 + $0x1040] sm:$0xff]  ;;  %1418 = vmatpush.msra.mxu2 %v1272_v52 }
 0x52e   :  { %v1037_v38 = vpop.f32.mrf.mxu0  ;;  %1391 = vmatpush.msra.mxu0 %v1248_v36  ;;  %v1232_v52 = vld [vmem:[#allocation3 + $0xfc0] sm:$0xff]  ;;  %v1283_v36 = vld [vmem:[#allocation3 + $0x1158] sm:$0xff] }
 0x52f   :  { %v1057_v35 = vpop.f32.mrf.mxu2 }
 0x530   :  { %v1058_v44 = vadd.f32 %v1057_v35, %v991_v40  ;;  %v1216_v35 = vld [vmem:[#allocation3 + $0xf40] sm:$0xff] }
 0x531   :  { %v1014_v37 = vpop.f32.mrf.mxu1  ;;  %1368 = vmatpush.msra.mxu1 %v1216_v35  ;;  %v1230_v35 = vld [vmem:[#allocation3 + $0xfb0] sm:$0xff] }
 0x532   :  { %v1015_v39 = vadd.f32 %v1014_v37, %v990_v33  ;;  %v2251_v51 = vadd.f32 %v1080_v34, %v1058_v44  ;;  %v1304_v34 = vld [vmem:[#allocation3 + $0x1200] sm:$0xff]  ;;  %v1270_v37 = vld [vmem:[#allocation3 + $0x10f0] sm:$0xff] }
 0x533   :  { %1441 = vmatpush.msrb.mxu3 %v1304_v34  ;;  %v1214_v44 = vld [vmem:[#allocation3 + $0xf30] sm:$0xff]  ;;  %1419 = vmatpush.msra.mxu2 %v1270_v37  ;;  %v1315_v37 = vld [vmem:[#allocation3 + $0x1258] sm:$0xff] }
 0x534   :  { %v2242_v41 = vadd.f32 %v1037_v38, %v1015_v39  ;;  %v1083_v47 = vpop.f32.mrf.mxu3  ;;  %1369 = vmatpush.msra.mxu1 %v1214_v44  ;;  %v1198_v34 = vld [vmem:[#allocation3 + $0xeb0] sm:$0xff]  ;;  %v1281_v44 = vld [vmem:[#allocation3 + $0x1148] sm:$0xff] }
 0x536   :  { %v1090_v43 = vsel %vm339_vm13, %v2242_v41, 0.0 }
 0x537   :  { %v1091_v45 = vadd.f32 %v1090_v43, %v2244_v42  ;;  %v1060_v46 = vpop.f32.mrf.mxu2  ;;  %v1302_v43 = vld [vmem:[#allocation3 + $0x11f0] sm:$0xff] }
 0x538   :  { %v1061_v48 = vadd.f32 %v1060_v46, %v991_v40  ;;  %1442 = vmatpush.msrb.mxu3 %v1302_v43  ;;  %v1268_v46 = vld [vmem:[#allocation3 + $0x10e0] sm:$0xff] }
 0x539   :  { %v1092_v49 = vrot.slane %v1091_v45, 4  ;;  %1420 = vmatpush.msra.mxu2 %v1268_v46 }
 0x53a   :  { %v2249_v50 = vadd.f32 %v1083_v47, %v1061_v48 }
 0x53b   :  { %v1093_v53 = vadd.f32 %v1092_v49, %v1091_v45  ;;  %v1246_v45 = vld [vmem:[#allocation3 + $0x1030] sm:$0xff]  ;;  %v1300_v49 = vld [vmem:[#allocation3 + $0x11e0] sm:$0xff] }
 0x53c   :  { %v1098_v54 = vsel %vm339_vm13, %v2249_v50, 0.0  ;;  %1392 = vmatpush.msra.mxu0 %v1246_v45  ;;  %1443 = vmatpush.msrb.mxu3 %v1300_v49  ;;  %v1313_v45 = vld [vmem:[#allocation3 + $0x1248] sm:$0xff]  ;;  %v1279_v49 = vld [vmem:[#allocation3 + $0x1138] sm:$0xff] }
 0x53d   :  { %v1094_v55 = vrot.slane %v1093_v53, 2  ;;  %v1099_v56 = vadd.f32 %v1098_v54, %v2251_v51  ;;  %v1212_v54 = vld [vmem:[#allocation3 + $0xf20] sm:$0xff] }
 0x53e   :  { %1370 = vmatpush.msra.mxu1 %v1212_v54  ;;  %v1224_v54 = vld [vmem:[#allocation3 + $0xf80] sm:$0xff] }
 0x53f   :  { %v1095_v57 = vadd.f32 %v1094_v55, %v1093_v53  ;;  %v1100_v58 = vrot.slane %v1099_v56, 4  ;;  %v1244_v55 = vld [vmem:[#allocation3 + $0x1020] sm:$0xff] }
 0x540   :  { %1393 = vmatpush.msra.mxu0 %v1244_v55  ;;  %1371 = vmatpush.msra.mxu1 %v1210_v60  ;;  %v1311_v55 = vld [vmem:[#allocation3 + $0x1238] sm:$0xff]  ;;  %v1309_v60 = vld [vmem:[#allocation3 + $0x1228] sm:$0xff] }
 0x541   :  { %v1096_v61 = vrot.slane %v1095_v57, 1  ;;  %v1101_v63 = vadd.f32 %v1100_v58, %v1099_v56  ;;  %v1266_v56 = vld [vmem:[#allocation3 + $0x10d0] sm:$0xff] }
 0x542   :  { %v1298_v58 = vld [vmem:[#allocation3 + $0x11d0] sm:$0xff]  ;;  %1421 = vmatpush.msra.mxu2 %v1266_v56 }
 0x543   :  { %v1097_v3 = vadd.f32 %v1096_v61, %v1095_v57  ;;  %v1102_v4 = vrot.slane %v1101_v63, 2  ;;  %v1242_v61 = vld [vmem:[#allocation3 + $0x1010] sm:$0xff]  ;;  %1444 = vmatpush.msrb.mxu3 %v1298_v58  ;;  %v1255_v58 = vld [vmem:[#allocation3 + $0x1078] sm:$0xff] }
 0x544   :  { %1394 = vmatpush.msra.mxu0 %v1242_v61  ;;  %v1221_v61 = vld [vmem:[#allocation3 + $0xf68] sm:$0xff] }
 0x545   :  { %v2256_v7 = vmul.f32 0.11111111, %v1097_v3  ;;  %v1103_v8 = vadd.f32 %v1102_v4, %v1101_v63  ;;  %v1264_v63 = vld [vmem:[#allocation3 + $0x10c0] sm:$0xff]  ;;  %1445 = vmatpush.msrb.mxu3 %v1296_v2  ;;  %v1275_v2 = vld [vmem:[#allocation3 + $0x1118] sm:$0xff] }
 0x546   :  { %v1208_v4 = vld [vmem:[#allocation3 + $0xf00] sm:$0xff]  ;;  %1422 = vmatpush.msra.mxu2 %v1264_v63  ;;  %1395 = vmatpush.msra.mxu0 %v1240_v5  ;;  %v1253_v63 = vld [vmem:[#allocation3 + $0x1068] sm:$0xff] }
 0x547   :  { %v1108_v11 = vsub.f32 %v2244_v42, %v2256_v7  ;;  %v1110_v12 = vsub.f32 %v2242_v41, %v2256_v7  ;;  %v1104_v13 = vrot.slane %v1103_v8, 1  ;;  %1372 = vmatpush.msra.mxu1 %v1208_v4  ;;  %1446 = vmatpush.msrb.mxu3 %v1294_v9  ;;  %v1273_v9 = vld [vmem:[#allocation3 + $0x1108] sm:$0xff] }
 0x548   :  { %1423 = vmatpush.msra.mxu2 %v1262_v6  ;;  %v1219_v6 = vld [vmem:[#allocation3 + $0xf58] sm:$0xff] }
 0x549   :  { %v1112_v16 = vmul.f32 %v1108_v11, %v1108_v11  ;;  %v1114_v17 = vmul.f32 %v1110_v12, %v1110_v12  ;;  %v1105_v21 = vadd.f32 %v1104_v13, %v1103_v8  ;;  %v1206_v11 = vld [vmem:[#allocation3 + $0xef0] sm:$0xff]  ;;  %v1260_v13 = vld [vmem:[#allocation3 + $0x10a0] sm:$0xff]  ;;  %1447 = vmatpush.msrb.mxu3 %v1292_v15  ;;  %v1303_v15 = vld [vmem:[#allocation3 + $0x11f8] sm:$0xff] }
 0x54a   :  { %v1238_v12 = vld [vmem:[#allocation3 + $0xff0] sm:$0xff]  ;;  %1373 = vmatpush.msra.mxu1 %v1206_v11  ;;  %1424 = vmatpush.msra.mxu2 %v1260_v13  ;;  %v1249_v13 = vld [vmem:[#allocation3 + $0x1048] sm:$0xff] }
 0x54b   :  { %v1116_v23 = vsel %vm339_vm13, %v1114_v17, 0.0  ;;  %v2263_v28 = vmul.f32 0.11111111, %v1105_v21  ;;  %1396 = vmatpush.msra.mxu0 %v1238_v12  ;;  %v1204_v17 = vld [vmem:[#allocation3 + $0xee0] sm:$0xff]  ;;  %v1290_v21 = vld [vmem:[#allocation3 + $0x1190] sm:$0xff]  ;;  %v1217_v12 = vld [vmem:[#allocation3 + $0xf48] sm:$0xff] }
 0x54c   :  { %v1117_v27 = vadd.f32 %v1116_v23, %v1112_v16  ;;  %1374 = vmatpush.msra.mxu1 %v1204_v17  ;;  %v1202_v23 = vld [vmem:[#allocation3 + $0xed0] sm:$0xff]  ;;  %1425 = vmatpush.msra.mxu2 %v1258_v19  ;;  %v1247_v19 = vld [vmem:[#allocation3 + $0x1038] sm:$0xff] }
 0x54d   :  { %v1109_v32 = vsub.f32 %v2251_v51, %v2263_v28  ;;  %v1111_v33 = vsub.f32 %v2249_v50, %v2263_v28  ;;  %1397 = vmatpush.msra.mxu0 %v1236_v18  ;;  %1448 = vmatpush.msrb.mxu3 %v1290_v21  ;;  %v1215_v18 = vld [vmem:[#allocation3 + $0xf38] sm:$0xff]  ;;  %v1213_v21 = vld [vmem:[#allocation3 + $0xf28] sm:$0xff] }
 0x54e   :  { %v1118_v62 = vrot.slane %v1117_v27, 4  ;;  %1375 = vmatpush.msra.mxu1 %v1202_v23  ;;  %1426 = vmatpush.msra.mxu2 %v1256_v25  ;;  %v1243_v25 = vld [vmem:[#allocation3 + $0x1018] sm:$0xff] }
 0x54f   :  { %v1113_v39 = vmul.f32 %v1109_v32, %v1109_v32  ;;  %v1115_v40 = vmul.f32 %v1111_v33, %v1111_v33  ;;  %1398 = vmatpush.msra.mxu0 %v1234_v24  ;;  %1449 = vmatpush.msrb.mxu3 %v1288_v26  ;;  %v1317_v32 = vld [vmem:[#allocation3 + $0x1268] sm:$0xff]  ;;  %v1211_v24 = vld [vmem:[#allocation3 + $0xf18] sm:$0xff] }
 0x550   :  { %v1119_v38 = vadd.f32 %v1118_v62, %v1117_v27  ;;  %v1287_v27 = vld [vmem:[#allocation3 + $0x1178] sm:$0xff]  ;;  %1376 = vmatpush.msra.mxu1 %v1200_v31  ;;  %v1285_v62 = vld [vmem:[#allocation3 + $0x1168] sm:$0xff] }
 0x551   :  { %v1124_v48 = vsel %vm339_vm13, %v1115_v40, 0.0  ;;  %1399 = vmatpush.msra.mxu0 %v1232_v52  ;;  %1503 = vmatpush.msrb.mxu2 %v1287_v27  ;;  %v1228_v40 = vld [vmem:[#allocation3 + $0xfa0] sm:$0xff]  ;;  %v1269_v26 = vld [vmem:[#allocation3 + $0x10e8] sm:$0xff] }
 0x552   :  { %v1120_v47 = vrot.slane %v1119_v38, 2  ;;  %v1125_v53 = vadd.f32 %v1124_v48, %v1113_v39  ;;  %1526 = vmatpush.msra.mxu3 %v1319_v29  ;;  %1377 = vmatpush.msra.mxu1 %v1198_v34  ;;  %v1196_v39 = vld [vmem:[#allocation3 + $0xea0] sm:$0xff]  ;;  %v1226_v48 = vld [vmem:[#allocation3 + $0xf90] sm:$0xff]  ;;  %v1301_v27 = vld [vmem:[#allocation3 + $0x11e8] sm:$0xff] }
 0x553   :  { %1400 = vmatpush.msra.mxu0 %v1230_v35  ;;  %1504 = vmatpush.msrb.mxu2 %v1285_v62  ;;  %v1267_v29 = vld [vmem:[#allocation3 + $0x10d8] sm:$0xff]  ;;  %v1209_v62 = vld [vmem:[#allocation3 + $0xf08] sm:$0xff] }
 0x554   :  { %v1121_v57 = vadd.f32 %v1120_v47, %v1119_v38  ;;  %v1126_v59 = vrot.slane %v1125_v53, 4  ;;  %1527 = vmatpush.msra.mxu3 %v1317_v32  ;;  %1378 = vmatpush.msra.mxu1 %v1196_v39  ;;  %v1194_v47 = vld [vmem:[#allocation3 + $0xe90] sm:$0xff]  ;;  %v1241_v32 = vld [vmem:[#allocation3 + $0x1008] sm:$0xff]  ;;  %v1295_v39 = vld [vmem:[#allocation3 + $0x11b8] sm:$0xff] }
 0x555   :  { %1401 = vmatpush.msra.mxu0 %v1228_v40  ;;  %1505 = vmatpush.msrb.mxu2 %v1283_v36  ;;  %v1297_v34 = vld [vmem:[#allocation3 + $0x11c8] sm:$0xff] }
 0x556   :  { %v1122_v1 = vrot.slane %v1121_v57, 1  ;;  %v1127_v3 = vadd.f32 %v1126_v59, %v1125_v53  ;;  %1528 = vmatpush.msra.mxu3 %v1315_v37  ;;  %1379 = vmatpush.msra.mxu1 %v1194_v47  ;;  %v1192_v53 = vld [vmem:[#allocation3 + $0xe80] sm:$0xff]  ;;  %v1277_v59 = vld [vmem:[#allocation3 + $0x1128] sm:$0xff] }
 0x557   :  { %1402 = vmatpush.msra.mxu0 %v1226_v48  ;;  %1506 = vmatpush.msrb.mxu2 %v1281_v44  ;;  %v1087_v35 = vld [vmem:[#allocation3 + $0xe60] ss:$8 sm:$0x3]  ;;  %v1207_v44 = vld [vmem:[#allocation3 + $0xef8] sm:$0xff] }
 0x558   :  { %v1123_v8 = vadd.f32 %v1122_v1, %v1121_v57  ;;  %v1128_v10 = vrot.slane %v1127_v3, 2  ;;  %1529 = vmatpush.msra.mxu3 %v1313_v45  ;;  %1380 = vmatpush.msra.mxu1 %v1192_v53  ;;  %v1223_v57 = vld [vmem:[#allocation3 + $0xf78] sm:$0xff]  ;;  %v1237_v47 = vld [vmem:[#allocation3 + $0xfe8] sm:$0xff] }
 0x559   :  { %1403 = vmatpush.msra.mxu0 %v1224_v54  ;;  %1507 = vmatpush.msrb.mxu2 %v1279_v49  ;;  %v1239_v45 = vld [vmem:[#allocation3 + $0xff8] sm:$0xff]  ;;  %v1261_v54 = vld [vmem:[#allocation3 + $0x10a8] sm:$0xff] }
 0x55a   :  { %v1132_v14 = vmul.f32 0.11111111, %v1123_v8  ;;  %v1129_v16 = vadd.f32 %v1128_v10, %v1127_v3  ;;  %1457 = vmatpush.msrb.mxu1 %v1223_v57  ;;  %1530 = vmatpush.msra.mxu3 %v1311_v55  ;;  %v1307_v3 = vld [vmem:[#allocation3 + $0x1218] sm:$0xff]  ;;  %v1305_v10 = vld [vmem:[#allocation3 + $0x1208] sm:$0xff] }
 0x55b   :  { %1480 = vmatpush.msrb.mxu0 %v1255_v58  ;;  %v1251_v8 = vld [vmem:[#allocation3 + $0x1058] sm:$0xff]  ;;  %1508 = vmatpush.msrb.mxu2 %v1277_v59  ;;  %v1293_v55 = vld [vmem:[#allocation3 + $0x11a8] sm:$0xff] }
 0x55c   :  { %v2270_v20 = vadd.f32 1e-05, %v1132_v14  ;;  %v1130_v22 = vrot.slane %v1129_v16, 1  ;;  %1458 = vmatpush.msrb.mxu1 %v1221_v61  ;;  %1531 = vmatpush.msra.mxu3 %v1309_v60  ;;  %v1271_v14 = vld [vmem:[#allocation3 + $0x10f8] sm:$0xff]  ;;  %v1201_v58 = vld [vmem:[#allocation3 + $0xec8] sm:$0xff] }
 0x55d   :  { %1481 = vmatpush.msrb.mxu0 %v1253_v63  ;;  %1509 = vmatpush.msrb.mxu2 %v1275_v2  ;;  %v1203_v49 = vld [vmem:[#allocation3 + $0xed8] sm:$0xff]  ;;  %v1233_v59 = vld [vmem:[#allocation3 + $0xfc8] sm:$0xff] }
 0x55e   :  { %2036 = vrsqrt.f32 %v2270_v20  ;;  %v1131_v30 = vadd.f32 %v1130_v22, %v1129_v16  ;;  %1459 = vmatpush.msrb.mxu1 %v1219_v6  ;;  %1532 = vmatpush.msra.mxu3 %v1307_v3  ;;  %v1245_v22 = vld [vmem:[#allocation3 + $0x1028] sm:$0xff]  ;;  %vm1142_vm10 = vweird.f32 %v2270_v20  ;;  %v1235_v53 = vld [vmem:[#allocation3 + $0xfd8] sm:$0xff] }
 0x55f   :  { %1482 = vmatpush.msrb.mxu0 %v1251_v8  ;;  %1510 = vmatpush.msrb.mxu2 %v1273_v9  ;;  %v1291_v60 = vld [vmem:[#allocation3 + $0x1198] sm:$0xff]  ;;  %v1257_v61 = vld [vmem:[#allocation3 + $0x1088] sm:$0xff] }
 0x560   :  { %v1133_v33 = vmul.f32 0.11111111, %v1131_v30  ;;  %1460 = vmatpush.msrb.mxu1 %v1217_v12  ;;  %1533 = vmatpush.msra.mxu3 %v1305_v10  ;;  %v1299_v30 = vld [vmem:[#allocation3 + $0x11d8] sm:$0xff]  ;;  %v1289_v2 = vld [vmem:[#allocation3 + $0x1188] sm:$0xff] }
 0x561   :  { %1483 = vmatpush.msrb.mxu0 %v1249_v13  ;;  %1511 = vmatpush.msrb.mxu2 %v1271_v14  ;;  %v1231_v6 = vld [vmem:[#allocation3 + $0xfb8] sm:$0xff]  ;;  %v1197_v8 = vld [vmem:[#allocation3 + $0xea8] sm:$0xff] }
 0x562   :  { %v2273_v38 = vadd.f32 1e-05, %v1133_v33  ;;  %1461 = vmatpush.msrb.mxu1 %v1215_v18  ;;  %1534 = vmatpush.msra.mxu3 %v1303_v15  ;;  %v1265_v33 = vld [vmem:[#allocation3 + $0x10c8] sm:$0xff] }
 0x563   :  { %1484 = vmatpush.msrb.mxu0 %v1247_v19  ;;  %1512 = vmatpush.msrb.mxu2 %v1269_v26  ;;  %v1229_v9 = vld [vmem:[#allocation3 + $0xfa8] sm:$0xff] }
 0x564   :  { %v2275_v43 = vpop.eup %2036  ;;  %2038 = vrsqrt.f32 %v2273_v38  ;;  %1462 = vmatpush.msrb.mxu1 %v1213_v21  ;;  %vm1152_vm8 = vweird.f32 %v2273_v38  ;;  %1535 = vmatpush.msra.mxu3 %v1301_v27  ;;  %v1193_v14 = vld [vmem:[#allocation3 + $0xe88] sm:$0xff] }
 0x565   :  { %v1137_v46 = vmul.f32 %v2275_v43, %v2270_v20  ;;  %1485 = vmatpush.msrb.mxu0 %v1245_v22  ;;  %vm1143_vm7 = vweird.f32 %v2275_v43  ;;  %1513 = vmatpush.msrb.mxu2 %v1267_v29  ;;  %v1225_v19 = vld [vmem:[#allocation3 + $0xf88] sm:$0xff] }
 0x566   :  { %1463 = vmatpush.msrb.mxu1 %v1211_v24  ;;  %1536 = vmatpush.msra.mxu3 %v1299_v30  ;;  %vm1144_vm11 = vmor %vm1142_vm10, %vm1143_vm7 }
 0x567   :  { %v1138_v56 = vmul.f32 %v2275_v43, %v1137_v46  ;;  %1486 = vmatpush.msrb.mxu0 %v1243_v25  ;;  %v1205_v46 = vld [vmem:[#allocation3 + $0xee8] sm:$0xff]  ;;  %1514 = vmatpush.msrb.mxu2 %v1265_v33 }
 0x568   :  { %1464 = vmatpush.msrb.mxu1 %v1209_v62  ;;  %1537 = vmatpush.msra.mxu3 %v1297_v34  ;;  %v1578_v62 = vld [vmem:[#allocation3 + $0x1378] sm:$0xff]  ;;  %v1579_v34 = vld [vmem:[#allocation3 + $0x1380] sm:$0xff] }
 0x569   :  { %v1139_v4 = vmul.f32 0.5, %v1138_v56  ;;  %1487 = vmatpush.msrb.mxu0 %v1241_v32 }
 0x56a   :  { %v2281_v1 = vpop.eup %2038  ;;  %1465 = vmatpush.msrb.mxu1 %v1207_v44  ;;  %1538 = vmatpush.msra.mxu3 %v1295_v39 }
 0x56b   :  { %v1147_v5 = vmul.f32 %v2281_v1, %v2273_v38  ;;  %v1140_v16 = vsub.f32 1.5, %v1139_v4  ;;  %vm1153_vm6 = vweird.f32 %v2281_v1  ;;  %v1263_v38 = vld [vmem:[#allocation3 + $0x10b8] sm:$0xff]  ;;  %1488 = vmatpush.msrb.mxu0 %v1239_v45  ;;  %v1575_v45 = vld [vmem:[#allocation3 + $0x1360] sm:$0xff] }
 0x56c   :  { %vm1154_vm9 = vmor %vm1152_vm8, %vm1153_vm6  ;;  %1515 = vmatpush.msrb.mxu2 %v1263_v38  ;;  %1466 = vmatpush.msrb.mxu1 %v1205_v46  ;;  %v1577_v38 = vld [vmem:[#allocation3 + $0x1370] sm:$0xff]  ;;  %v1611_v46 = vld [vmem:[#allocation3 + $0x1480] sm:$0xff] }
 0x56d   :  { %v1148_v11 = vmul.f32 %v2281_v1, %v1147_v5  ;;  %v1141_v31 = vmul.f32 %v2275_v43, %v1140_v16  ;;  %1489 = vmatpush.msrb.mxu0 %v1237_v47  ;;  %1539 = vmatpush.msra.mxu3 %v1293_v55  ;;  %v1199_v5 = vld [vmem:[#allocation3 + $0xeb8] sm:$0xff]  ;;  %v1573_v47 = vld [vmem:[#allocation3 + $0x1350] sm:$0xff] }
 0x56e   :  { %1516 = vmatpush.msrb.mxu2 %v1261_v54  ;;  %1467 = vmatpush.msrb.mxu1 %v1203_v49  ;;  %v1572_v49 = vld [vmem:[#allocation3 + $0x1348] sm:$0xff]  ;;  %v1610_v54 = vld [vmem:[#allocation3 + $0x1478] sm:$0xff] }
 0x56f   :  { %v1149_v17 = vmul.f32 0.5, %v1148_v11  ;;  %v1145_v40 = vsel %vm1144_vm11, %v2275_v43, %v1141_v31  ;;  %v1259_v43 = vld [vmem:[#allocation3 + $0x1098] sm:$0xff]  ;;  %1490 = vmatpush.msrb.mxu0 %v1235_v53  ;;  %1540 = vmatpush.msra.mxu3 %v1291_v60  ;;  %v1571_v53 = vld [vmem:[#allocation3 + $0x1340] sm:$0xff] }
 0x570   :  { %1517 = vmatpush.msrb.mxu2 %v1259_v43  ;;  %1468 = vmatpush.msrb.mxu1 %v1201_v58  ;;  %v1195_v11 = vld [vmem:[#allocation3 + $0xe98] sm:$0xff]  ;;  %v1607_v43 = vld [vmem:[#allocation3 + $0x1460] sm:$0xff] }
 0x571   :  { %v1150_v23 = vsub.f32 1.5, %v1149_v17  ;;  %1491 = vmatpush.msrb.mxu0 %v1233_v59  ;;  %1541 = vmatpush.msra.mxu3 %v1289_v2  ;;  %v1570_v55 = vld [vmem:[#allocation3 + $0x1338] sm:$0xff]  ;;  %v1567_v58 = vld [vmem:[#allocation3 + $0x1320] sm:$0xff]  ;;  %v1565_v59 = vld [vmem:[#allocation3 + $0x1310] sm:$0xff] }
 0x572   :  { %1518 = vmatpush.msrb.mxu2 %v1257_v61  ;;  %1469 = vmatpush.msrb.mxu1 %v1199_v5  ;;  %v1566_v60 = vld [vmem:[#allocation3 + $0x1318] sm:$0xff]  ;;  %v1563_v61 = vld [vmem:[#allocation3 + $0x1300] sm:$0xff]  ;;  %v1557_v5 = vld [vmem:[#allocation3 + $0x12d0] sm:$0xff] }
 0x573   :  { %v1151_v52 = vmul.f32 %v2281_v1, %v1150_v23  ;;  %1492 = vmatpush.msrb.mxu0 %v1231_v6  ;;  %v1562_v2 = vld [vmem:[#allocation3 + $0x12f8] sm:$0xff]  ;;  %v1605_v6 = vld [vmem:[#allocation3 + $0x1450] sm:$0xff] }
 0x574   :  { %1470 = vmatpush.msrb.mxu1 %v1197_v8  ;;  %v1558_v8 = vld [vmem:[#allocation3 + $0x12d8] sm:$0xff] }
 0x575   :  { %v1155_v36 = vsel %vm1154_vm9, %v2281_v1, %v1151_v52  ;;  %v1089_v1 = vld [vmem:[#allocation3 + $0xe70] ss:$8 sm:$0x3]  ;;  %1493 = vmatpush.msrb.mxu0 %v1229_v9  ;;  %v1580_v52 = vld [vmem:[#allocation3 + $0x1388] sm:$0xff] }
 0x576   :  { %v1158_v37 = vrot.slane %v1155_v36, 7  ;;  %1471 = vmatpush.msrb.mxu1 %v1195_v11  ;;  %v1606_v9 = vld [vmem:[#allocation3 + $0x1458] sm:$0xff]  ;;  %v1603_v11 = vld [vmem:[#allocation3 + $0x1440] sm:$0xff] }
 0x578   :  { %v1159_v20 = vsel %vm339_vm13, %v1145_v40, %v1158_v37  ;;  %1472 = vmatpush.msrb.mxu1 %v1193_v14  ;;  %v1574_v40 = vld [vmem:[#allocation3 + $0x1358] sm:$0xff] }
 0x579   :  { %v1161_v48 = vmul.f32 %v1159_v20, %v1087_v35  ;;  %v1576_v35 = vld [vmem:[#allocation3 + $0x1368] sm:$0xff]  ;;  %v1554_v14 = vld [vmem:[#allocation3 + $0x12b8] sm:$0xff] }
 0x57a   :  { %v1612_v20 = vld [vmem:[#allocation3 + $0x1488] sm:$0xff] }
 0x57b   :  { %v1163_v56 = vperm.slane %v1161_v48, 0  ;;  %v1164_v57 = vperm.slane %v1161_v48, 1  ;;  %v1609_v48 = vld [vmem:[#allocation3 + $0x1470] sm:$0xff] }
 0x57d   :  { %v1168_v63 = vmul.f32 %v1164_v57, %v2263_v28  ;;  %v1167_v3 = vmul.f32 %v1163_v56, %v2256_v7  ;;  %v1227_v28 = vld [vmem:[#allocation3 + $0xf98] sm:$0xff]  ;;  %v1175_v13 = vmul.f32 %v1163_v56, %v2244_v42  ;;  %v1176_v7 = vmul.f32 %v1164_v57, %v2251_v51 }
 0x57e   :  { %v1177_v15 = vmul.f32 %v1163_v56, %v2242_v41  ;;  %v1178_v16 = vmul.f32 %v1164_v57, %v2249_v50  ;;  %1494 = vmatpush.msrb.mxu0 %v1227_v28  ;;  %v1568_v56 = vld [vmem:[#allocation3 + $0x1328] sm:$0xff] }
 0x57f   :  { %v1171_v4 = vrot.slane %v1168_v63, 7  ;;  %v1608_v57 = vld [vmem:[#allocation3 + $0x1468] sm:$0xff] }
 0x580   :  { %1495 = vmatpush.msrb.mxu0 %v1225_v19  ;;  %v1564_v63 = vld [vmem:[#allocation3 + $0x1308] sm:$0xff] }
 0x581   :  { %v1172_v10 = vsel %vm339_vm13, %v1167_v3, %v1171_v4  ;;  %v1559_v3 = vld [vmem:[#allocation3 + $0x12e0] sm:$0xff]  ;;  %v1560_v4 = vld [vmem:[#allocation3 + $0x12e8] sm:$0xff] }
 0x582   :  { %v1174_v12 = vsub.f32 %v1089_v1, %v1172_v10  ;;  %v1561_v1 = vld [vmem:[#allocation3 + $0x12f0] sm:$0xff]  ;;  %v1555_v10 = vld [vmem:[#allocation3 + $0x12c0] sm:$0xff]  ;;  %v1556_v28 = vld [vmem:[#allocation3 + $0x12c8] sm:$0xff] }
 0x583   :  { %v1600_v19 = vld [vmem:[#allocation3 + $0x1428] sm:$0xff] }
 0x584   :  { %v1180_v17 = vperm.slane %v1174_v12, 0  ;;  %v1181_v18 = vperm.slane %v1174_v12, 1  ;;  %v1604_v12 = vld [vmem:[#allocation3 + $0x1448] sm:$0xff] }
 0x586   :  { %v1184_v21 = vadd.f32 %v1180_v17, %v1175_v13  ;;  %v1185_v22 = vadd.f32 %v1181_v18, %v1176_v7  ;;  %v1186_v23 = vadd.f32 %v1180_v17, %v1177_v15  ;;  %v1187_v24 = vadd.f32 %v1181_v18, %v1178_v16  ;;  %v1553_v13 = vld [vmem:[#allocation3 + $0x12b0] sm:$0xff]  ;;  %v1602_v15 = vld [vmem:[#allocation3 + $0x1438] sm:$0xff]  ;;  %v1551_v16 = vld [vmem:[#allocation3 + $0x12a0] sm:$0xff] }
 0x587   :  { %v1601_v7 = vld [vmem:[#allocation3 + $0x1430] sm:$0xff]  ;;  %v1599_v17 = vld [vmem:[#allocation3 + $0x1420] sm:$0xff]  ;;  %v1552_v18 = vld [vmem:[#allocation3 + $0x12a8] sm:$0xff] }
 0x588   :  { %v1188_v25 = vmax.f32 %v1184_v21, 0.0  ;;  %v1189_v42 = vmax.f32 %v1185_v22, 0.0  ;;  %v1190_v26 = vmax.f32 %v1186_v23, 0.0  ;;  %v1191_v51 = vmax.f32 %v1187_v24, 0.0  ;;  %v1549_v21 = vld [vmem:[#allocation3 + $0x1290] sm:$0xff]  ;;  %v1550_v23 = vld [vmem:[#allocation3 + $0x1298] sm:$0xff] }
 0x589   :  { %v1597_v22 = vld [vmem:[#allocation3 + $0x1410] sm:$0xff]  ;;  %v1598_v24 = vld [vmem:[#allocation3 + $0x1418] sm:$0xff] }
 0x58a   :  { %v1334_v27 = vrot.slane %v1188_v25, 7  ;;  %v1335_v29 = vrot.slane %v1189_v42, 7  ;;  %v1336_v41 = vrot.slane %v1190_v26, 7  ;;  %v1338_v30 = vrot.slane %v1191_v51, 7  ;;  %1350 = vst [vmem:[#allocation2 + $0x30] sm:$0x1] %v1190_v26  ;;  %1427 = vmatmul.f32.vlgmr.msra.gmra.mxu2 %v1188_v25  ;;  %1450 = vmatmul.f32.vlgmr.msrb.gmra.mxu3 %v1189_v42 }
 0x58b   :  { %1351 = vst [vmem:[#allocation2 + $0x38] sm:$0x1] %v1191_v51  ;;  %1666 = vmatpush.msra.mxu2 %v1580_v52  ;;  %1689 = vmatpush.msrb.mxu3 %v1612_v20  ;;  %v1593_v26 = vld [vmem:[#allocation3 + $0x13f0] sm:$0xff]  ;;  %v1594_v51 = vld [vmem:[#allocation3 + $0x13f8] sm:$0xff] }
 0x58c   :  { %v1337_v50 = vsel %vm339_vm13, %v1334_v27, %v1336_v41  ;;  %v1339_v31 = vsel %vm339_vm13, %v1335_v29, %v1338_v30  ;;  %1344 = vst [vmem:[#allocation2] sm:$0xfe] %v1334_v27  ;;  %v1591_v27 = vld [vmem:[#allocation3 + $0x13e0] sm:$0xff]  ;;  %v1589_v41 = vld [vmem:[#allocation3 + $0x13d0] sm:$0xff]  ;;  %v1590_v30 = vld [vmem:[#allocation3 + $0x13d8] sm:$0xff] }
 0x58d   :  { %1346 = vst [vmem:[#allocation2 + $0x20] sm:$0x3] %v1337_v50  ;;  %1667 = vmatpush.msra.mxu2 %v1578_v62  ;;  %1690 = vmatpush.msrb.mxu3 %v1610_v54  ;;  %v1587_v50 = vld [vmem:[#allocation3 + $0x13c0] sm:$0xff]  ;;  %v1585_v52 = vld [vmem:[#allocation3 + $0x13b0] sm:$0xff]  ;;  %v1586_v62 = vld [vmem:[#allocation3 + $0x13b8] sm:$0xff] }
 0x58e   :  { %1347 = vst [vmem:[#allocation2 + $0x28] sm:$0x3] %v1339_v31  ;;  %v1588_v31 = vld [vmem:[#allocation3 + $0x13c8] sm:$0xff] }
 0x58f   :  { %1345 = vst [vmem:[#allocation2 + $0x8] sm:$0xfe] %v1335_v29  ;;  %1668 = vmatpush.msra.mxu2 %v1576_v35  ;;  %1691 = vmatpush.msrb.mxu3 %v1608_v57  ;;  %v1592_v29 = vld [vmem:[#allocation3 + $0x13e8] sm:$0xff]  ;;  %v1581_v35 = vld [vmem:[#allocation3 + $0x1390] sm:$0xff] }
 0x591   :  { %v1358_v32 = vld [vmem:[#allocation2 + $0x30] sm:$0x3]  ;;  %1669 = vmatpush.msra.mxu2 %v1574_v40  ;;  %1692 = vmatpush.msrb.mxu3 %v1606_v9 }
 0x592   :  { %1430 = vmatmul.f32.gmra.mxu2 %v1358_v32  ;;  %1889 = vst [vmem:[#allocation2 + $0x30] sm:$0x7] %v2073_v0  ;;  %v1359_v33 = vld [vmem:[#allocation2 + $0x38] sm:$0x3] }
 0x593   :  { %v1352_v36 = vld [vmem:[#allocation2] sm:$0xff]  ;;  %1453 = vmatmul.f32.gmra.mxu3 %v1359_v33  ;;  %1890 = vst [vmem:[#allocation2 + $0x38] sm:$0x7] %v2073_v0  ;;  %1670 = vmatpush.msra.mxu2 %v1572_v49 }
 0x594   :  { %1381 = vmatmul.f32.vlgmr.msra.gmra.mxu1 %v1352_v36  ;;  %1883 = vst [vmem:[#allocation2] sm:$0xff] %v2073_v0  ;;  %v2311_v37 = vld [vmem:[#allocation2 + $0x20] sm:$0x3]  ;;  %1693 = vmatpush.msrb.mxu3 %v1604_v12 }
 0x595   :  { %1887 = vst [vmem:[#allocation2 + $0x20] sm:$0x7] %v2073_v0  ;;  %v1357_v39 = vld [vmem:[#allocation2 + $0x28] sm:$0x3]  ;;  %1620 = vmatpush.msra.mxu1 %v1579_v34  ;;  %1671 = vmatpush.msra.mxu2 %v1570_v55 }
 0x596   :  { %v1353_v44 = vld [vmem:[#allocation2 + $0x8] sm:$0xff]  ;;  %1888 = vst [vmem:[#allocation2 + $0x28] sm:$0x7] %v2073_v0  ;;  %1694 = vmatpush.msrb.mxu3 %v1602_v15 }
 0x597   :  { %1404 = vmatmul.f32.vlgmr.msra.gmra.mxu0 %v1353_v44  ;;  %1884 = vst [vmem:[#allocation2 + $0x8] sm:$0xff] %v2073_v0  ;;  %1621 = vmatpush.msra.mxu1 %v1577_v38  ;;  %v1569_v0 = vld [vmem:[#allocation3 + $0x1330] sm:$0xff]  ;;  %v1321_v34 = vld [vmem:[#allocation3 + $0x1280] ss:$8 sm:$0x3] }
 0x598   :  { %1643 = vmatpush.msra.mxu0 %v1611_v46  ;;  %1672 = vmatpush.msra.mxu2 %v1568_v56 }
 0x599   :  { %1622 = vmatpush.msra.mxu1 %v1575_v45  ;;  %1695 = vmatpush.msrb.mxu3 %v1600_v19 }
 0x59a   :  { %1519 = vmatmul.f32.vlgmr.msrb.gmra.mxu2 %v1188_v25  ;;  %1644 = vmatpush.msra.mxu0 %v1609_v48  ;;  %v1595_v25 = vld [vmem:[#allocation3 + $0x1400] sm:$0xff] }
 0x59b   :  { %1542 = vmatmul.f32.vlgmr.msra.gmra.mxu3 %v1189_v42  ;;  %1623 = vmatpush.msra.mxu1 %v1573_v47  ;;  %v1596_v42 = vld [vmem:[#allocation3 + $0x1408] sm:$0xff] }
 0x59c   :  { %1384 = vmatmul.f32.gmra.mxu1 %v2311_v37  ;;  %1645 = vmatpush.msra.mxu0 %v1607_v43 }
 0x59d   :  { %1624 = vmatpush.msra.mxu1 %v1571_v53  ;;  %1673 = vmatpush.msra.mxu2 %v1566_v60 }
 0x59e   :  { %1646 = vmatpush.msra.mxu0 %v1605_v6  ;;  %1696 = vmatpush.msrb.mxu3 %v1598_v24 }
 0x59f   :  { %1407 = vmatmul.f32.gmra.mxu0 %v1357_v39  ;;  %1625 = vmatpush.msra.mxu1 %v1569_v0  ;;  %v1362_v0 = vperm.slane %v1321_v34, 1 }
 0x5a0   :  { %1674 = vmatpush.msra.mxu2 %v1564_v63  ;;  %1647 = vmatpush.msra.mxu0 %v1603_v11 }
 0x5a1   :  { %1626 = vmatpush.msra.mxu1 %v1567_v58  ;;  %1697 = vmatpush.msrb.mxu3 %v1596_v42 }
 0x5a2   :  { %1522 = vmatmul.f32.gmra.mxu2 %v1358_v32  ;;  %1648 = vmatpush.msra.mxu0 %v1601_v7  ;;  %v1583_v32 = vld [vmem:[#allocation3 + $0x13a0] sm:$0xff] }
 0x5a3   :  { %1545 = vmatmul.f32.gmra.mxu3 %v1359_v33  ;;  %1627 = vmatpush.msra.mxu1 %v1565_v59  ;;  %v1584_v33 = vld [vmem:[#allocation3 + $0x13a8] sm:$0xff] }
 0x5a4   :  { %1473 = vmatmul.f32.vlgmr.msrb.gmra.mxu1 %v1352_v36  ;;  %1675 = vmatpush.msra.mxu2 %v1562_v2  ;;  %v1582_v36 = vld [vmem:[#allocation3 + $0x1398] sm:$0xff] }
 0x5a5   :  { %1628 = vmatpush.msra.mxu1 %v1563_v61  ;;  %1649 = vmatpush.msra.mxu0 %v1599_v17 }
 0x5a6   :  { %1676 = vmatpush.msra.mxu2 %v1560_v4  ;;  %1698 = vmatpush.msrb.mxu3 %v1594_v51 }
 0x5a7   :  { %1496 = vmatmul.f32.vlgmr.msrb.gmra.mxu0 %v1353_v44  ;;  %1629 = vmatpush.msra.mxu1 %v1561_v1 }
 0x5a8   :  { %1677 = vmatpush.msra.mxu2 %v1558_v8  ;;  %1650 = vmatpush.msra.mxu0 %v1597_v22 }
 0x5a9   :  { %1630 = vmatpush.msra.mxu1 %v1559_v3  ;;  %1699 = vmatpush.msrb.mxu3 %v1592_v29 }
 0x5aa   :  { %1678 = vmatpush.msra.mxu2 %v1556_v28  ;;  %1651 = vmatpush.msra.mxu0 %v1595_v25 }
 0x5ab   :  { %1631 = vmatpush.msra.mxu1 %v1557_v5  ;;  %1700 = vmatpush.msrb.mxu3 %v1590_v30 }
 0x5ac   :  { %1476 = vmatmul.f32.gmra.mxu1 %v2311_v37  ;;  %1679 = vmatpush.msra.mxu2 %v1554_v14  ;;  %v1361_v37 = vperm.slane %v1321_v34, 0  ;;  %v1614_v14 = vld [vmem:[#allocation3 + $0x1490] ss:$8 sm:$0x3] }
 0x5ad   :  { %1632 = vmatpush.msra.mxu1 %v1555_v10  ;;  %1652 = vmatpush.msra.mxu0 %v1593_v26  ;;  %v1616_v15 = vperm.slane %v1614_v14, 0 }
 0x5ae   :  { %1680 = vmatpush.msra.mxu2 %v1552_v18  ;;  %1701 = vmatpush.msrb.mxu3 %v1588_v31 }
 0x5af   :  { %1499 = vmatmul.f32.gmra.mxu0 %v1357_v39  ;;  %1633 = vmatpush.msra.mxu1 %v1553_v13 }
 0x5b0   :  { %1681 = vmatpush.msra.mxu2 %v1550_v23  ;;  %1653 = vmatpush.msra.mxu0 %v1591_v27  ;;  %v1617_v23 = vperm.slane %v1614_v14, 1  ;;  %v1861_v14 = vld [vmem:[#allocation3 + $0x1770] sm:$0xff] }
 0x5b1   :  { %1634 = vmatpush.msra.mxu1 %v1551_v16  ;;  %1702 = vmatpush.msrb.mxu3 %v1586_v62 }
 0x5b2   :  { %1654 = vmatpush.msra.mxu0 %v1589_v41 }
 0x5b3   :  { %1635 = vmatpush.msra.mxu1 %v1549_v21  ;;  %1703 = vmatpush.msrb.mxu3 %v1584_v33 }
 0x5b4   :  { %1655 = vmatpush.msra.mxu0 %v1587_v50 }
 0x5b5   :  { %1704 = vmatpush.msrb.mxu3 %v1582_v36 }
 0x5b6   :  { %1656 = vmatpush.msra.mxu0 %v1585_v52 }
 0x5b8   :  { %1657 = vmatpush.msra.mxu0 %v1583_v32 }
 0x5ba   :  { %1658 = vmatpush.msra.mxu0 %v1581_v35 }
 0x60d   :  { %v1428_v38 = vpop.f32.mrf.mxu2  ;;  %v1451_v44 = vpop.f32.mrf.mxu3 }
 0x611   :  { %v1382_v39 = vpop.f32.mrf.mxu1 }
 0x612   :  { %v1383_v40 = vadd.f32 %v1382_v39, %v1361_v37 }
 0x614   :  { %v1405_v45 = vpop.f32.mrf.mxu0 }
 0x615   :  { %v1406_v46 = vadd.f32 %v1405_v45, %v1383_v40  ;;  %v1431_v53 = vpop.f32.mrf.mxu2 }
 0x616   :  { %v1454_v55 = vpop.f32.mrf.mxu3 }
 0x617   :  { %v1429_v20 = vadd.f32 %v1428_v38, %v1406_v46 }
 0x619   :  { %v1452_v47 = vadd.f32 %v1451_v44, %v1429_v20  ;;  %v1385_v48 = vpop.f32.mrf.mxu1 }
 0x61a   :  { %v1386_v49 = vadd.f32 %v1385_v48, %v1361_v37 }
 0x61b   :  { %1636 = vmatmul.f32.vlgmr.msra.gmra.mxu1 %v1452_v47  ;;  %1682 = vmatmul.f32.vlgmr.msra.gmra.mxu2 %v1452_v47 }
 0x61c   :  { %v1408_v54 = vpop.f32.mrf.mxu0 }
 0x61d   :  { %v1409_v43 = vadd.f32 %v1408_v54, %v1386_v49  ;;  %v1520_v61 = vpop.f32.mrf.mxu2 }
 0x61e   :  { %v1543_v1 = vpop.f32.mrf.mxu3 }
 0x61f   :  { %v1432_v56 = vadd.f32 %v1431_v53, %v1409_v43 }
 0x621   :  { %v1455_v57 = vadd.f32 %v1454_v55, %v1432_v56  ;;  %v1474_v58 = vpop.f32.mrf.mxu1 }
 0x622   :  { %v1475_v59 = vadd.f32 %v1474_v58, %v1362_v0 }
 0x623   :  { %1639 = vmatmul.f32.gmra.mxu1 %v1455_v57  ;;  %1685 = vmatmul.f32.gmra.mxu2 %v1455_v57 }
 0x624   :  { %v1497_v60 = vpop.f32.mrf.mxu0 }
 0x625   :  { %v1498_v63 = vadd.f32 %v1497_v60, %v1475_v59  ;;  %v1523_v9 = vpop.f32.mrf.mxu2 }
 0x626   :  { %v1546_v11 = vpop.f32.mrf.mxu3 }
 0x627   :  { %v1521_v2 = vadd.f32 %v1520_v61, %v1498_v63  ;;  %v1865_v61 = vld [vmem:[#allocation3 + $0x17b0] sm:$0xff] }
 0x628   :  { %v1881_v63 = vld [vmem:[#allocation3 + $0x18b0] sm:$0xff]  ;;  %1967 = vmatpush.msrb.mxu2 %v1865_v61 }
 0x629   :  { %v1544_v3 = vadd.f32 %v1543_v1, %v1521_v2  ;;  %v1477_v4 = vpop.f32.mrf.mxu1  ;;  %1990 = vmatpush.msra.mxu3 %v1881_v63  ;;  %v1869_v63 = vld [vmem:[#allocation3 + $0x17f0] sm:$0xff] }
 0x62a   :  { %v1478_v5 = vadd.f32 %v1477_v4, %v1362_v0  ;;  %v1880_v4 = vld [vmem:[#allocation3 + $0x18a0] sm:$0xff] }
 0x62b   :  { %1659 = vmatmul.f32.vlgmr.msra.gmra.mxu0 %v1544_v3  ;;  %1705 = vmatmul.f32.vlgmr.msrb.gmra.mxu3 %v1544_v3  ;;  %v1864_v3 = vld [vmem:[#allocation3 + $0x17a0] sm:$0xff] }
 0x62c   :  { %v1500_v6 = vpop.f32.mrf.mxu0  ;;  %1968 = vmatpush.msrb.mxu2 %v1864_v3  ;;  %1991 = vmatpush.msra.mxu3 %v1880_v4  ;;  %v1825_v3 = vld [vmem:[#allocation3 + $0x1530] sm:$0xff] }
 0x62d   :  { %v1501_v8 = vadd.f32 %v1500_v6, %v1478_v5  ;;  %v1841_v4 = vld [vmem:[#allocation3 + $0x1630] sm:$0xff] }
 0x62f   :  { %v1524_v10 = vadd.f32 %v1523_v9, %v1501_v8  ;;  %v1863_v8 = vld [vmem:[#allocation3 + $0x1790] sm:$0xff] }
 0x630   :  { %v1879_v9 = vld [vmem:[#allocation3 + $0x1890] sm:$0xff]  ;;  %1969 = vmatpush.msrb.mxu2 %v1863_v8 }
 0x631   :  { %v1547_v28 = vadd.f32 %v1546_v11, %v1524_v10  ;;  %1992 = vmatpush.msra.mxu3 %v1879_v9  ;;  %v1824_v9 = vld [vmem:[#allocation3 + $0x1520] sm:$0xff] }
 0x633   :  { %1662 = vmatmul.f32.gmra.mxu0 %v1547_v28  ;;  %1708 = vmatmul.f32.gmra.mxu3 %v1547_v28  ;;  %v1862_v28 = vld [vmem:[#allocation3 + $0x1780] sm:$0xff] }
 0x634   :  { %1970 = vmatpush.msrb.mxu2 %v1862_v28  ;;  %v1867_v28 = vld [vmem:[#allocation3 + $0x17d0] sm:$0xff] }
 0x636   :  { %1971 = vmatpush.msrb.mxu2 %v1861_v14  ;;  %v1839_v14 = vld [vmem:[#allocation3 + $0x1610] sm:$0xff] }
 0x698   :  { %v1637_v12 = vpop.f32.mrf.mxu1 }
 0x699   :  { %v1638_v19 = vadd.f32 %v1637_v12, %v1616_v15  ;;  %v1878_v12 = vld [vmem:[#allocation3 + $0x1880] sm:$0xff] }
 0x69a   :  { %1993 = vmatpush.msra.mxu3 %v1878_v12 }
 0x69e   :  { %v1683_v13 = vpop.f32.mrf.mxu2 }
 0x69f   :  { %v1684_v27 = vadd.f32 %v1683_v13, %v1617_v23 }
 0x6a0   :  { %v1640_v16 = vpop.f32.mrf.mxu1 }
 0x6a1   :  { %v1641_v18 = vadd.f32 %v1640_v16, %v1616_v15  ;;  %v1877_v15 = vld [vmem:[#allocation3 + $0x1870] sm:$0xff] }
 0x6a2   :  { %1994 = vmatpush.msra.mxu3 %v1877_v15  ;;  %v1850_v15 = vld [vmem:[#allocation3 + $0x16c0] sm:$0xff] }
 0x6a6   :  { %v1686_v24 = vpop.f32.mrf.mxu2 }
 0x6a7   :  { %v1687_v51 = vadd.f32 %v1686_v24, %v1617_v23  ;;  %v1876_v24 = vld [vmem:[#allocation3 + $0x1860] sm:$0xff] }
 0x6a8   :  { %v1660_v7 = vpop.f32.mrf.mxu0  ;;  %1995 = vmatpush.msra.mxu3 %v1876_v24  ;;  %v1837_v24 = vld [vmem:[#allocation3 + $0x15f0] sm:$0xff] }
 0x6a9   :  { %v2320_v25 = vadd.f32 %v1660_v7, %v1638_v19  ;;  %v1849_v19 = vld [vmem:[#allocation3 + $0x16b0] sm:$0xff] }
 0x6aa   :  { %1944 = vmatpush.msrb.mxu0 %v1849_v19  ;;  %v1822_v19 = vld [vmem:[#allocation3 + $0x1500] sm:$0xff] }
 0x6ae   :  { %v1706_v17 = vpop.f32.mrf.mxu3 }
 0x6af   :  { %v2327_v50 = vadd.f32 %v1706_v17, %v1684_v27 }
 0x6b0   :  { %v1663_v21 = vpop.f32.mrf.mxu0 }
 0x6b1   :  { %v2318_v22 = vadd.f32 %v1663_v21, %v1641_v18  ;;  %v1833_v18 = vld [vmem:[#allocation3 + $0x15b0] sm:$0xff]  ;;  %v1860_v21 = vld [vmem:[#allocation3 + $0x1760] sm:$0xff] }
 0x6b2   :  { %1921 = vmatpush.msrb.mxu1 %v1833_v18  ;;  %1972 = vmatpush.msrb.mxu2 %v1860_v21  ;;  %v1838_v21 = vld [vmem:[#allocation3 + $0x1600] sm:$0xff] }
 0x6b3   :  { %v1716_v42 = vsel %vm133_vm3, %v2318_v22, 0.0 }
 0x6b4   :  { %v1717_v26 = vadd.f32 %v1716_v42, %v2320_v25  ;;  %v1832_v42 = vld [vmem:[#allocation3 + $0x15a0] sm:$0xff] }
 0x6b5   :  { %1922 = vmatpush.msrb.mxu1 %v1832_v42 }
 0x6b6   :  { %v1718_v29 = vrot.slane %v1717_v26, 4  ;;  %v1709_v41 = vpop.f32.mrf.mxu3 }
 0x6b7   :  { %v2325_v30 = vadd.f32 %v1709_v41, %v1687_v51  ;;  %v1859_v51 = vld [vmem:[#allocation3 + $0x1750] sm:$0xff] }
 0x6b8   :  { %v1719_v31 = vadd.f32 %v1718_v29, %v1717_v26  ;;  %v1848_v26 = vld [vmem:[#allocation3 + $0x16a0] sm:$0xff]  ;;  %v1875_v29 = vld [vmem:[#allocation3 + $0x1850] sm:$0xff]  ;;  %1973 = vmatpush.msrb.mxu2 %v1859_v51 }
 0x6b9   :  { %v1724_v52 = vsel %vm133_vm3, %v2325_v30, 0.0  ;;  %1945 = vmatpush.msrb.mxu0 %v1848_v26  ;;  %v1831_v41 = vld [vmem:[#allocation3 + $0x1590] sm:$0xff]  ;;  %1996 = vmatpush.msra.mxu3 %v1875_v29  ;;  %v1820_v51 = vld [vmem:[#allocation3 + $0x14e0] sm:$0xff] }
 0x6ba   :  { %v1720_v62 = vrot.slane %v1719_v31, 2  ;;  %v1725_v32 = vadd.f32 %v1724_v52, %v2327_v50  ;;  %v1858_v52 = vld [vmem:[#allocation3 + $0x1740] sm:$0xff]  ;;  %1923 = vmatpush.msrb.mxu1 %v1831_v41  ;;  %v1819_v41 = vld [vmem:[#allocation3 + $0x14d0] sm:$0xff] }
 0x6bb   :  { %1974 = vmatpush.msrb.mxu2 %v1858_v52  ;;  %v1713_v52 = vld [vmem:[#allocation3 + $0x14a0] ss:$8 sm:$0x3] }
 0x6bc   :  { %v1721_v33 = vadd.f32 %v1720_v62, %v1719_v31  ;;  %v1726_v34 = vrot.slane %v1725_v32, 4  ;;  %v1847_v31 = vld [vmem:[#allocation3 + $0x1690] sm:$0xff] }
 0x6bd   :  { %1946 = vmatpush.msrb.mxu0 %v1847_v31  ;;  %v1835_v31 = vld [vmem:[#allocation3 + $0x15d0] sm:$0xff] }
 0x6be   :  { %v1722_v35 = vrot.slane %v1721_v33, 1  ;;  %v1727_v36 = vadd.f32 %v1726_v34, %v1725_v32  ;;  %v1874_v32 = vld [vmem:[#allocation3 + $0x1840] sm:$0xff] }
 0x6bf   :  { %v1846_v34 = vld [vmem:[#allocation3 + $0x1680] sm:$0xff]  ;;  %1997 = vmatpush.msra.mxu3 %v1874_v32 }
 0x6c0   :  { %v1723_v37 = vadd.f32 %v1722_v35, %v1721_v33  ;;  %v1728_v38 = vrot.slane %v1727_v36, 2  ;;  %v1830_v33 = vld [vmem:[#allocation3 + $0x1580] sm:$0xff]  ;;  %v1857_v35 = vld [vmem:[#allocation3 + $0x1730] sm:$0xff]  ;;  %1947 = vmatpush.msrb.mxu0 %v1846_v34 }
 0x6c1   :  { %1924 = vmatpush.msrb.mxu1 %v1830_v33  ;;  %1975 = vmatpush.msrb.mxu2 %v1857_v35  ;;  %v1818_v33 = vld [vmem:[#allocation3 + $0x14c0] sm:$0xff] }
 0x6c2   :  { %v2332_v39 = vmul.f32 0.1, %v1723_v37  ;;  %v1729_v40 = vadd.f32 %v1728_v38, %v1727_v36  ;;  %v1873_v37 = vld [vmem:[#allocation3 + $0x1830] sm:$0xff]  ;;  %v1834_v34 = vld [vmem:[#allocation3 + $0x15c0] sm:$0xff] }
 0x6c3   :  { %1998 = vmatpush.msra.mxu3 %v1873_v37 }
 0x6c4   :  { %v1734_v44 = vsub.f32 %v2320_v25, %v2332_v39  ;;  %v1736_v45 = vsub.f32 %v2318_v22, %v2332_v39  ;;  %v1730_v46 = vrot.slane %v1729_v40, 1 }
 0x6c6   :  { %v1738_v20 = vmul.f32 %v1734_v44, %v1734_v44  ;;  %v1740_v47 = vmul.f32 %v1736_v45, %v1736_v45  ;;  %v1731_v48 = vadd.f32 %v1730_v46, %v1729_v40  ;;  %v1829_v40 = vld [vmem:[#allocation3 + $0x1570] sm:$0xff]  ;;  %v1856_v45 = vld [vmem:[#allocation3 + $0x1720] sm:$0xff] }
 0x6c7   :  { %v1845_v44 = vld [vmem:[#allocation3 + $0x1670] sm:$0xff]  ;;  %1925 = vmatpush.msrb.mxu1 %v1829_v40  ;;  %1976 = vmatpush.msrb.mxu2 %v1856_v45 }
 0x6c8   :  { %v1742_v49 = vsel %vm133_vm3, %v1740_v47, 0.0  ;;  %v2339_v54 = vmul.f32 0.1, %v1731_v48  ;;  %1948 = vmatpush.msrb.mxu0 %v1845_v44  ;;  %v1828_v47 = vld [vmem:[#allocation3 + $0x1560] sm:$0xff] }
 0x6c9   :  { %v1743_v53 = vadd.f32 %v1742_v49, %v1738_v20  ;;  %v1872_v20 = vld [vmem:[#allocation3 + $0x1820] sm:$0xff]  ;;  %1926 = vmatpush.msrb.mxu1 %v1828_v47  ;;  %v1855_v49 = vld [vmem:[#allocation3 + $0x1710] sm:$0xff] }
 0x6ca   :  { %v1735_v43 = vsub.f32 %v2327_v50, %v2339_v54  ;;  %v1737_v0 = vsub.f32 %v2325_v30, %v2339_v54  ;;  %v1844_v48 = vld [vmem:[#allocation3 + $0x1660] sm:$0xff]  ;;  %1999 = vmatpush.msra.mxu3 %v1872_v20  ;;  %1977 = vmatpush.msrb.mxu2 %v1855_v49  ;;  %v1715_v44 = vld [vmem:[#allocation3 + $0x14b0] ss:$8 sm:$0x3] }
 0x6cb   :  { %v1744_v55 = vrot.slane %v1743_v53, 4  ;;  %1949 = vmatpush.msrb.mxu0 %v1844_v48 }
 0x6cc   :  { %v1739_v57 = vmul.f32 %v1735_v43, %v1735_v43  ;;  %v1741_v58 = vmul.f32 %v1737_v0, %v1737_v0  ;;  %v1827_v43 = vld [vmem:[#allocation3 + $0x1550] sm:$0xff] }
 0x6cd   :  { %v1745_v56 = vadd.f32 %v1744_v55, %v1743_v53  ;;  %v1871_v53 = vld [vmem:[#allocation3 + $0x1810] sm:$0xff]  ;;  %1927 = vmatpush.msrb.mxu1 %v1827_v43 }
 0x6ce   :  { %v1750_v60 = vsel %vm133_vm3, %v1741_v58, 0.0  ;;  %v1843_v0 = vld [vmem:[#allocation3 + $0x1650] sm:$0xff]  ;;  %2000 = vmatpush.msra.mxu3 %v1871_v53  ;;  %v1826_v58 = vld [vmem:[#allocation3 + $0x1540] sm:$0xff] }
 0x6cf   :  { %v1746_v59 = vrot.slane %v1745_v56, 2  ;;  %v1751_v1 = vadd.f32 %v1750_v60, %v1739_v57  ;;  %1950 = vmatpush.msrb.mxu0 %v1843_v0  ;;  %v1870_v57 = vld [vmem:[#allocation3 + $0x1800] sm:$0xff]  ;;  %v1853_v60 = vld [vmem:[#allocation3 + $0x16f0] sm:$0xff]  ;;  %1928 = vmatpush.msrb.mxu1 %v1826_v58 }
 0x6d0   :  { %2001 = vmatpush.msra.mxu3 %v1870_v57 }
 0x6d1   :  { %v1747_v2 = vadd.f32 %v1746_v59, %v1745_v56  ;;  %v1752_v5 = vrot.slane %v1751_v1, 4  ;;  %v1854_v56 = vld [vmem:[#allocation3 + $0x1700] sm:$0xff]  ;;  %1929 = vmatpush.msrb.mxu1 %v1825_v3 }
 0x6d2   :  { %v1842_v59 = vld [vmem:[#allocation3 + $0x1640] sm:$0xff]  ;;  %1978 = vmatpush.msrb.mxu2 %v1854_v56  ;;  %2002 = vmatpush.msra.mxu3 %v1869_v63 }
 0x6d3   :  { %v1748_v6 = vrot.slane %v1747_v2, 1  ;;  %v1753_v10 = vadd.f32 %v1752_v5, %v1751_v1  ;;  %1951 = vmatpush.msrb.mxu0 %v1842_v59  ;;  %v1852_v5 = vld [vmem:[#allocation3 + $0x16e0] sm:$0xff]  ;;  %1930 = vmatpush.msrb.mxu1 %v1824_v9 }
 0x6d4   :  { %1979 = vmatpush.msrb.mxu2 %v1853_v60 }
 0x6d5   :  { %v1749_v11 = vadd.f32 %v1748_v6, %v1747_v2  ;;  %v1754_v13 = vrot.slane %v1753_v10, 2  ;;  %1952 = vmatpush.msrb.mxu0 %v1841_v4  ;;  %v1868_v6 = vld [vmem:[#allocation3 + $0x17e0] sm:$0xff] }
 0x6d6   :  { %1980 = vmatpush.msrb.mxu2 %v1852_v5  ;;  %2003 = vmatpush.msra.mxu3 %v1868_v6 }
 0x6d7   :  { %v1758_v7 = vmul.f32 0.1, %v1749_v11  ;;  %v1755_v16 = vadd.f32 %v1754_v13, %v1753_v10  ;;  %v1840_v10 = vld [vmem:[#allocation3 + $0x1620] sm:$0xff]  ;;  %v1851_v11 = vld [vmem:[#allocation3 + $0x16d0] sm:$0xff] }
 0x6d8   :  { %1953 = vmatpush.msrb.mxu0 %v1840_v10  ;;  %1981 = vmatpush.msrb.mxu2 %v1851_v11 }
 0x6d9   :  { %v2346_v17 = vadd.f32 1e-05, %v1758_v7  ;;  %v1756_v23 = vrot.slane %v1755_v16, 1  ;;  %v1823_v7 = vld [vmem:[#allocation3 + $0x1510] sm:$0xff]  ;;  %2004 = vmatpush.msra.mxu3 %v1867_v28 }
 0x6da   :  { %1931 = vmatpush.msrb.mxu1 %v1823_v7  ;;  %1954 = vmatpush.msrb.mxu0 %v1839_v14 }
 0x6db   :  { %2040 = vrsqrt.f32 %v2346_v17  ;;  %v1757_v27 = vadd.f32 %v1756_v23, %v1755_v16  ;;  %v1866_v16 = vld [vmem:[#allocation3 + $0x17c0] sm:$0xff]  ;;  %v1821_v23 = vld [vmem:[#allocation3 + $0x14f0] sm:$0xff]  ;;  %1982 = vmatpush.msrb.mxu2 %v1850_v15  ;;  %vm1768_vm0 = vweird.f32 %v2346_v17 }
 0x6dc   :  { %2005 = vmatpush.msra.mxu3 %v1866_v16  ;;  %1932 = vmatpush.msrb.mxu1 %v1822_v19 }
 0x6dd   :  { %v1759_v62 = vmul.f32 0.1, %v1757_v27  ;;  %1955 = vmatpush.msrb.mxu0 %v1838_v21  ;;  %v1836_v27 = vld [vmem:[#allocation3 + $0x15e0] sm:$0xff] }
 0x6de   :  { %1933 = vmatpush.msrb.mxu1 %v1821_v23 }
 0x6df   :  { %v2349_v36 = vadd.f32 1e-05, %v1759_v62  ;;  %1956 = vmatpush.msrb.mxu0 %v1837_v24 }
 0x6e0   :  { %1934 = vmatpush.msrb.mxu1 %v1820_v51 }
 0x6e1   :  { %v2351_v38 = vpop.eup %2040  ;;  %2042 = vrsqrt.f32 %v2349_v36  ;;  %vm1778_vm14 = vweird.f32 %v2349_v36  ;;  %1957 = vmatpush.msrb.mxu0 %v1836_v27 }
 0x6e2   :  { %v1763_v46 = vmul.f32 %v2351_v38, %v2346_v17  ;;  %vm1769_vm12 = vweird.f32 %v2351_v38  ;;  %1935 = vmatpush.msrb.mxu1 %v1819_v41 }
 0x6e3   :  { %vm1770_vm1 = vmor %vm1768_vm0, %vm1769_vm12  ;;  %1958 = vmatpush.msrb.mxu0 %v1835_v31 }
 0x6e4   :  { %v1764_v55 = vmul.f32 %v2351_v38, %v1763_v46  ;;  %1936 = vmatpush.msrb.mxu1 %v1818_v33 }
 0x6e5   :  { %1959 = vmatpush.msrb.mxu0 %v1834_v34 }
 0x6e6   :  { %v1765_v1 = vmul.f32 0.5, %v1764_v55 }
 0x6e7   :  { %v2043_v61 = vpop.eup %2042 }
 0x6e8   :  { %v1773_v2 = vmul.f32 %v2043_v61, %v2349_v36  ;;  %v1766_v12 = vsub.f32 1.5, %v1765_v1  ;;  %vm1779_vm3 = vweird.f32 %v2043_v61 }
 0x6e9   :  { %vm1780_vm15 = vmor %vm1778_vm14, %vm1779_vm3 }
 0x6ea   :  { %v1774_v8 = vmul.f32 %v2043_v61, %v1773_v2  ;;  %v1767_v42 = vmul.f32 %v2351_v38, %v1766_v12 }
 0x6ec   :  { %v1775_v13 = vmul.f32 0.5, %v1774_v8  ;;  %v1771_v32 = vsel %vm1770_vm1, %v2351_v38, %v1767_v42  ;;  %v1882_v8 = vld [vmem:[#allocation3 + $0x18c0] ss:$0 sm:$0xff] }
 0x6ee   :  { %v1776_v18 = vsub.f32 1.5, %v1775_v13 }
 0x6f0   :  { %v1777_v26 = vmul.f32 %v2043_v61, %v1776_v18 }
 0x6f2   :  { %v1781_v29 = vsel %vm1780_vm15, %v2043_v61, %v1777_v26 }
 0x6f3   :  { %v1784_v62 = vrot.slane %v1781_v29, 7 }
 0x6f5   :  { %v1785_v35 = vsel %vm339_vm13, %v1771_v32, %v1784_v62 }
 0x6f6   :  { %v1787_v36 = vmul.f32 %v1785_v35, %v1713_v52 }
 0x6f8   :  { %v1789_v17 = vperm.slane %v1787_v36, 0  ;;  %v1790_v37 = vperm.slane %v1787_v36, 1 }
 0x6fa   :  { %v1794_v40 = vmul.f32 %v1790_v37, %v2339_v54  ;;  %v1793_v45 = vmul.f32 %v1789_v17, %v2332_v39  ;;  %v1801_v47 = vmul.f32 %v1789_v17, %v2320_v25  ;;  %v1802_v48 = vmul.f32 %v1790_v37, %v2327_v50 }
 0x6fb   :  { %v1803_v49 = vmul.f32 %v1789_v17, %v2318_v22  ;;  %v1804_v53 = vmul.f32 %v1790_v37, %v2325_v30 }
 0x6fc   :  { %v1797_v46 = vrot.slane %v1794_v40, 7 }
 0x6fe   :  { %v1798_v20 = vsel %vm339_vm13, %v1793_v45, %v1797_v46 }
 0x6ff   :  { %v1800_v38 = vsub.f32 %v1715_v44, %v1798_v20 }
 0x701   :  { %v1806_v55 = vperm.slane %v1800_v38, 0  ;;  %v1807_v43 = vperm.slane %v1800_v38, 1 }
 0x703   :  { %v1810_v0 = vadd.f32 %v1806_v55, %v1801_v47  ;;  %v1811_v56 = vadd.f32 %v1807_v43, %v1802_v48  ;;  %v1812_v54 = vadd.f32 %v1806_v55, %v1803_v49  ;;  %v1813_v57 = vadd.f32 %v1807_v43, %v1804_v53 }
 0x705   :  { %v1814_v58 = vmax.f32 %v1810_v0, 0.0  ;;  %v1815_v39 = vmax.f32 %v1811_v56, 0.0  ;;  %v1816_v59 = vmax.f32 %v1812_v54, 0.0  ;;  %v1817_v60 = vmax.f32 %v1813_v57, 0.0 }
 0x707   :  { %v1895_v61 = vrot.slane %v1814_v58, 7  ;;  %v1896_v63 = vrot.slane %v1815_v39, 7  ;;  %v1897_v1 = vrot.slane %v1816_v59, 7  ;;  %v1899_v25 = vrot.slane %v1817_v60, 7  ;;  %1909 = vst [vmem:[#allocation2 + $0x10] sm:$0xff] %v1814_v58  ;;  %1983 = vmatmul.f32.vlgmr.msrb.gmra.mxu2 %v1814_v58  ;;  %2006 = vmatmul.f32.vlgmr.msra.gmra.mxu3 %v1815_v39 }
 0x708   :  { %1912 = vst [vmem:[#allocation2 + $0x38] sm:$0x3] %v1817_v60 }
 0x709   :  { %v1900_v22 = vsel %vm339_vm13, %v1896_v63, %v1899_v25  ;;  %1905 = vst [vmem:[#allocation2] sm:$0xfe] %v1895_v61  ;;  %v1898_v30 = vsel %vm339_vm13, %v1895_v61, %v1897_v1  ;;  %vm2013_vm13 = vcmask 162816  }
 0x70a   :  { %1906 = vst [vmem:[#allocation2 + $0x8] sm:$0xfe] %v1896_v63 }
 0x70b   :  { %1908 = vst [vmem:[#allocation2 + $0x28] sm:$0x7] %v1900_v22 }
 0x70c   :  { %1907 = vst [vmem:[#allocation2 + $0x20] sm:$0x7] %v1898_v30 }
 0x70d   :  { %1911 = vst [vmem:[#allocation2 + $0x30] sm:$0x3] %v1816_v59 }
 0x70f   :  { %v1920_v3 = vld [vmem:[#allocation2 + $0x38] sm:$0x7] }
 0x710   :  { %v1913_v50 = vld [vmem:[#allocation2] sm:$0xff]  ;;  %2009 = vmatmul.f32.gmra.mxu3 %v1920_v3 }
 0x711   :  { %1937 = vmatmul.f32.vlgmr.msrb.gmra.mxu1 %v1913_v50  ;;  %v1914_v2 = vld [vmem:[#allocation2 + $0x8] sm:$0xff] }
 0x712   :  { %1960 = vmatmul.f32.vlgmr.msrb.gmra.mxu0 %v1914_v2  ;;  %v1918_v6 = vld [vmem:[#allocation2 + $0x28] sm:$0x7] }
 0x713   :  { %v1917_v5 = vld [vmem:[#allocation2 + $0x20] sm:$0x7] }
 0x714   :  { %v1919_v4 = vld [vmem:[#allocation2 + $0x30] sm:$0x7] }
 0x715   :  { %1986 = vmatmul.f32.gmra.mxu2 %v1919_v4 }
 0x719   :  { %1940 = vmatmul.f32.gmra.mxu1 %v1917_v5 }
 0x71a   :  { %1963 = vmatmul.f32.gmra.mxu0 %v1918_v6 }
 0x78a   :  { %v1984_v28 = vpop.f32.mrf.mxu2  ;;  %v2007_v13 = vpop.f32.mrf.mxu3 }
 0x78e   :  { %v1938_v9 = vpop.f32.mrf.mxu1 }
 0x78f   :  { %v1939_v10 = vadd.f32 %v1938_v9, %v1882_v8  ;;  %v1961_v11 = vpop.f32.mrf.mxu0 }
 0x791   :  { %v1962_v12 = vadd.f32 %v1961_v11, %v1939_v10 }
 0x793   :  { %v1985_v7 = vadd.f32 %v1984_v28, %v1962_v12  ;;  %v2010_v24 = vpop.f32.mrf.mxu3 }
 0x795   :  { %v2008_v14 = vadd.f32 %v2007_v13, %v1985_v7 }
 0x796   :  { %v1941_v15 = vpop.f32.mrf.mxu1 }
 0x797   :  { %2014 = vst.msk [vmem:[%s2382_s2] sm:$0xff] %vm2013_vm13, %v2008_v14  ;;  %v1942_v16 = vadd.f32 %v1941_v15, %v1882_v8  ;;  %v1964_v18 = vpop.f32.mrf.mxu0 }
 0x798   :  { %v1987_v21 = vpop.f32.mrf.mxu2 }
 0x799   :  { %v1965_v19 = vadd.f32 %v1964_v18, %v1942_v16 }
 0x79b   :  { %v1988_v23 = vadd.f32 %v1987_v21, %v1965_v19 }
 0x79d   :  { %v2011_v42 = vadd.f32 %v2010_v24, %v1988_v23 }
 0x79f   :  { %2016 = vst.msk [vmem:[%s2382_s2 + $0x8] sm:$0x7] %vm2015_vm2, %v2011_v42 }
 0x7a0   :  { %2021 = vsyncpa [#allocation4], 1 }

</bundles_post_ra>
